<compile_context>
chip_gen: v6e
topology: v6e:2x2x1
jax: 0.10.0
libtpu: 0.0.40
codegen_flags: <defaults>
</compile_context>

<pallas_src>
import numpy as np
import jax
import jax.numpy as jnp
from jax import lax
from jax.experimental import pallas as pl
from jax.experimental.pallas import tpu as pltpu

# ---- model dims (1x16x16 input implied by FLATTEN_SIZE=256) ----
FLATTEN_SIZE = 256
CLASS_NUM = 10
HID = 16
EPS = 1e-5                 # PyTorch BatchNorm2d default eps

H = W = 16
C1, C2 = 8, 16             # conv1 / conv2 output channels
HP1 = WP1 = H + 2          # 18  stage-1 zero-padded grid
H2 = W2 = H // 2           # 8   after pool1
HP2 = WP2 = H2 + 2         # 10  stage-2 zero-padded grid
H3 = W3 = H2 // 2          # 4   after pool2

TB = 8                     # images per grid step (batch tile)
R1 = TB * HP1              # 144 stage-1 raster rows / tile
R2 = TB * HP2              # 80  stage-2 raster rows / tile
R1P = R1 + 2               # +1 zero row at each end (vertical conv taps)
R2P = R2 + 2
L1 = WP1 * C1              # 144 stage-1 lanes (padded col x channel)
L2 = WP2 * C2              # 160 stage-2 lanes
L1C = L1 - C1              # 136 lanes kept after horizontal pool-1 max
L2C = L2 - C2              # 144 lanes kept after horizontal pool-2 max


# ---------------------------------------------------------------------------
# Constant 0/1 selection matrices (layout plumbing, built once on host)
# ---------------------------------------------------------------------------
def _selection_constants():
    # S1: pooled stage-1 lane (2*oj+1)*C1+c  ->  stage-2 padded lane (oj+1)*C1+c
    s1 = np.zeros((L1, WP2 * C1), np.float32)
    for oj in range(W2):
        for c in range(C1):
            s1[(2 * oj + 1) * C1 + c, (oj + 1) * C1 + c] = 1.0
    # S2: pooled stage-2 lane (2*oj2+1)*C2+co -> compact lane oj2*C2+co
    s2 = np.zeros((L2, W3 * C2), np.float32)
    for oj2 in range(W3):
        for co in range(C2):
            s2[(2 * oj2 + 1) * C2 + co, oj2 * C2 + co] = 1.0
    # R1sel: gather pooled stage-1 rows into the zero-padded stage-2 raster rows
    r1sel = np.zeros((R2P, R1 - 1), np.float32)
    for k in range(TB):
        for oi in range(H2):
            r1sel[1 + k * HP2 + oi + 1, k * HP1 + 2 * oi + 1] = 1.0
    # R2sel[oi2]: select pooled stage-2 row oi2 of every image in the tile
    r2sel = np.zeros((H3, TB, R2 - 1), np.float32)
    for oi2 in range(H3):
        for k in range(TB):
            r2sel[oi2, k, k * HP2 + 2 * oi2 + 1] = 1.0
    return s1, s2, r1sel, r2sel


_S1, _S2, _R1SEL, _R2SEL = _selection_constants()


# ---------------------------------------------------------------------------
# Fused Pallas kernel (one grid step = TB images; everything stays in VMEM)
# ---------------------------------------------------------------------------
def _cnn_kernel(x1_ref, w1k_ref, s1_ref, t1_ref, w2k_ref, s2_ref, t2_ref,
                r1sel_ref, r2sel_ref, wf1_ref, bf1_ref, wf2_ref, bf2_ref, o_ref):
    f32 = jnp.float32

    # ---- conv1 (3x3 SAME, Cin=1): 3 banded MXU matmuls over the row raster ----
    x1 = x1_ref[...]                                              # (R1P, 18)
    y1 = jnp.dot(x1[0:R1, :], w1k_ref[0], preferred_element_type=f32)
    y1 = y1 + jnp.dot(x1[1:R1 + 1, :], w1k_ref[1], preferred_element_type=f32)
    y1 = y1 + jnp.dot(x1[2:R1 + 2, :], w1k_ref[2], preferred_element_type=f32)
    z1 = jnp.maximum(y1 * s1_ref[...] + t1_ref[...], 0.0)        # BN(+bias) folded, ReLU

    # ---- 2x2 max-pool 1: row-pair max, lane-pair max, row regather (MXU) ----
    rm1 = jnp.maximum(z1[0:R1 - 1, :], z1[1:R1, :])               # (R1-1, 144)
    cm1 = jnp.maximum(rm1[:, :L1C], rm1[:, C1:])                  # (R1-1, 136)
    x2 = jnp.dot(r1sel_ref[...], cm1, preferred_element_type=f32)  # (R2P, 136)

    # ---- conv2 (3x3 SAME, Cin=8): 3 banded MXU matmuls (pool lanes folded in) ----
    y2 = jnp.dot(x2[0:R2, :], w2k_ref[0], preferred_element_type=f32)
    y2 = y2 + jnp.dot(x2[1:R2 + 1, :], w2k_ref[1], preferred_element_type=f32)
    y2 = y2 + jnp.dot(x2[2:R2 + 2, :], w2k_ref[2], preferred_element_type=f32)
    z2 = jnp.maximum(y2 * s2_ref[...] + t2_ref[...], 0.0)        # (R2, 160)

    # ---- 2x2 max-pool 2 fused with NCHW flatten + fc1 (row-select matmuls) ----
    rm2 = jnp.maximum(z2[0:R2 - 1, :], z2[1:R2, :])               # (R2-1, 160)
    cm2 = jnp.maximum(rm2[:, :L2C], rm2[:, C2:])                  # (R2-1, 144)
    h = bf1_ref[...]                                              # (1, 16), broadcasts
    for i in range(H3):
        fb = jnp.dot(r2sel_ref[i], cm2, preferred_element_type=f32)       # (TB, 144)
        h = h + jnp.dot(fb, wf1_ref[i * L2C:(i + 1) * L2C, :],
                        preferred_element_type=f32)                        # (TB, 16)
    h = jnp.maximum(h, 0.0)
    # TODO(synk): Dropout(0.25) is identity in eval mode; train-mode masking skipped.

    logits = jnp.dot(h, wf2_ref[...], preferred_element_type=f32) + bf2_ref[...]
    m = jnp.max(logits, axis=1, keepdims=True)
    lse = jnp.log(jnp.sum(jnp.exp(logits - m), axis=1, keepdims=True))
    o_ref[...] = (logits - m) - lse


# ---------------------------------------------------------------------------
# Wrapper: parameter folding / layout prep (tiny, once per call) + pallas_call
# ---------------------------------------------------------------------------
def _bn_fold(conv_b, gamma, beta, mean, var):
    s = gamma * lax.rsqrt(var + EPS)
    return s, (conv_b - mean) * s + beta


@jax.jit
def cnn_forward(x_nchw, params):
    n = x_nchw.shape[0]
    assert x_nchw.shape[1:] == (1, H, W)
    n_pad = -(-n // TB) * TB
    nt = n_pad // TB

    # stage-1 input raster: rows = (tile image, padded spatial row), lanes = padded col
    xb = jnp.pad(x_nchw.reshape(n, H, W).astype(jnp.float32),
                 ((0, n_pad - n), (1, 1), (1, 1)))                # (n_pad, 18, 18)
    xb = xb.reshape(nt, TB * HP1, WP1)
    xb = jnp.pad(xb, ((0, 0), (1, 1), (0, 0)))                    # (nt, R1P, 18)

    # conv1 as banded per-vertical-tap matrices (lanes: padded col x out-channel)
    w1t = jnp.transpose(params["conv1_w"], (2, 3, 1, 0))[:, :, 0, :]       # (kh, kw, C1)
    w1k = jnp.stack([
        sum(jnp.kron(jnp.eye(WP1, k=1 - kw, dtype=jnp.float32),
                     w1t[kh, kw].reshape(1, C1)) for kw in range(3))
        for kh in range(3)])                                                # (3, 18, 144)

    # conv2 banded matrices, reading the pooled stage-1 lane layout directly
    w2t = jnp.transpose(params["conv2_w"], (2, 3, 1, 0))                    # (kh, kw, ci, co)
    b2 = jnp.stack([
        sum(jnp.kron(jnp.eye(WP2, k=1 - kw, dtype=jnp.float32), w2t[kh, kw])
            for kw in range(3))
        for kh in range(3)])                                                # (3, 80, 160)
    w2k = jnp.einsum('ab,kbc->kac', jnp.asarray(_S1[:L1C]), b2)             # (3, 136, 160)

    # BatchNorm (+conv bias) folded to per-lane scale/shift vectors
    s1, t1 = _bn_fold(params["conv1_b"], params["bn1_g"], params["bn1_b"],
                      params["bn1_m"], params["bn1_v"])
    s2, t2 = _bn_fold(params["conv2_b"], params["bn2_g"], params["bn2_b"],
                      params["bn2_m"], params["bn2_v"])
    s1v, t1v = jnp.tile(s1, WP1).reshape(1, -1), jnp.tile(t1, WP1).reshape(1, -1)
    s2v, t2v = jnp.tile(s2, WP2).reshape(1, -1), jnp.tile(t2, WP2).reshape(1, -1)

    # fc1 with PyTorch NCHW .view(-1,256) + pool-2 lane selection folded into its rows
    wf1r = params["fc1_w"].reshape(HID, C2, H3, W3)                         # (n, co, oi2, oj2)
    wc = jnp.transpose(wf1r, (2, 3, 1, 0)).reshape(H3, W3 * C2, HID)        # (oi2, oj2*C2+co, n)
    wf1 = jnp.einsum('ab,obn->oan', jnp.asarray(_S2[:L2C]), wc).reshape(H3 * L2C, HID)
    bf1 = params["fc1_b"].reshape(1, -1)
    wf2 = params["fc2_w"].T                                                 # (HID, CLASS_NUM)
    bf2 = params["fc2_b"].reshape(1, -1)

    r1sel = jnp.asarray(_R1SEL)                                             # (R2P, R1-1)
    r2sel = jnp.asarray(_R2SEL)                                             # (H3, TB, R2-1)

    def full(a):
        return pl.BlockSpec(a.shape, lambda b: (0,) * a.ndim)

    out = pl.pallas_call(
        _cnn_kernel,
        out_shape=jax.ShapeDtypeStruct((n_pad, CLASS_NUM), jnp.float32),
        grid=(nt,),
        in_specs=[pl.BlockSpec((None, R1P, WP1), lambda b: (b, 0, 0)),
                  full(w1k), full(s1v), full(t1v),
                  full(w2k), full(s2v), full(t2v),
                  full(r1sel), full(r2sel),
                  full(wf1), full(bf1), full(wf2), full(bf2)],
        out_specs=pl.BlockSpec((TB, CLASS_NUM), lambda b: (b, 0)),
        compiler_params=pltpu.CompilerParams(
            dimension_semantics=("parallel",),
            vmem_limit_bytes=32 * 1024 * 1024),
    )(xb, w1k, s1v, t1v, w2k, s2v, t2v, r1sel, r2sel, wf1, bf1, wf2, bf2)
    return out[:n]


# ---------------------------------------------------------------------------
# Deterministic parameters
# ---------------------------------------------------------------------------
def init_params(key):
    ks = jax.random.split(key, 12)
    p = {
        "conv1_w": 0.2 * jax.random.normal(ks[0], (C1, 1, 3, 3), jnp.float32),
        "conv1_b": 0.1 * jax.random.normal(ks[1], (C1,), jnp.float32),
        "bn1_g": 1.0 + 0.1 * jax.random.normal(ks[2], (C1,), jnp.float32),
        "bn1_b": 0.1 * jax.random.normal(ks[3], (C1,), jnp.float32),
        "bn1_m": 0.05 * jax.random.normal(ks[4], (C1,), jnp.float32),
        "bn1_v": 1.0 + 0.1 * jax.random.uniform(ks[5], (C1,), jnp.float32),
        "conv2_w": 0.1 * jax.random.normal(ks[6], (C2, C1, 3, 3), jnp.float32),
        "conv2_b": 0.1 * jax.random.normal(ks[7], (C2,), jnp.float32),
        "bn2_g": 1.0 + 0.1 * jax.random.normal(ks[8], (C2,), jnp.float32),
        "bn2_b": 0.1 * jax.random.normal(ks[9], (C2,), jnp.float32),
        "bn2_m": 0.05 * jax.random.normal(ks[10], (C2,), jnp.float32),
        "bn2_v": 1.0 + 0.1 * jax.random.uniform(ks[11], (C2,), jnp.float32),
    }
    kf = jax.random.split(jax.random.fold_in(key, 123), 4)
    p["fc1_w"] = 0.05 * jax.random.normal(kf[0], (HID, FLATTEN_SIZE), jnp.float32)
    p["fc1_b"] = 0.05 * jax.random.normal(kf[1], (HID,), jnp.float32)
    p["fc2_w"] = 0.1 * jax.random.normal(kf[2], (CLASS_NUM, HID), jnp.float32)
    p["fc2_b"] = 0.05 * jax.random.normal(kf[3], (CLASS_NUM,), jnp.float32)
    return p


# ---------------------------------------------------------------------------
# Pure-JAX reference (f32, HIGHEST precision) for correctness verification
# ---------------------------------------------------------------------------
def reference_forward(x_nchw, p):
    hp = lax.Precision.HIGHEST

    def conv(x, w, b):
        y = lax.conv_general_dilated(x, w, (1, 1), "SAME",
                                     dimension_numbers=("NCHW", "OIHW", "NCHW"),
                                     precision=hp)
        return y + b[None, :, None, None]

    def bn(x, g, be, m, v):
        return (x - m[None, :, None, None]) / jnp.sqrt(v[None, :, None, None] + EPS) \
               * g[None, :, None, None] + be[None, :, None, None]

    def pool(x):
        return lax.reduce_window(x, -jnp.inf, lax.max, (1, 1, 2, 2), (1, 1, 2, 2), "VALID")

    y = pool(jax.nn.relu(bn(conv(x_nchw, p["conv1_w"], p["conv1_b"]),
                            p["bn1_g"], p["bn1_b"], p["bn1_m"], p["bn1_v"])))
    y = pool(jax.nn.relu(bn(conv(y, p["conv2_w"], p["conv2_b"]),
                            p["bn2_g"], p["bn2_b"], p["bn2_m"], p["bn2_v"])))
    feat = y.reshape(y.shape[0], -1)
    h = jax.nn.relu(jnp.dot(feat, p["fc1_w"].T, precision=hp) + p["fc1_b"])
    logits = jnp.dot(h, p["fc2_w"].T, precision=hp) + p["fc2_b"]
    return jax.nn.log_softmax(logits, axis=1)


if __name__ == "__main__":
    key = jax.random.PRNGKey(0)
    k_x, k_p = jax.random.split(key)
    x = jax.random.normal(k_x, (2, 1, H, W), jnp.float32)     # NCHW, 1 input channel
    params = init_params(k_p)

    out = jax.block_until_ready(cnn_forward(x, params))
    ref = jax.block_until_ready(reference_forward(x, params))

    assert out.shape == (2, CLASS_NUM), out.shape
    err = float(jnp.max(jnp.abs(out - ref)))
    # In-kernel dots use the MXU default path; reference is f32 HIGHEST.
    assert err < 2e-2, err
    print("KERNEL_OK")
</pallas_src>

<mosaic_0001>
module attributes {stable_mosaic.version = 11 : i64} {
  func.func @_cnn_kernel(%arg0: i32, %arg1: memref<1x146x18xf32, #tpu.memory_space<vmem>>, %arg2: memref<3x18x144xf32, #tpu.memory_space<vmem>>, %arg3: memref<1x144xf32, #tpu.memory_space<vmem>>, %arg4: memref<1x144xf32, #tpu.memory_space<vmem>>, %arg5: memref<3x136x160xf32, #tpu.memory_space<vmem>>, %arg6: memref<1x160xf32, #tpu.memory_space<vmem>>, %arg7: memref<1x160xf32, #tpu.memory_space<vmem>>, %arg8: memref<82x143xf32, #tpu.memory_space<vmem>>, %arg9: memref<4x8x79xf32, #tpu.memory_space<vmem>>, %arg10: memref<576x16xf32, #tpu.memory_space<vmem>>, %arg11: memref<1x16xf32, #tpu.memory_space<vmem>>, %arg12: memref<16x10xf32, #tpu.memory_space<vmem>>, %arg13: memref<1x10xf32, #tpu.memory_space<vmem>>, %arg14: memref<8x10xf32, #tpu.memory_space<vmem>>) attributes {dimension_semantics = [#tpu.dimension_semantics<parallel>], iteration_bounds = array<i64: 1>, scalar_prefetch = 0 : i64, scratch_operands = 0 : i64, tpu.core_type = #tpu.core_type<tc>, window_params = [{transform_indices = @transform_0, window_bounds = array<i64: 1, 146, 18>}, {pipeline_mode = #tpu.pipeline_mode<synchronous>, transform_indices = @transform_1, window_bounds = array<i64: 3, 18, 144>}, {pipeline_mode = #tpu.pipeline_mode<synchronous>, transform_indices = @transform_2, window_bounds = array<i64: 1, 144>}, {pipeline_mode = #tpu.pipeline_mode<synchronous>, transform_indices = @transform_3, window_bounds = array<i64: 1, 144>}, {pipeline_mode = #tpu.pipeline_mode<synchronous>, transform_indices = @transform_4, window_bounds = array<i64: 3, 136, 160>}, {pipeline_mode = #tpu.pipeline_mode<synchronous>, transform_indices = @transform_5, window_bounds = array<i64: 1, 160>}, {pipeline_mode = #tpu.pipeline_mode<synchronous>, transform_indices = @transform_6, window_bounds = array<i64: 1, 160>}, {pipeline_mode = #tpu.pipeline_mode<synchronous>, transform_indices = @transform_7, window_bounds = array<i64: 82, 143>}, {pipeline_mode = #tpu.pipeline_mode<synchronous>, transform_indices = @transform_8, window_bounds = array<i64: 4, 8, 79>}, {pipeline_mode = #tpu.pipeline_mode<synchronous>, transform_indices = @transform_9, window_bounds = array<i64: 576, 16>}, {pipeline_mode = #tpu.pipeline_mode<synchronous>, transform_indices = @transform_10, window_bounds = array<i64: 1, 16>}, {pipeline_mode = #tpu.pipeline_mode<synchronous>, transform_indices = @transform_11, window_bounds = array<i64: 16, 10>}, {pipeline_mode = #tpu.pipeline_mode<synchronous>, transform_indices = @transform_12, window_bounds = array<i64: 1, 10>}, {transform_indices = @transform_13, window_bounds = array<i64: 8, 10>}]} {
    %c0 = arith.constant 0 : index
    %c0_0 = arith.constant 0 : index
    %c0_1 = arith.constant 0 : index
    %0 = vector.load %arg1[%c0, %c0_0, %c0_1] : memref<1x146x18xf32, #tpu.memory_space<vmem>>, vector<1x146x18xf32>
    %1 = vector.shape_cast %0 : vector<1x146x18xf32> to vector<146x18xf32>
    %2 = vector.extract_strided_slice %1 {offsets = [0, 0], sizes = [144, 18], strides = [1, 1]} : vector<146x18xf32> to vector<144x18xf32>
    %c0_2 = arith.constant 0 : index
    %c0_3 = arith.constant 0 : index
    %c0_4 = arith.constant 0 : index
    %3 = vector.load %arg2[%c0_2, %c0_3, %c0_4] : memref<3x18x144xf32, #tpu.memory_space<vmem>>, vector<1x18x144xf32>
    %4 = vector.shape_cast %3 : vector<1x18x144xf32> to vector<18x144xf32>
    %cst = arith.constant dense<0.000000e+00> : vector<144x144xf32>
    %5 = tpu.matmul %2, %4, %cst {dimension_numbers = #tpu.dot_dimension_numbers<[1], [0], [0], [1], [0, 0, 1, 1], [], []>} : vector<144x18xf32>, vector<18x144xf32>, vector<144x144xf32> -> vector<144x144xf32>
    %6 = vector.extract_strided_slice %1 {offsets = [1, 0], sizes = [144, 18], strides = [1, 1]} : vector<146x18xf32> to vector<144x18xf32>
    %c1 = arith.constant 1 : index
    %c0_5 = arith.constant 0 : index
    %c0_6 = arith.constant 0 : index
    %7 = vector.load %arg2[%c1, %c0_5, %c0_6] : memref<3x18x144xf32, #tpu.memory_space<vmem>>, vector<1x18x144xf32>
    %8 = vector.shape_cast %7 : vector<1x18x144xf32> to vector<18x144xf32>
    %cst_7 = arith.constant dense<0.000000e+00> : vector<144x144xf32>
    %9 = tpu.matmul %6, %8, %cst_7 {dimension_numbers = #tpu.dot_dimension_numbers<[1], [0], [0], [1], [0, 0, 1, 1], [], []>} : vector<144x18xf32>, vector<18x144xf32>, vector<144x144xf32> -> vector<144x144xf32>
    %10 = arith.addf %5, %9 : vector<144x144xf32>
    %11 = vector.extract_strided_slice %1 {offsets = [2, 0], sizes = [144, 18], strides = [1, 1]} : vector<146x18xf32> to vector<144x18xf32>
    %c2 = arith.constant 2 : index
    %c0_8 = arith.constant 0 : index
    %c0_9 = arith.constant 0 : index
    %12 = vector.load %arg2[%c2, %c0_8, %c0_9] : memref<3x18x144xf32, #tpu.memory_space<vmem>>, vector<1x18x144xf32>
    %13 = vector.shape_cast %12 : vector<1x18x144xf32> to vector<18x144xf32>
    %cst_10 = arith.constant dense<0.000000e+00> : vector<144x144xf32>
    %14 = tpu.matmul %11, %13, %cst_10 {dimension_numbers = #tpu.dot_dimension_numbers<[1], [0], [0], [1], [0, 0, 1, 1], [], []>} : vector<144x18xf32>, vector<18x144xf32>, vector<144x144xf32> -> vector<144x144xf32>
    %15 = arith.addf %10, %14 : vector<144x144xf32>
    %c0_11 = arith.constant 0 : index
    %c0_12 = arith.constant 0 : index
    %16 = vector.load %arg3[%c0_11, %c0_12] : memref<1x144xf32, #tpu.memory_space<vmem>>, vector<1x144xf32>
    %17 = vector.broadcast %16 : vector<1x144xf32> to vector<144x144xf32>
    %18 = arith.mulf %15, %17 : vector<144x144xf32>
    %c0_13 = arith.constant 0 : index
    %c0_14 = arith.constant 0 : index
    %19 = vector.load %arg4[%c0_13, %c0_14] : memref<1x144xf32, #tpu.memory_space<vmem>>, vector<1x144xf32>
    %20 = vector.broadcast %19 : vector<1x144xf32> to vector<144x144xf32>
    %21 = arith.addf %18, %20 : vector<144x144xf32>
    %cst_15 = arith.constant 0.000000e+00 : f32
    %22 = vector.broadcast %cst_15 : f32 to vector<144x144xf32>
    %23 = arith.maximumf %21, %22 : vector<144x144xf32>
    %24 = vector.extract_strided_slice %23 {offsets = [0, 0], sizes = [143, 144], strides = [1, 1]} : vector<144x144xf32> to vector<143x144xf32>
    %25 = vector.extract_strided_slice %23 {offsets = [1, 0], sizes = [143, 144], strides = [1, 1]} : vector<144x144xf32> to vector<143x144xf32>
    %26 = arith.maximumf %24, %25 : vector<143x144xf32>
    %27 = vector.extract_strided_slice %26 {offsets = [0, 0], sizes = [143, 136], strides = [1, 1]} : vector<143x144xf32> to vector<143x136xf32>
    %28 = vector.extract_strided_slice %26 {offsets = [0, 8], sizes = [143, 136], strides = [1, 1]} : vector<143x144xf32> to vector<143x136xf32>
    %29 = arith.maximumf %27, %28 : vector<143x136xf32>
    %c0_16 = arith.constant 0 : index
    %c0_17 = arith.constant 0 : index
    %30 = vector.load %arg8[%c0_16, %c0_17] : memref<82x143xf32, #tpu.memory_space<vmem>>, vector<82x143xf32>
    %cst_18 = arith.constant dense<0.000000e+00> : vector<82x136xf32>
    %31 = tpu.matmul %30, %29, %cst_18 {dimension_numbers = #tpu.dot_dimension_numbers<[1], [0], [0], [1], [0, 0, 1, 1], [], []>} : vector<82x143xf32>, vector<143x136xf32>, vector<82x136xf32> -> vector<82x136xf32>
    %32 = vector.extract_strided_slice %31 {offsets = [0, 0], sizes = [80, 136], strides = [1, 1]} : vector<82x136xf32> to vector<80x136xf32>
    %c0_19 = arith.constant 0 : index
    %c0_20 = arith.constant 0 : index
    %c0_21 = arith.constant 0 : index
    %33 = vector.load %arg5[%c0_19, %c0_20, %c0_21] : memref<3x136x160xf32, #tpu.memory_space<vmem>>, vector<1x136x160xf32>
    %34 = vector.shape_cast %33 : vector<1x136x160xf32> to vector<136x160xf32>
    %cst_22 = arith.constant dense<0.000000e+00> : vector<80x160xf32>
    %35 = tpu.matmul %32, %34, %cst_22 {dimension_numbers = #tpu.dot_dimension_numbers<[1], [0], [0], [1], [0, 0, 1, 1], [], []>} : vector<80x136xf32>, vector<136x160xf32>, vector<80x160xf32> -> vector<80x160xf32>
    %36 = vector.extract_strided_slice %31 {offsets = [1, 0], sizes = [80, 136], strides = [1, 1]} : vector<82x136xf32> to vector<80x136xf32>
    %c1_23 = arith.constant 1 : index
    %c0_24 = arith.constant 0 : index
    %c0_25 = arith.constant 0 : index
    %37 = vector.load %arg5[%c1_23, %c0_24, %c0_25] : memref<3x136x160xf32, #tpu.memory_space<vmem>>, vector<1x136x160xf32>
    %38 = vector.shape_cast %37 : vector<1x136x160xf32> to vector<136x160xf32>
    %cst_26 = arith.constant dense<0.000000e+00> : vector<80x160xf32>
    %39 = tpu.matmul %36, %38, %cst_26 {dimension_numbers = #tpu.dot_dimension_numbers<[1], [0], [0], [1], [0, 0, 1, 1], [], []>} : vector<80x136xf32>, vector<136x160xf32>, vector<80x160xf32> -> vector<80x160xf32>
    %40 = arith.addf %35, %39 : vector<80x160xf32>
    %41 = vector.extract_strided_slice %31 {offsets = [2, 0], sizes = [80, 136], strides = [1, 1]} : vector<82x136xf32> to vector<80x136xf32>
    %c2_27 = arith.constant 2 : index
    %c0_28 = arith.constant 0 : index
    %c0_29 = arith.constant 0 : index
    %42 = vector.load %arg5[%c2_27, %c0_28, %c0_29] : memref<3x136x160xf32, #tpu.memory_space<vmem>>, vector<1x136x160xf32>
    %43 = vector.shape_cast %42 : vector<1x136x160xf32> to vector<136x160xf32>
    %cst_30 = arith.constant dense<0.000000e+00> : vector<80x160xf32>
    %44 = tpu.matmul %41, %43, %cst_30 {dimension_numbers = #tpu.dot_dimension_numbers<[1], [0], [0], [1], [0, 0, 1, 1], [], []>} : vector<80x136xf32>, vector<136x160xf32>, vector<80x160xf32> -> vector<80x160xf32>
    %45 = arith.addf %40, %44 : vector<80x160xf32>
    %c0_31 = arith.constant 0 : index
    %c0_32 = arith.constant 0 : index
    %46 = vector.load %arg6[%c0_31, %c0_32] : memref<1x160xf32, #tpu.memory_space<vmem>>, vector<1x160xf32>
    %47 = vector.broadcast %46 : vector<1x160xf32> to vector<80x160xf32>
    %48 = arith.mulf %45, %47 : vector<80x160xf32>
    %c0_33 = arith.constant 0 : index
    %c0_34 = arith.constant 0 : index
    %49 = vector.load %arg7[%c0_33, %c0_34] : memref<1x160xf32, #tpu.memory_space<vmem>>, vector<1x160xf32>
    %50 = vector.broadcast %49 : vector<1x160xf32> to vector<80x160xf32>
    %51 = arith.addf %48, %50 : vector<80x160xf32>
    %cst_35 = arith.constant 0.000000e+00 : f32
    %52 = vector.broadcast %cst_35 : f32 to vector<80x160xf32>
    %53 = arith.maximumf %51, %52 : vector<80x160xf32>
    %54 = vector.extract_strided_slice %53 {offsets = [0, 0], sizes = [79, 160], strides = [1, 1]} : vector<80x160xf32> to vector<79x160xf32>
    %55 = vector.extract_strided_slice %53 {offsets = [1, 0], sizes = [79, 160], strides = [1, 1]} : vector<80x160xf32> to vector<79x160xf32>
    %56 = arith.maximumf %54, %55 : vector<79x160xf32>
    %57 = vector.extract_strided_slice %56 {offsets = [0, 0], sizes = [79, 144], strides = [1, 1]} : vector<79x160xf32> to vector<79x144xf32>
    %58 = vector.extract_strided_slice %56 {offsets = [0, 16], sizes = [79, 144], strides = [1, 1]} : vector<79x160xf32> to vector<79x144xf32>
    %59 = arith.maximumf %57, %58 : vector<79x144xf32>
    %c0_36 = arith.constant 0 : index
    %c0_37 = arith.constant 0 : index
    %60 = vector.load %arg11[%c0_36, %c0_37] : memref<1x16xf32, #tpu.memory_space<vmem>>, vector<1x16xf32>
    %c0_38 = arith.constant 0 : index
    %c0_39 = arith.constant 0 : index
    %c0_40 = arith.constant 0 : index
    %61 = vector.load %arg9[%c0_38, %c0_39, %c0_40] : memref<4x8x79xf32, #tpu.memory_space<vmem>>, vector<1x8x79xf32>
    %62 = vector.shape_cast %61 : vector<1x8x79xf32> to vector<8x79xf32>
    %cst_41 = arith.constant dense<0.000000e+00> : vector<8x144xf32>
    %63 = tpu.matmul %62, %59, %cst_41 {dimension_numbers = #tpu.dot_dimension_numbers<[1], [0], [0], [1], [0, 0, 1, 1], [], []>} : vector<8x79xf32>, vector<79x144xf32>, vector<8x144xf32> -> vector<8x144xf32>
    %c0_42 = arith.constant 0 : index
    %c0_43 = arith.constant 0 : index
    %64 = vector.load %arg10[%c0_42, %c0_43] : memref<576x16xf32, #tpu.memory_space<vmem>>, vector<144x16xf32>
    %cst_44 = arith.constant dense<0.000000e+00> : vector<8x16xf32>
    %65 = tpu.matmul %63, %64, %cst_44 {dimension_numbers = #tpu.dot_dimension_numbers<[1], [0], [0], [1], [0, 0, 1, 1], [], []>} : vector<8x144xf32>, vector<144x16xf32>, vector<8x16xf32> -> vector<8x16xf32>
    %66 = vector.broadcast %60 : vector<1x16xf32> to vector<8x16xf32>
    %67 = arith.addf %66, %65 : vector<8x16xf32>
    %c1_45 = arith.constant 1 : index
    %c0_46 = arith.constant 0 : index
    %c0_47 = arith.constant 0 : index
    %68 = vector.load %arg9[%c1_45, %c0_46, %c0_47] : memref<4x8x79xf32, #tpu.memory_space<vmem>>, vector<1x8x79xf32>
    %69 = vector.shape_cast %68 : vector<1x8x79xf32> to vector<8x79xf32>
    %cst_48 = arith.constant dense<0.000000e+00> : vector<8x144xf32>
    %70 = tpu.matmul %69, %59, %cst_48 {dimension_numbers = #tpu.dot_dimension_numbers<[1], [0], [0], [1], [0, 0, 1, 1], [], []>} : vector<8x79xf32>, vector<79x144xf32>, vector<8x144xf32> -> vector<8x144xf32>
    %c144 = arith.constant 144 : index
    %c0_49 = arith.constant 0 : index
    %71 = vector.load %arg10[%c144, %c0_49] : memref<576x16xf32, #tpu.memory_space<vmem>>, vector<144x16xf32>
    %cst_50 = arith.constant dense<0.000000e+00> : vector<8x16xf32>
    %72 = tpu.matmul %70, %71, %cst_50 {dimension_numbers = #tpu.dot_dimension_numbers<[1], [0], [0], [1], [0, 0, 1, 1], [], []>} : vector<8x144xf32>, vector<144x16xf32>, vector<8x16xf32> -> vector<8x16xf32>
    %73 = arith.addf %67, %72 : vector<8x16xf32>
    %c2_51 = arith.constant 2 : index
    %c0_52 = arith.constant 0 : index
    %c0_53 = arith.constant 0 : index
    %74 = vector.load %arg9[%c2_51, %c0_52, %c0_53] : memref<4x8x79xf32, #tpu.memory_space<vmem>>, vector<1x8x79xf32>
    %75 = vector.shape_cast %74 : vector<1x8x79xf32> to vector<8x79xf32>
    %cst_54 = arith.constant dense<0.000000e+00> : vector<8x144xf32>
    %76 = tpu.matmul %75, %59, %cst_54 {dimension_numbers = #tpu.dot_dimension_numbers<[1], [0], [0], [1], [0, 0, 1, 1], [], []>} : vector<8x79xf32>, vector<79x144xf32>, vector<8x144xf32> -> vector<8x144xf32>
    %c288 = arith.constant 288 : index
    %c0_55 = arith.constant 0 : index
    %77 = vector.load %arg10[%c288, %c0_55] : memref<576x16xf32, #tpu.memory_space<vmem>>, vector<144x16xf32>
    %cst_56 = arith.constant dense<0.000000e+00> : vector<8x16xf32>
    %78 = tpu.matmul %76, %77, %cst_56 {dimension_numbers = #tpu.dot_dimension_numbers<[1], [0], [0], [1], [0, 0, 1, 1], [], []>} : vector<8x144xf32>, vector<144x16xf32>, vector<8x16xf32> -> vector<8x16xf32>
    %79 = arith.addf %73, %78 : vector<8x16xf32>
    %c3 = arith.constant 3 : index
    %c0_57 = arith.constant 0 : index
    %c0_58 = arith.constant 0 : index
    %80 = vector.load %arg9[%c3, %c0_57, %c0_58] : memref<4x8x79xf32, #tpu.memory_space<vmem>>, vector<1x8x79xf32>
    %81 = vector.shape_cast %80 : vector<1x8x79xf32> to vector<8x79xf32>
    %cst_59 = arith.constant dense<0.000000e+00> : vector<8x144xf32>
    %82 = tpu.matmul %81, %59, %cst_59 {dimension_numbers = #tpu.dot_dimension_numbers<[1], [0], [0], [1], [0, 0, 1, 1], [], []>} : vector<8x79xf32>, vector<79x144xf32>, vector<8x144xf32> -> vector<8x144xf32>
    %c432 = arith.constant 432 : index
    %c0_60 = arith.constant 0 : index
    %83 = vector.load %arg10[%c432, %c0_60] : memref<576x16xf32, #tpu.memory_space<vmem>>, vector<144x16xf32>
    %cst_61 = arith.constant dense<0.000000e+00> : vector<8x16xf32>
    %84 = tpu.matmul %82, %83, %cst_61 {dimension_numbers = #tpu.dot_dimension_numbers<[1], [0], [0], [1], [0, 0, 1, 1], [], []>} : vector<8x144xf32>, vector<144x16xf32>, vector<8x16xf32> -> vector<8x16xf32>
    %85 = arith.addf %79, %84 : vector<8x16xf32>
    %cst_62 = arith.constant 0.000000e+00 : f32
    %86 = vector.broadcast %cst_62 : f32 to vector<8x16xf32>
    %87 = arith.maximumf %85, %86 : vector<8x16xf32>
    %c0_63 = arith.constant 0 : index
    %c0_64 = arith.constant 0 : index
    %88 = vector.load %arg12[%c0_63, %c0_64] : memref<16x10xf32, #tpu.memory_space<vmem>>, vector<16x10xf32>
    %cst_65 = arith.constant dense<0.000000e+00> : vector<8x10xf32>
    %89 = tpu.matmul %87, %88, %cst_65 {dimension_numbers = #tpu.dot_dimension_numbers<[1], [0], [0], [1], [0, 0, 1, 1], [], []>} : vector<8x16xf32>, vector<16x10xf32>, vector<8x10xf32> -> vector<8x10xf32>
    %c0_66 = arith.constant 0 : index
    %c0_67 = arith.constant 0 : index
    %90 = vector.load %arg13[%c0_66, %c0_67] : memref<1x10xf32, #tpu.memory_space<vmem>>, vector<1x10xf32>
    %91 = vector.broadcast %90 : vector<1x10xf32> to vector<8x10xf32>
    %92 = arith.addf %89, %91 : vector<8x10xf32>
    %cst_68 = arith.constant dense<0xFF800000> : vector<8xf32>
    %93 = vector.multi_reduction <maximumf>, %92, %cst_68 [1] : vector<8x10xf32> to vector<8xf32>
    %94 = vector.shape_cast %93 : vector<8xf32> to vector<8x1xf32>
    %95 = vector.broadcast %94 : vector<8x1xf32> to vector<8x10xf32>
    %96 = arith.subf %92, %95 : vector<8x10xf32>
    %97 = math.exp %96 : vector<8x10xf32>
    %cst_69 = arith.constant dense<0.000000e+00> : vector<8xf32>
    %98 = vector.multi_reduction <add>, %97, %cst_69 [1] : vector<8x10xf32> to vector<8xf32>
    %99 = vector.shape_cast %98 : vector<8xf32> to vector<8x1xf32>
    %100 = math.log %99 : vector<8x1xf32>
    %101 = vector.broadcast %94 : vector<8x1xf32> to vector<8x10xf32>
    %102 = arith.subf %92, %101 : vector<8x10xf32>
    %103 = vector.broadcast %100 : vector<8x1xf32> to vector<8x10xf32>
    %104 = arith.subf %102, %103 : vector<8x10xf32>
    %c0_70 = arith.constant 0 : index
    %c0_71 = arith.constant 0 : index
    %105 = vector.load %arg14[%c0_70, %c0_71] : memref<8x10xf32, #tpu.memory_space<vmem>>, vector<8x10xf32>
    tpu.vector_store %arg14[%c0_70, %c0_71], %104 {strides = array<i32>} : memref<8x10xf32, #tpu.memory_space<vmem>>, vector<8x10xf32>,
    return
  }
  func.func @transform_0(%arg0: i32) -> (i32, i32, i32) {
    %c0_i32 = arith.constant 0 : i32
    %c0_i32_0 = arith.constant 0 : i32
    %c0_i32_1 = arith.constant 0 : i32
    return %arg0, %c0_i32, %c0_i32_0 : i32, i32, i32
  }
  func.func @transform_1(%arg0: i32) -> (i32, i32, i32) {
    %c0_i32 = arith.constant 0 : i32
    %c0_i32_0 = arith.constant 0 : i32
    %c0_i32_1 = arith.constant 0 : i32
    %c0_i32_2 = arith.constant 0 : i32
    return %c0_i32, %c0_i32_0, %c0_i32_1 : i32, i32, i32
  }
  func.func @transform_2(%arg0: i32) -> (i32, i32) {
    %c0_i32 = arith.constant 0 : i32
    %c0_i32_0 = arith.constant 0 : i32
    %c0_i32_1 = arith.constant 0 : i32
    return %c0_i32, %c0_i32_0 : i32, i32
  }
  func.func @transform_3(%arg0: i32) -> (i32, i32) {
    %c0_i32 = arith.constant 0 : i32
    %c0_i32_0 = arith.constant 0 : i32
    %c0_i32_1 = arith.constant 0 : i32
    return %c0_i32, %c0_i32_0 : i32, i32
  }
  func.func @transform_4(%arg0: i32) -> (i32, i32, i32) {
    %c0_i32 = arith.constant 0 : i32
    %c0_i32_0 = arith.constant 0 : i32
    %c0_i32_1 = arith.constant 0 : i32
    %c0_i32_2 = arith.constant 0 : i32
    return %c0_i32, %c0_i32_0, %c0_i32_1 : i32, i32, i32
  }
  func.func @transform_5(%arg0: i32) -> (i32, i32) {
    %c0_i32 = arith.constant 0 : i32
    %c0_i32_0 = arith.constant 0 : i32
    %c0_i32_1 = arith.constant 0 : i32
    return %c0_i32, %c0_i32_0 : i32, i32
  }
  func.func @transform_6(%arg0: i32) -> (i32, i32) {
    %c0_i32 = arith.constant 0 : i32
    %c0_i32_0 = arith.constant 0 : i32
    %c0_i32_1 = arith.constant 0 : i32
    return %c0_i32, %c0_i32_0 : i32, i32
  }
  func.func @transform_7(%arg0: i32) -> (i32, i32) {
    %c0_i32 = arith.constant 0 : i32
    %c0_i32_0 = arith.constant 0 : i32
    %c0_i32_1 = arith.constant 0 : i32
    return %c0_i32, %c0_i32_0 : i32, i32
  }
  func.func @transform_8(%arg0: i32) -> (i32, i32, i32) {
    %c0_i32 = arith.constant 0 : i32
    %c0_i32_0 = arith.constant 0 : i32
    %c0_i32_1 = arith.constant 0 : i32
    %c0_i32_2 = arith.constant 0 : i32
    return %c0_i32, %c0_i32_0, %c0_i32_1 : i32, i32, i32
  }
  func.func @transform_9(%arg0: i32) -> (i32, i32) {
    %c0_i32 = arith.constant 0 : i32
    %c0_i32_0 = arith.constant 0 : i32
    %c0_i32_1 = arith.constant 0 : i32
    return %c0_i32, %c0_i32_0 : i32, i32
  }
  func.func @transform_10(%arg0: i32) -> (i32, i32) {
    %c0_i32 = arith.constant 0 : i32
    %c0_i32_0 = arith.constant 0 : i32
    %c0_i32_1 = arith.constant 0 : i32
    return %c0_i32, %c0_i32_0 : i32, i32
  }
  func.func @transform_11(%arg0: i32) -> (i32, i32) {
    %c0_i32 = arith.constant 0 : i32
    %c0_i32_0 = arith.constant 0 : i32
    %c0_i32_1 = arith.constant 0 : i32
    return %c0_i32, %c0_i32_0 : i32, i32
  }
  func.func @transform_12(%arg0: i32) -> (i32, i32) {
    %c0_i32 = arith.constant 0 : i32
    %c0_i32_0 = arith.constant 0 : i32
    %c0_i32_1 = arith.constant 0 : i32
    return %c0_i32, %c0_i32_0 : i32, i32
  }
  func.func @transform_13(%arg0: i32) -> (i32, i32) {
    %c0_i32 = arith.constant 0 : i32
    %c0_i32_0 = arith.constant 0 : i32
    return %arg0, %c0_i32 : i32, i32
  }
}

</mosaic_0001>

<bundles_post_ra>
// kernel: tile.24
= control target key start
LH: loop header
LB: loop body
LE: loop exit
PB: predicated region body
PF: predicated region fallthrough
CT: control target
= control target key end

     0   :  { %s142_s10 = smov 120   ;;  %s143_s11 = smov 104   ;;  %vm4_vm0 = vcmask 64512   ;;  %vm10_vm1 = vcmask 1048512   ;;  %vm16_vm2 = vcmask 982912   ;;  %vm22_vm3 = vcmask 917312   ;;  %s221_s0 = inlined_call_operand.vmem [shape: f32[18,8], index: 0, kind: input, shape index: {}]   ;;  %s222_s1 = inlined_call_operand.vmem [shape: f32[1,144], index: 1, kind: output, shape index: {}]  }
   0x1   :  { %v111_v0 = vld [vmem:[%s221_s0 + $0xf] sm:$0x1]   ;;  %v113_v1 = vld [vmem:[%s221_s0 + $0xd] sm:$0x1]   ;;  %v112_v2 = vld [vmem:[%s221_s0 + $0xe] sm:$0x1]  }
   0x2   :  { %8 = vrot.lane.b32.xlu0 %v111_v0, %s142_s10  ;;  %20 = vrot.lane.b32.xlu1 %v113_v1, %s143_s11  ;;  %v114_v3 = vld [vmem:[%s221_s0 + $0xc] sm:$0x1]   ;;  %s144_s16 = smov 112   ;;  %s145_s17 = smov 96   ;;  %v115_v4 = vld [vmem:[%s221_s0 + $0xb] sm:$0x1]  }
   0x3   :  { %v116_v5 = vld [vmem:[%s221_s0 + $0xa] sm:$0x1]   ;;  %s2_s22 = smov 3  ;;  %s146_s23 = smov 88   ;;  %v117_v7 = vld [vmem:[%s221_s0 + $0x9] sm:$0x1]  }
   0x4   :  { %s147_s24 = smov 80   ;;  %v3_v6 = vld [vmem:[%s221_s0] ss:$16 sm:%s2_s22]   ;;  %v118_v8 = vld [vmem:[%s221_s0 + $0x8] sm:$0x1]   ;;  %s148_s2 = smov 72  }
   0x5   :  { %5 = vst.msk [vmem:[#allocation0] ss:$8 sm:$0x3] %vm4_vm0, %v3_v6   ;;  %s149_s3 = smov 64   ;;  %v119_v9 = vld [vmem:[%s221_s0 + $0x7] sm:$0x1]  }
   0x6   :  { %14 = vrot.lane.b32.xlu0 %v112_v2, %s144_s16  ;;  %26 = vrot.lane.b32.xlu1 %v114_v3, %s145_s17  ;;  %v120_v10 = vld [vmem:[%s221_s0 + $0x6] sm:$0x1]   ;;  %s150_s8 = smov 56   ;;  %s151_s9 = smov 48   ;;  %v121_v11 = vld [vmem:[%s221_s0 + $0x5] sm:$0x1]  }
   0x7   :  { %v122_v12 = vld [vmem:[%s221_s0 + $0x4] sm:$0x1]   ;;  %s152_s14 = smov 40   ;;  %s153_s15 = smov 32   ;;  %v123_v13 = vld [vmem:[%s221_s0 + $0x3] sm:$0x1]  }
   0x8   :  { %v124_v14 = vld [vmem:[%s221_s0 + $0x2] sm:$0x1]   ;;  %s91_s20 = smov 3  ;;  %s154_s21 = smov 24   ;;  %vm28_vm4 = vcmask 851712   ;;  %vm34_vm5 = vcmask 786112  }
   0x9   :  { %s155_s22 = smov 16   ;;  %v125_v15 = vld [vmem:[%s221_s0 + $0x1] ss:$16 sm:%s91_s20]   ;;  %s156_s0 = smov 8   ;;  %vm40_vm6 = vcmask 720512   ;;  %vm46_vm7 = vcmask 654912  }
   0xa   :  { %32 = vrot.lane.b32.xlu0 %v115_v4, %s146_s23  ;;  %38 = vrot.lane.b32.xlu1 %v116_v5, %s147_s24  ;;  %vm52_vm8 = vcmask 589312   ;;  %vm58_vm9 = vcmask 523712   ;;  %vm64_vm10 = vcmask 458112   ;;  %vm70_vm11 = vcmask 392512  }
   0xb   :  { %vm76_vm12 = vcmask 326912   ;;  %vm82_vm13 = vcmask 261312   ;;  %vm88_vm14 = vcmask 195712   ;;  %vm95_vm15 = vcmask 130112  }
   0xe   :  { %44 = vrot.lane.b32.xlu0 %v117_v7, %s148_s2  ;;  %50 = vrot.lane.b32.xlu1 %v118_v8, %s149_s3 }
  0x12   :  { %56 = vrot.lane.b32.xlu0 %v119_v9, %s150_s8  ;;  %62 = vrot.lane.b32.xlu1 %v120_v10, %s151_s9 }
  0x16   :  { %68 = vrot.lane.b32.xlu0 %v121_v11, %s152_s14  ;;  %74 = vrot.lane.b32.xlu1 %v122_v12, %s153_s15 }
  0x1a   :  { %80 = vrot.lane.b32.xlu0 %v123_v13, %s154_s21  ;;  %86 = vrot.lane.b32.xlu1 %v124_v14, %s155_s22 }
  0x1e   :  { %93 = vrot.lane.b32.xlu0 %v125_v15, %s156_s0 }
  0x74   :  { %v9_v16 = vpop.permute.xlu0 %8   ;;  %v21_v17 = vpop.permute.xlu1 %20  }
  0x75   :  { %11 = vst.msk [vmem:[#allocation0] sm:$0x1] %vm10_vm1, %v9_v16  }
  0x78   :  { %v15_v18 = vpop.permute.xlu0 %14   ;;  %v27_v19 = vpop.permute.xlu1 %26  }
  0x79   :  { %17 = vst.msk [vmem:[#allocation0] sm:$0x1] %vm16_vm2, %v15_v18  }
  0x7a   :  { %23 = vst.msk [vmem:[#allocation0] sm:$0x1] %vm22_vm3, %v21_v17  }
  0x7b   :  { %29 = vst.msk [vmem:[#allocation0] sm:$0x1] %vm28_vm4, %v27_v19  }
  0x7c   :  { %v33_v20 = vpop.permute.xlu0 %32   ;;  %v39_v21 = vpop.permute.xlu1 %38  }
  0x7d   :  { %35 = vst.msk [vmem:[#allocation0] sm:$0x1] %vm34_vm5, %v33_v20  }
  0x7e   :  { %41 = vst.msk [vmem:[#allocation0] sm:$0x1] %vm40_vm6, %v39_v21  }
  0x80   :  { %v45_v22 = vpop.permute.xlu0 %44   ;;  %v51_v23 = vpop.permute.xlu1 %50  }
  0x81   :  { %47 = vst.msk [vmem:[#allocation0] sm:$0x1] %vm46_vm7, %v45_v22  }
  0x82   :  { %53 = vst.msk [vmem:[#allocation0] sm:$0x1] %vm52_vm8, %v51_v23  }
  0x84   :  { %v57_v24 = vpop.permute.xlu0 %56   ;;  %v63_v25 = vpop.permute.xlu1 %62  }
  0x85   :  { %59 = vst.msk [vmem:[#allocation0] sm:$0x1] %vm58_vm9, %v57_v24  }
  0x86   :  { %65 = vst.msk [vmem:[#allocation0] sm:$0x1] %vm64_vm10, %v63_v25  }
  0x88   :  { %v69_v26 = vpop.permute.xlu0 %68   ;;  %v75_v27 = vpop.permute.xlu1 %74  }
  0x89   :  { %71 = vst.msk [vmem:[#allocation0] sm:$0x1] %vm70_vm11, %v69_v26  }
  0x8a   :  { %77 = vst.msk [vmem:[#allocation0] sm:$0x1] %vm76_vm12, %v75_v27  }
  0x8c   :  { %v81_v28 = vpop.permute.xlu0 %80   ;;  %v87_v29 = vpop.permute.xlu1 %86  }
  0x8d   :  { %83 = vst.msk [vmem:[#allocation0] sm:$0x1] %vm82_vm13, %v81_v28  }
  0x8e   :  { %89 = vst.msk [vmem:[#allocation0] sm:$0x1] %vm88_vm14, %v87_v29  }
  0x90   :  { %v94_v30 = vpop.permute.xlu0 %93  }
  0x91   :  { %96 = vst.msk [vmem:[#allocation0] ss:$8 sm:$0x3] %vm95_vm15, %v94_v30  }
  0x98   :  { %v101_v31 = vld [vmem:[#allocation0] sm:$0x1]  ;;  %v106_v32 = vld [vmem:[#allocation0 + $0x8] sm:$0x1] }
  0x99   :  { %104 = vst [vmem:[%s222_s1] sm:$0x1] %v101_v31  ;;  %126 = vst [vmem:[%s222_s1 + $0x1] sm:$0x1] %v106_v32 }

// kernel: tile.33
= control target key start
LH: loop header
LB: loop body
LE: loop exit
PB: predicated region body
PF: predicated region fallthrough
CT: control target
= control target key end

     0   :  { %s28_s0 = inlined_call_operand.vmem [shape: f32[16], index: 0, kind: input, shape index: {}]   ;;  %s29_s1 = inlined_call_operand.vmem [shape: f32[10,16], index: 1, kind: output, shape index: {}]  }
   0x1   :  { %v4_v0 = vld [vmem:[%s28_s0] ss:$0 sm:$0xff] }
   0x2   :  { %5 = vst [vmem:[%s29_s1] sm:$0xff] %v4_v0  ;;  %8 = vst [vmem:[%s29_s1 + $0x8] sm:$0xff] %v4_v0 }

// kernel: tile.34
= control target key start
LH: loop header
LB: loop body
LE: loop exit
PB: predicated region body
PF: predicated region fallthrough
CT: control target
= control target key end

     0   :  { %s78_s10 = smov 112   ;;  %s79_s11 = smov 80   ;;  %vm4_vm0 = vcmask 130048   ;;  %vm10_vm1 = vcmask 1048448   ;;  %vm16_vm2 = vcmask 917248   ;;  %vm22_vm3 = vcmask 786048   ;;  %s125_s0 = inlined_call_operand.vmem [shape: f32[10,16], index: 0, kind: input, shape index: {}]   ;;  %s126_s1 = inlined_call_operand.vmem [shape: f32[1,160], index: 1, kind: output, shape index: {}]  }
   0x1   :  { %v63_v0 = vld [vmem:[%s125_s0 + $0x7] sm:$0x1]   ;;  %v65_v1 = vld [vmem:[%s125_s0 + $0x5] sm:$0x1]   ;;  %v64_v2 = vld [vmem:[%s125_s0 + $0x6] sm:$0x1]  }
   0x2   :  { %8 = vrot.lane.b32.xlu0 %v63_v0, %s78_s10  ;;  %20 = vrot.lane.b32.xlu1 %v65_v1, %s79_s11  ;;  %v66_v3 = vld [vmem:[%s125_s0 + $0x4] sm:$0x1]   ;;  %s2_s16 = smov 3  ;;  %s80_s17 = smov 96   ;;  %v67_v5 = vld [vmem:[%s125_s0 + $0x3] sm:$0x1]  }
   0x3   :  { %s81_s18 = smov 64   ;;  %v3_v4 = vld [vmem:[%s125_s0] ss:$8 sm:%s2_s16]   ;;  %v68_v6 = vld [vmem:[%s125_s0 + $0x2] sm:$0x1]   ;;  %s43_s25 = smov 3 }
   0x4   :  { %5 = vst.msk [vmem:[#allocation0] ss:$8 sm:$0x3] %vm4_vm0, %v3_v4   ;;  %s82_s26 = smov 48   ;;  %s83_s27 = smov 32   ;;  %vm28_vm4 = vcmask 654848  }
   0x5   :  { %v69_v7 = vld [vmem:[%s125_s0 + $0x1] ss:$8 sm:%s43_s25]   ;;  %s84_s0 = smov 16   ;;  %vm34_vm5 = vcmask 523648   ;;  %vm40_vm6 = vcmask 392448   ;;  %vm47_vm7 = vcmask 261248  }
   0x6   :  { %14 = vrot.lane.b32.xlu0 %v64_v2, %s80_s17  ;;  %26 = vrot.lane.b32.xlu1 %v66_v3, %s81_s18 }
   0xa   :  { %32 = vrot.lane.b32.xlu0 %v67_v5, %s82_s26  ;;  %38 = vrot.lane.b32.xlu1 %v68_v6, %s83_s27 }
   0xe   :  { %45 = vrot.lane.b32.xlu0 %v69_v7, %s84_s0 }
  0x74   :  { %v9_v8 = vpop.permute.xlu0 %8   ;;  %v21_v9 = vpop.permute.xlu1 %20  }
  0x75   :  { %11 = vst.msk [vmem:[#allocation0] sm:$0x1] %vm10_vm1, %v9_v8  }
  0x78   :  { %v15_v10 = vpop.permute.xlu0 %14   ;;  %v27_v11 = vpop.permute.xlu1 %26  }
  0x79   :  { %17 = vst.msk [vmem:[#allocation0] sm:$0x1] %vm16_vm2, %v15_v10  }
  0x7a   :  { %23 = vst.msk [vmem:[#allocation0] sm:$0x1] %vm22_vm3, %v21_v9  }
  0x7b   :  { %29 = vst.msk [vmem:[#allocation0] sm:$0x1] %vm28_vm4, %v27_v11  }
  0x7c   :  { %v33_v12 = vpop.permute.xlu0 %32   ;;  %v39_v13 = vpop.permute.xlu1 %38  }
  0x7d   :  { %35 = vst.msk [vmem:[#allocation0] sm:$0x1] %vm34_vm5, %v33_v12  }
  0x7e   :  { %41 = vst.msk [vmem:[#allocation0] sm:$0x1] %vm40_vm6, %v39_v13  }
  0x80   :  { %v46_v14 = vpop.permute.xlu0 %45  }
  0x81   :  { %48 = vst.msk [vmem:[#allocation0] ss:$8 sm:$0x3] %vm47_vm7, %v46_v14  }
  0x88   :  { %v53_v15 = vld [vmem:[#allocation0] sm:$0x1]  ;;  %v58_v16 = vld [vmem:[#allocation0 + $0x8] sm:$0x1] }
  0x89   :  { %56 = vst [vmem:[%s126_s1] sm:$0x1] %v53_v15  ;;  %70 = vst [vmem:[%s126_s1 + $0x1] sm:$0x1] %v58_v16 }

// kernel: cnn_forward.1
= control target key start
LH: loop header
LB: loop body
LE: loop exit
PB: predicated region body
PF: predicated region fallthrough
CT: control target
= control target key end

     0   :  { %vm170_vm0 = vcmask 1041408   ;;  %v5914_v3 = vmov 0.0   ;;  %vm95_vm1 = vcmask 1046528   ;;  %vm133_vm2 = vcmask 146432   ;;  %s5900_s1 = inlined_call_operand.vmem [shape: f32[3,18,144], index: 1, kind: input, shape index: {}]   ;;  %s5901_s0 = inlined_call_operand.vmem [shape: f32[1,146,18], index: 0, kind: input, shape index: {}]   ;;  %s5902_s2 = inlined_call_operand.vmem [shape: f32[1,144], index: 2, kind: input, shape index: {}]   ;;  %s5903_s3 = inlined_call_operand.vmem [shape: f32[1,144], index: 3, kind: input, shape index: {}]   ;;  %s5904_s7 = inlined_call_operand.vmem [shape: f32[82,143], index: 7, kind: input, shape index: {}]   ;;  %s5905_s4 = inlined_call_operand.vmem [shape: f32[3,136,160], index: 4, kind: input, shape index: {}]   ;;  %s5906_s5 = inlined_call_operand.vmem [shape: f32[1,160], index: 5, kind: input, shape index: {}]   ;;  %s5907_s6 = inlined_call_operand.vmem [shape: f32[1,160], index: 6, kind: input, shape index: {}]   ;;  %s5908_s9 = inlined_call_operand.vmem [shape: f32[576,16], index: 9, kind: input, shape index: {}]   ;;  %s5909_s8 = inlined_call_operand.vmem [shape: f32[4,8,79], index: 8, kind: input, shape index: {}]   ;;  %s5910_s10 = inlined_call_operand.vmem [shape: f32[1,16], index: 10, kind: input, shape index: {}]   ;;  %s5911_s11 = inlined_call_operand.vmem [shape: f32[16,10], index: 11, kind: input, shape index: {}]   ;;  %s5912_s12 = inlined_call_operand.vmem [shape: f32[1,10], index: 12, kind: input, shape index: {}]   ;;  %s5913_s13 = inlined_call_operand.vmem [shape: f32[8,10], index: 13, kind: output, shape index: {}]  }
   0x1   :  { %v3334_v0 = vld [vmem:[%s5900_s1 + $0x58] sm:$0x3]  ;;  %v3333_v1 = vld [vmem:[%s5900_s1 + $0x50] sm:$0x3]  ;;  %v3332_v2 = vld [vmem:[%s5900_s1 + $0x48] sm:$0xff]  ;;  %241 = vmatprep.mubr.f32.mxu0 %v5914_v3  ;;  %474 = vmatprep.mubr.f32.mxu1 %v5914_v3  ;;  %vm572_vm3 = vcmask 1045504  }
   0x2   :  { %3335 = vmatprep.subr.msk.mxu0 %vm170_vm0, %v3334_v0  ;;  %v3331_v4 = vld [vmem:[%s5900_s1 + $0x40] sm:$0xff]  ;;  %v3330_v5 = vld [vmem:[%s5900_s1 + $0x38] sm:$0xff]  ;;  %v3659_v7 = vld [vmem:[%s5901_s0 + $0x8] sm:$0xff]  ;;  %vm1392_vm4 = vcmask 121856   ;;  %vm1279_vm5 = vcmask 982016   ;;  %vm1706_vm6 = vcmask 64512  }
   0x3   :  { %3336 = vmatpush1.msk.msra.mxu0 %vm170_vm0, %v3333_v1  ;;  %v3654_v6 = vld [vmem:[%s5901_s0] sm:$0xff]  ;;  %v3664_v8 = vld [vmem:[%s5901_s0 + $0x10] sm:$0xff]  ;;  %v97_v11 = vrot.slane %v3659_v7, 1  ;;  %v68_v12 = vld [vmem:[%s5900_s1 + $0x28] sm:$0x3]  ;;  %vm2491_vm7 = vcmask 916480  }
   0x4   :  { %205 = vmatprep.subr.mxu0 %v3332_v2  ;;  %v3329_v9 = vld [vmem:[%s5900_s1 + $0x30] sm:$0xff]  ;;  %v96_v10 = vrot.slane %v3654_v6, 1  ;;  %v99_v13 = vrot.slane %v3664_v8, 1  ;;  %3544 = vmatprep.subr.msk.mxu1 %vm170_vm0, %v68_v12  ;;  %v67_v14 = vld [vmem:[%s5900_s1 + $0x20] sm:$0x3]  ;;  %v66_v15 = vld [vmem:[%s5900_s1 + $0x18] sm:$0xff] }
   0x5   :  { %206 = vmatpush1.msra.mxu0 %v3331_v4  ;;  %3547 = vmatpush1.msk.msra.mxu1 %vm170_vm0, %v67_v14  ;;  %v3687_v17 = vld [vmem:[%s5901_s0 + $0x18] sm:$0xff]  ;;  %v65_v18 = vld [vmem:[%s5900_s1 + $0x10] sm:$0xff]  ;;  %v64_v19 = vld [vmem:[%s5900_s1 + $0x8] sm:$0xff]  ;;  %vm2544_vm8 = vcmask 646144   ;;  %vm2643_vm9 = vcmask 130048   ;;  %vm3561_vm10 = vmmov 0  }
   0x6   :  { %207 = vmatprep.subr.mxu0 %v3330_v5  ;;  %v98_v16 = vsel %vm95_vm1, %v96_v10, %v97_v11  ;;  %3545 = vmatprep.subr.mxu1 %v66_v15  ;;  %v63_v20 = vld [vmem:[%s5900_s1] sm:$0xff]  ;;  %v100_v21 = vsel %vm95_vm1, %v97_v11, %v99_v13  ;;  %v101_v22 = vrot.slane %v3687_v17, 1  ;;  %v3714_v25 = vld [vmem:[%s5901_s0 + $0x28] sm:$0xff]  ;;  %v578_v27 = vrot.slane %v3687_v17, 2  ;;  %v3724_v29 = vld [vmem:[%s5901_s0 + $0x30] sm:$0xff] }
   0x7   :  { %208 = vmatpush1.msra.mxu0 %v3329_v9  ;;  %3548 = vmatpush1.msra.mxu1 %v65_v18  ;;  %v48_v23 = vld [vmem:[%s5901_s0 + $0x20] sm:$0xff]  ;;  %v105_v28 = vrot.slane %v3714_v25, 1  ;;  %v3729_v30 = vld [vmem:[%s5901_s0 + $0x38] sm:$0xff]  ;;  %v3380_v31 = vld [vmem:[%s5900_s1 + $0x88] sm:$0x3]  ;;  %v582_v37 = vrot.slane %v3714_v25, 2 }
   0x8   :  { %3337 = vmatmul.mubr.msk.f32.vlgmr.msra.gmra.mxu0 %vm133_vm2, %v98_v16  ;;  %3546 = vmatprep.subr.mxu1 %v64_v19  ;;  %v103_v24 = vrot.slane %v48_v23, 1  ;;  %v102_v26 = vsel %vm95_vm1, %v99_v13, %v101_v22  ;;  %v580_v32 = vrot.slane %v48_v23, 2  ;;  %v3740_v34 = vld [vmem:[%s5901_s0 + $0x40] sm:$0xff]  ;;  %v3745_v35 = vld [vmem:[%s5901_s0 + $0x48] sm:$0xff]  ;;  %v3750_v36 = vld [vmem:[%s5901_s0 + $0x50] sm:$0xff]  ;;  %v584_v38 = vrot.slane %v3724_v29, 2 }
   0x9   :  { %247 = vmatprep.mubr.f32.mxu0 %v5914_v3  ;;  %3549 = vmatpush1.msra.mxu1 %v63_v20  ;;  %v586_v39 = vrot.slane %v3729_v30, 2  ;;  %v3759_v40 = vld [vmem:[%s5901_s0 + $0x58] sm:$0xff]  ;;  %v588_v42 = vrot.slane %v3740_v34, 2  ;;  %v590_v43 = vrot.slane %v3745_v35, 2  ;;  %v592_v44 = vrot.slane %v3750_v36, 2  ;;  %v3772_v45 = vld [vmem:[%s5901_s0 + $0x60] sm:$0xff] }
   0xa   :  { %3355 = vmatprep.subr.msk.mxu0 %vm170_vm0, %v68_v12  ;;  %3360 = vmatmul.mubr.msk.f32.vlgmr.msra.gmra.mxu1 %vm133_vm2, %v3687_v17  ;;  %v104_v33 = vsel %vm95_vm1, %v101_v22, %v103_v24  ;;  %v3764_v41 = vsel %vm572_vm3, %v578_v27, %v580_v32  ;;  %v3776_v46 = vsel %vm572_vm3, %v580_v32, %v582_v37  ;;  %v594_v49 = vrot.slane %v3759_v40, 2  ;;  %v3790_v50 = vld [vmem:[%s5901_s0 + $0x68] sm:$0xff]  ;;  %v3795_v51 = vld [vmem:[%s5901_s0 + $0x70] sm:$0xff]  ;;  %v3800_v52 = vld [vmem:[%s5901_s0 + $0x78] sm:$0xff] }
   0xb   :  { %3356 = vmatpush1.msk.msra.mxu0 %vm170_vm0, %v67_v14  ;;  %480 = vmatprep.mubr.f32.mxu1 %v5914_v3  ;;  %v3779_v47 = vsel %vm572_vm3, %v582_v37, %v584_v38  ;;  %v3782_v48 = vsel %vm572_vm3, %v584_v38, %v586_v39  ;;  %v3803_v53 = vsel %vm572_vm3, %v586_v39, %v588_v42  ;;  %v596_v56 = vrot.slane %v3772_v45, 2  ;;  %v3817_v57 = vld [vmem:[%s5901_s0 + $0x80] sm:$0xff]  ;;  %v3851_v10 = vld [vmem:[%s5901_s0 + $0x88] sm:$0xff] }
   0xc   :  { %3338 = vmatmul.mubr.msk.f32.gmra.mxu0 %vm133_vm2, %v100_v21  ;;  %420 = vmatprep.subr.mxu0 %v66_v15  ;;  %v3806_v54 = vsel %vm572_vm3, %v588_v42, %v590_v43  ;;  %v3809_v55 = vsel %vm572_vm3, %v590_v43, %v592_v44  ;;  %v3820_v58 = vsel %vm572_vm3, %v592_v44, %v594_v49  ;;  %v598_v59 = vrot.slane %v3790_v50, 2  ;;  %v3867_v15 = vld [vmem:[%s5901_s0 + $0x90] sm:$0x3]  ;;  %v3379_v44 = vld [vmem:[%s5900_s1 + $0x80] sm:$0x3] }
   0xd   :  { %253 = vmatprep.mubr.f32.mxu0 %v5914_v3  ;;  %421 = vmatpush1.msra.mxu0 %v65_v18  ;;  %v600_v60 = vrot.slane %v3795_v51, 2  ;;  %v602_v61 = vrot.slane %v3800_v52, 2  ;;  %v106_v62 = vsel %vm95_vm1, %v103_v24, %v105_v28  ;;  %v107_v63 = vrot.slane %v3724_v29, 1 }
   0xe   :  { %3361 = vmatmul.mubr.msk.f32.gmra.mxu1 %vm133_vm2, %v48_v23  ;;  %422 = vmatprep.subr.mxu0 %v64_v19  ;;  %v3829_v0 = vsel %vm572_vm3, %v594_v49, %v596_v56  ;;  %v604_v1 = vrot.slane %v3817_v57, 2  ;;  %v3833_v2 = vsel %vm572_vm3, %v596_v56, %v598_v59  ;;  %v109_v12 = vrot.slane %v3729_v30, 1  ;;  %v3377_v49 = vld [vmem:[%s5900_s1 + $0x70] sm:$0xff] }
   0xf   :  { %486 = vmatprep.mubr.f32.mxu1 %v5914_v3  ;;  %423 = vmatpush1.msra.mxu0 %v63_v20  ;;  %v3836_v4 = vsel %vm572_vm3, %v598_v59, %v600_v60  ;;  %v3839_v5 = vsel %vm572_vm3, %v600_v60, %v602_v61  ;;  %v108_v11 = vsel %vm95_vm1, %v105_v28, %v107_v63  ;;  %v606_v13 = vrot.slane %v3851_v10, 2 }
  0x10   :  { %3339 = vmatmul.mubr.msk.f32.gmra.mxu0 %vm133_vm2, %v102_v26  ;;  %3381 = vmatprep.subr.msk.mxu0 %vm170_vm0, %v3380_v31  ;;  %v3844_v9 = vsel %vm572_vm3, %v602_v61, %v604_v1  ;;  %v110_v16 = vsel %vm95_vm1, %v107_v63, %v109_v12  ;;  %v111_v18 = vrot.slane %v3740_v34, 1  ;;  %v608_v19 = vrot.slane %v3867_v15, 2 }
  0x11   :  { %259 = vmatprep.mubr.f32.mxu0 %v5914_v3  ;;  %v3860_v14 = vsel %vm572_vm3, %v604_v1, %v606_v13  ;;  %v113_v22 = vrot.slane %v3745_v35, 1  ;;  %v115_v24 = vrot.slane %v3750_v36, 1  ;;  %v117_v26 = vrot.slane %v3759_v40, 1 }
  0x12   :  { %3362 = vmatmul.mubr.msk.f32.gmra.mxu1 %vm133_vm2, %v3714_v25  ;;  %v3876_v20 = vsel %vm572_vm3, %v606_v13, %v608_v19  ;;  %v112_v21 = vsel %vm95_vm1, %v109_v12, %v111_v18  ;;  %v121_v31 = vrot.slane %v3790_v50, 1  ;;  %v127_v37 = vrot.slane %v3817_v57, 1 }
  0x13   :  { %492 = vmatprep.mubr.f32.mxu1 %v5914_v3  ;;  %v114_v23 = vsel %vm95_vm1, %v111_v18, %v113_v22  ;;  %v116_v25 = vsel %vm95_vm1, %v113_v22, %v115_v24  ;;  %v118_v28 = vsel %vm95_vm1, %v115_v24, %v117_v26  ;;  %v129_v39 = vrot.slane %v3851_v10, 1 }
  0x14   :  { %3340 = vmatmul.mubr.msk.f32.gmra.mxu0 %vm133_vm2, %v104_v33  ;;  %v123_v33 = vrot.slane %v3795_v51, 1  ;;  %v131_v42 = vrot.slane %v3867_v15, 1  ;;  %v574_v56 = vrot.slane %v3659_v7, 2  ;;  %v576_v59 = vrot.slane %v3664_v8, 2 }
  0x15   :  { %265 = vmatprep.mubr.f32.mxu0 %v5914_v3  ;;  %vm3311_vm11 = vcmask 80896  }
  0x16   :  { %3363 = vmatmul.mubr.msk.f32.gmra.mxu1 %vm133_vm2, %v3724_v29  ;;  %v119_v29 = vrot.slane %v3772_v45, 1  ;;  %v132_v43 = vsel %vm95_vm1, %v129_v39, %v131_v42 }
  0x17   :  { %498 = vmatprep.mubr.f32.mxu1 %v5914_v3 }
  0x18   :  { %3341 = vmatmul.mubr.msk.f32.gmra.mxu0 %vm133_vm2, %v106_v62  ;;  %v122_v32 = vsel %vm95_vm1, %v119_v29, %v121_v31 }
  0x19   :  { %271 = vmatprep.mubr.f32.mxu0 %v5914_v3 }
  0x1a   :  { %3364 = vmatmul.mubr.msk.f32.gmra.mxu1 %vm133_vm2, %v3729_v30  ;;  %v120_v30 = vsel %vm95_vm1, %v117_v26, %v119_v29 }
  0x1b   :  { %504 = vmatprep.mubr.f32.mxu1 %v5914_v3 }
  0x1c   :  { %3342 = vmatmul.mubr.msk.f32.gmra.mxu0 %vm133_vm2, %v108_v11 }
  0x1d   :  { %277 = vmatprep.mubr.f32.mxu0 %v5914_v3 }
  0x1e   :  { %3365 = vmatmul.mubr.msk.f32.gmra.mxu1 %vm133_vm2, %v3740_v34  ;;  %v124_v34 = vsel %vm95_vm1, %v121_v31, %v123_v33 }
  0x1f   :  { %510 = vmatprep.mubr.f32.mxu1 %v5914_v3 }
  0x20   :  { %3343 = vmatmul.mubr.msk.f32.gmra.mxu0 %vm133_vm2, %v110_v16 }
  0x21   :  { %283 = vmatprep.mubr.f32.mxu0 %v5914_v3 }
  0x22   :  { %3366 = vmatmul.mubr.msk.f32.gmra.mxu1 %vm133_vm2, %v3745_v35  ;;  %v125_v35 = vrot.slane %v3800_v52, 1 }
  0x23   :  { %516 = vmatprep.mubr.f32.mxu1 %v5914_v3 }
  0x24   :  { %3344 = vmatmul.mubr.msk.f32.gmra.mxu0 %vm133_vm2, %v112_v21  ;;  %v128_v38 = vsel %vm95_vm1, %v125_v35, %v127_v37 }
  0x25   :  { %289 = vmatprep.mubr.f32.mxu0 %v5914_v3 }
  0x26   :  { %3367 = vmatmul.mubr.msk.f32.gmra.mxu1 %vm133_vm2, %v3750_v36  ;;  %v126_v36 = vsel %vm95_vm1, %v123_v33, %v125_v35 }
  0x27   :  { %522 = vmatprep.mubr.f32.mxu1 %v5914_v3 }
  0x28   :  { %3345 = vmatmul.mubr.msk.f32.gmra.mxu0 %vm133_vm2, %v114_v23 }
  0x29   :  { %295 = vmatprep.mubr.f32.mxu0 %v5914_v3 }
  0x2a   :  { %3368 = vmatmul.mubr.msk.f32.gmra.mxu1 %vm133_vm2, %v3759_v40  ;;  %v130_v40 = vsel %vm95_vm1, %v127_v37, %v129_v39 }
  0x2b   :  { %528 = vmatprep.mubr.f32.mxu1 %v5914_v3 }
  0x2c   :  { %3346 = vmatmul.mubr.msk.f32.gmra.mxu0 %vm133_vm2, %v116_v25 }
  0x2d   :  { %301 = vmatprep.mubr.f32.mxu0 %v5914_v3 }
  0x2e   :  { %3369 = vmatmul.mubr.msk.f32.gmra.mxu1 %vm133_vm2, %v3772_v45  ;;  %v3378_v45 = vld [vmem:[%s5900_s1 + $0x78] sm:$0xff] }
  0x2f   :  { %534 = vmatprep.mubr.f32.mxu1 %v5914_v3 }
  0x30   :  { %3347 = vmatmul.mubr.msk.f32.gmra.mxu0 %vm133_vm2, %v118_v28 }
  0x31   :  { %307 = vmatprep.mubr.f32.mxu0 %v5914_v3 }
  0x32   :  { %3370 = vmatmul.mubr.msk.f32.gmra.mxu1 %vm133_vm2, %v3790_v50  ;;  %v3376_v50 = vld [vmem:[%s5900_s1 + $0x68] sm:$0xff] }
  0x33   :  { %540 = vmatprep.mubr.f32.mxu1 %v5914_v3 }
  0x34   :  { %3348 = vmatmul.mubr.msk.f32.gmra.mxu0 %vm133_vm2, %v120_v30 }
  0x35   :  { %313 = vmatprep.mubr.f32.mxu0 %v5914_v3 }
  0x36   :  { %3371 = vmatmul.mubr.msk.f32.gmra.mxu1 %vm133_vm2, %v3795_v51  ;;  %v3375_v51 = vld [vmem:[%s5900_s1 + $0x60] sm:$0xff] }
  0x37   :  { %546 = vmatprep.mubr.f32.mxu1 %v5914_v3 }
  0x38   :  { %3349 = vmatmul.mubr.msk.f32.gmra.mxu0 %vm133_vm2, %v122_v32 }
  0x39   :  { %319 = vmatprep.mubr.f32.mxu0 %v5914_v3 }
  0x3a   :  { %3372 = vmatmul.mubr.msk.f32.gmra.mxu1 %vm133_vm2, %v3800_v52  ;;  %v573_v52 = vrot.slane %v3654_v6, 2 }
  0x3b   :  { %552 = vmatprep.mubr.f32.mxu1 %v5914_v3 }
  0x3c   :  { %3350 = vmatmul.mubr.msk.f32.gmra.mxu0 %vm133_vm2, %v124_v34 }
  0x3d   :  { %325 = vmatprep.mubr.f32.mxu0 %v5914_v3 }
  0x3e   :  { %3373 = vmatmul.mubr.msk.f32.gmra.mxu1 %vm133_vm2, %v3817_v57  ;;  %v575_v57 = vsel %vm572_vm3, %v573_v52, %v574_v56 }
  0x3f   :  { %558 = vmatprep.mubr.f32.mxu1 %v5914_v3 }
  0x40   :  { %3351 = vmatmul.mubr.msk.f32.gmra.mxu0 %vm133_vm2, %v126_v36 }
  0x41   :  { %331 = vmatprep.mubr.f32.mxu0 %v5914_v3 }
  0x42   :  { %3374 = vmatmul.mubr.msk.f32.gmra.mxu1 %vm133_vm2, %v3851_v10 }
  0x44   :  { %3352 = vmatmul.mubr.msk.f32.gmra.mxu0 %vm133_vm2, %v128_v38 }
  0x45   :  { %337 = vmatprep.mubr.f32.mxu0 %v5914_v3 }
  0x48   :  { %3353 = vmatmul.mubr.msk.f32.gmra.mxu0 %vm133_vm2, %v130_v40  ;;  %v863_v40 = vlaneseq }
  0x49   :  { %343 = vmatprep.mubr.f32.mxu0 %v5914_v3 }
  0x4c   :  { %3354 = vmatmul.mubr.msk.f32.gmra.mxu0 %vm133_vm2, %v132_v43 }
  0x4d   :  { %456 = vmatprep.mubr.f32.mxu0 %v5914_v3 }
  0x50   :  { %3357 = vmatmul.mubr.msk.f32.vlgmr.msra.gmra.mxu0 %vm133_vm2, %v3654_v6  ;;  %v577_v6 = vsel %vm572_vm3, %v574_v56, %v576_v59 }
  0x51   :  { %462 = vmatprep.mubr.f32.mxu0 %v5914_v3  ;;  %3382 = vmatpush1.msk.msra.mxu0 %vm170_vm0, %v3379_v44 }
  0x52   :  { %680 = vmatprep.subr.mxu0 %v3378_v45  ;;  %v864_v45 = vshrl.u32 %v863_v40, 7 }
  0x53   :  { %681 = vmatpush1.msra.mxu0 %v3377_v49 }
  0x54   :  { %3358 = vmatmul.mubr.msk.f32.gmra.mxu0 %vm133_vm2, %v3659_v7  ;;  %682 = vmatprep.subr.mxu0 %v3376_v50  ;;  %v579_v7 = vsel %vm572_vm3, %v576_v59, %v578_v27  ;;  %v4123_v52 = vsub.s32 0, %v864_v45 }
  0x55   :  { %468 = vmatprep.mubr.f32.mxu0 %v5914_v3  ;;  %683 = vmatpush1.msra.mxu0 %v3375_v51 }
  0x56   :  { %5926 = vst [vmem:[#allocation8_spill] sm:$0xff] %v4123_v52 }
  0x58   :  { %3359 = vmatmul.mubr.msk.f32.gmra.mxu0 %vm133_vm2, %v3664_v8 }
  0x59   :  { %716 = vmatprep.mubr.f32.mxu0 %v5914_v3 }
  0x5c   :  { %3383 = vmatmul.mubr.msk.f32.vlgmr.msra.gmra.mxu0 %vm133_vm2, %v575_v57  ;;  %v861_v57 = vld [vmem:[%s5902_s2] sm:$0x3]  ;;  %s3559_s2 = smov 120  }
  0x5d   :  { %722 = vmatprep.mubr.f32.mxu0 %v5914_v3 }
  0x60   :  { %3384 = vmatmul.mubr.msk.f32.gmra.mxu0 %vm133_vm2, %v577_v6  ;;  %v4130_v6 = vsub.s32 1, %v864_v45 }
  0x61   :  { %728 = vmatprep.mubr.f32.mxu0 %v5914_v3 }
  0x62   :  { %5927 = vst [vmem:[#allocation9_spill] sm:$0xff] %v4130_v6 }
  0x64   :  { %3385 = vmatmul.mubr.msk.f32.gmra.mxu0 %vm133_vm2, %v579_v7 }
  0x65   :  { %734 = vmatprep.mubr.f32.mxu0 %v5914_v3 }
  0x68   :  { %3386 = vmatmul.mubr.msk.f32.gmra.mxu0 %vm133_vm2, %v3764_v41 }
  0x69   :  { %740 = vmatprep.mubr.f32.mxu0 %v5914_v3 }
  0x6c   :  { %3387 = vmatmul.mubr.msk.f32.gmra.mxu0 %vm133_vm2, %v3776_v46 }
  0x6d   :  { %746 = vmatprep.mubr.f32.mxu0 %v5914_v3 }
  0x70   :  { %3388 = vmatmul.mubr.msk.f32.gmra.mxu0 %vm133_vm2, %v3779_v47 }
  0x71   :  { %752 = vmatprep.mubr.f32.mxu0 %v5914_v3 }
  0x74   :  { %3389 = vmatmul.mubr.msk.f32.gmra.mxu0 %vm133_vm2, %v3782_v48 }
  0x75   :  { %758 = vmatprep.mubr.f32.mxu0 %v5914_v3 }
  0x78   :  { %3390 = vmatmul.mubr.msk.f32.gmra.mxu0 %vm133_vm2, %v3803_v53 }
  0x79   :  { %764 = vmatprep.mubr.f32.mxu0 %v5914_v3 }
  0x7c   :  { %3391 = vmatmul.mubr.msk.f32.gmra.mxu0 %vm133_vm2, %v3806_v54 }
  0x7d   :  { %770 = vmatprep.mubr.f32.mxu0 %v5914_v3 }
  0x80   :  { %3392 = vmatmul.mubr.msk.f32.gmra.mxu0 %vm133_vm2, %v3809_v55 }
  0x81   :  { %776 = vmatprep.mubr.f32.mxu0 %v5914_v3 }
  0x84   :  { %3393 = vmatmul.mubr.msk.f32.gmra.mxu0 %vm133_vm2, %v3820_v58 }
  0x85   :  { %782 = vmatprep.mubr.f32.mxu0 %v5914_v3 }
  0x88   :  { %3394 = vmatmul.mubr.msk.f32.gmra.mxu0 %vm133_vm2, %v3829_v0 }
  0x89   :  { %788 = vmatprep.mubr.f32.mxu0 %v5914_v3 }
  0x8c   :  { %3395 = vmatmul.mubr.msk.f32.gmra.mxu0 %vm133_vm2, %v3833_v2 }
  0x8d   :  { %794 = vmatprep.mubr.f32.mxu0 %v5914_v3 }
  0x90   :  { %3396 = vmatmul.mubr.msk.f32.gmra.mxu0 %vm133_vm2, %v3836_v4 }
  0x91   :  { %800 = vmatprep.mubr.f32.mxu0 %v5914_v3 }
  0x94   :  { %3397 = vmatmul.mubr.msk.f32.gmra.mxu0 %vm133_vm2, %v3839_v5 }
  0x95   :  { %806 = vmatprep.mubr.f32.mxu0 %v5914_v3 }
  0x98   :  { %3398 = vmatmul.mubr.msk.f32.gmra.mxu0 %vm133_vm2, %v3844_v9 }
  0x99   :  { %812 = vmatprep.mubr.f32.mxu0 %v5914_v3 }
  0x9c   :  { %3399 = vmatmul.mubr.msk.f32.gmra.mxu0 %vm133_vm2, %v3860_v14 }
  0x9d   :  { %818 = vmatprep.mubr.f32.mxu0 %v5914_v3  ;;  %v4143_v3 = vrot.slane %v861_v57, %v4130_v6 }
  0xa0   :  { %3400 = vmatmul.mubr.msk.f32.gmra.mxu0 %vm133_vm2, %v3876_v20 }
  0xc8   :  { %v4033_v8 = vpop.f32.mrf.mxu0 }
  0xca   :  { %v4035_v17 = vpop.f32.mrf.mxu0  ;;  %v476_v46 = vpop.f32.mrf.mxu1 }
  0xcc   :  { %v4037_v27 = vpop.f32.mrf.mxu0  ;;  %v478_v53 = vpop.f32.mrf.mxu1 }
  0xce   :  { %v4039_v41 = vpop.f32.mrf.mxu0  ;;  %v482_v60 = vpop.f32.mrf.mxu1 }
  0xd0   :  { %v4041_v47 = vpop.f32.mrf.mxu0  ;;  %v4079_v19 = vpop.f32.mrf.mxu1 }
  0xd2   :  { %v4043_v48 = vpop.f32.mrf.mxu0  ;;  %v4085_v22 = vpop.f32.mrf.mxu1 }
  0xd4   :  { %v261_v54 = vpop.f32.mrf.mxu0  ;;  %v4091_v25 = vpop.f32.mrf.mxu1 }
  0xd5   :  { %v4045_v55 = vadd.f32 %v476_v46, %v261_v54  ;;  %v909_v54 = vld [vmem:[%s5903_s3] sm:$0x3] }
  0xd6   :  { %v263_v58 = vpop.f32.mrf.mxu0  ;;  %v4097_v29 = vpop.f32.mrf.mxu1  ;;  %v4146_v45 = vrot.slane %v909_v54, %v4123_v52 }
  0xd7   :  { %v4047_v61 = vadd.f32 %v478_v53, %v263_v58  ;;  %v4134_v53 = vrot.slane %v861_v57, %v4123_v52 }
  0xd8   :  { %v267_v62 = vpop.f32.mrf.mxu0  ;;  %v4103_v32 = vpop.f32.mrf.mxu1 }
  0xd9   :  { %v4049_v63 = vadd.f32 %v482_v60, %v267_v62 }
  0xda   :  { %v4051_v0 = vpop.f32.mrf.mxu0  ;;  %v4109_v35 = vpop.f32.mrf.mxu1 }
  0xdc   :  { %v4053_v1 = vpop.f32.mrf.mxu0  ;;  %v4115_v38 = vpop.f32.mrf.mxu1 }
  0xde   :  { %v4055_v2 = vpop.f32.mrf.mxu0  ;;  %v4119_v43 = vpop.f32.mrf.mxu1 }
  0xe0   :  { %v4057_v4 = vpop.f32.mrf.mxu0  ;;  %v4121_v50 = vpop.f32.mrf.mxu1 }
  0xe2   :  { %v4059_v5 = vpop.f32.mrf.mxu0  ;;  %v4128_v59 = vpop.f32.mrf.mxu1 }
  0xe4   :  { %v4061_v9 = vpop.f32.mrf.mxu0  ;;  %v4139_v60 = vpop.f32.mrf.mxu1 }
  0xe6   :  { %v4063_v10 = vpop.f32.mrf.mxu0 }
  0xe8   :  { %v4065_v11 = vpop.f32.mrf.mxu0 }
  0xea   :  { %v4067_v12 = vpop.f32.mrf.mxu0 }
  0xec   :  { %v4069_v13 = vpop.f32.mrf.mxu0 }
  0xee   :  { %v4071_v14 = vpop.f32.mrf.mxu0 }
  0xf0   :  { %v4073_v15 = vpop.f32.mrf.mxu0 }
  0xf2   :  { %v4075_v16 = vpop.f32.mrf.mxu0 }
  0xf4   :  { %v4077_v18 = vpop.f32.mrf.mxu0 }
  0xf6   :  { %v4081_v20 = vpop.f32.mrf.mxu0 }
  0xf8   :  { %v4083_v21 = vpop.f32.mrf.mxu0 }
  0xfa   :  { %v4087_v23 = vpop.f32.mrf.mxu0 }
  0xfc   :  { %v4089_v24 = vpop.f32.mrf.mxu0 }
  0xfe   :  { %v4093_v26 = vpop.f32.mrf.mxu0 }
 0x100   :  { %v4095_v28 = vpop.f32.mrf.mxu0 }
 0x102   :  { %v4099_v30 = vpop.f32.mrf.mxu0 }
 0x104   :  { %v4101_v31 = vpop.f32.mrf.mxu0 }
 0x105   :  { %5920 = vst [vmem:[#allocation2_spill] sm:$0xff] %v4101_v31 }
 0x106   :  { %v4105_v33 = vpop.f32.mrf.mxu0 }
 0x107   :  { %5921 = vst [vmem:[#allocation3_spill] sm:$0xff] %v4105_v33  ;;  %v4153_v33 = vpop.f32.mrf.mxu1 }
 0x108   :  { %v4107_v34 = vpop.f32.mrf.mxu0 }
 0x109   :  { %5922 = vst [vmem:[#allocation4_spill] sm:$0xff] %v4107_v34 }
 0x10a   :  { %v4111_v36 = vpop.f32.mrf.mxu0 }
 0x10b   :  { %5923 = vst [vmem:[#allocation5_spill] sm:$0xff] %v4111_v36  ;;  %v4151_v36 = vrot.slane %v909_v54, %v4130_v6 }
 0x10c   :  { %v4113_v37 = vpop.f32.mrf.mxu0 }
 0x10d   :  { %5924 = vst [vmem:[#allocation6_spill] sm:$0xff] %v4113_v37 }
 0x10e   :  { %v4117_v39 = vpop.f32.mrf.mxu0 }
 0x10f   :  { %5925 = vst [vmem:[#allocation7_spill] sm:$0xff] %v4117_v39 }
 0x110   :  { %v458_v42 = vpop.f32.mrf.mxu0 }
 0x111   :  { %v459_v46 = vadd.f32 %v458_v42, %v4033_v8 }
 0x112   :  { %v460_v44 = vpop.f32.mrf.mxu0 }
 0x113   :  { %v461_v62 = vadd.f32 %v460_v44, %v4035_v17 }
 0x114   :  { %v464_v49 = vpop.f32.mrf.mxu0 }
 0x115   :  { %v465_v42 = vadd.f32 %v464_v49, %v4037_v27 }
 0x116   :  { %v466_v51 = vpop.f32.mrf.mxu0 }
 0x117   :  { %v467_v17 = vadd.f32 %v466_v51, %v4039_v41 }
 0x118   :  { %v470_v56 = vpop.f32.mrf.mxu0 }
 0x119   :  { %v471_v49 = vadd.f32 %v470_v56, %v4041_v47 }
 0x11a   :  { %v472_v7 = vpop.f32.mrf.mxu0 }
 0x11c   :  { %v718_v58 = vpop.f32.mrf.mxu0 }
 0x11d   :  { %v825_v40 = vadd.f32 %v718_v58, %v459_v46 }
 0x11e   :  { %v720_v8 = vpop.f32.mrf.mxu0 }
 0x11f   :  { %v873_v39 = vmul.f32 %v4134_v53, %v825_v40  ;;  %v826_v37 = vadd.f32 %v720_v8, %v461_v62  ;;  %v4161_v40 = vpop.f32.mrf.mxu1  ;;  %v473_v8 = vadd.f32 %v472_v7, %v4043_v48 }
 0x120   :  { %v724_v34 = vpop.f32.mrf.mxu0 }
 0x121   :  { %v874_v44 = vmul.f32 %v4143_v3, %v826_v37  ;;  %v827_v57 = vadd.f32 %v724_v34, %v465_v42  ;;  %v921_v46 = vadd.f32 %v4146_v45, %v873_v39 }
 0x122   :  { %v726_v58 = vpop.f32.mrf.mxu0 }
 0x123   :  { %v875_v52 = vmul.f32 %v4134_v53, %v827_v57  ;;  %v828_v27 = vadd.f32 %v726_v58, %v467_v17  ;;  %v922_v62 = vadd.f32 %v4151_v36, %v874_v44  ;;  %v957_v34 = vmax.f32 %v921_v46, 0.0  ;;  %v4168_v44 = vpop.f32.mrf.mxu1 }
 0x124   :  { %v730_v54 = vpop.f32.mrf.mxu0 }
 0x125   :  { %v923_v41 = vadd.f32 %v4146_v45, %v875_v52  ;;  %v876_v37 = vmul.f32 %v4143_v3, %v828_v27  ;;  %v829_v51 = vadd.f32 %v730_v54, %v471_v49  ;;  %v958_v58 = vmax.f32 %v922_v62, 0.0 }
 0x126   :  { %v732_v39 = vpop.f32.mrf.mxu0  ;;  %v1029_v7 = vrot.slane %v957_v34, 1 }
 0x127   :  { %v959_v42 = vmax.f32 %v923_v41, 0.0  ;;  %v924_v57 = vadd.f32 %v4151_v36, %v876_v37  ;;  %v830_v17 = vadd.f32 %v732_v39, %v473_v8  ;;  %v877_v47 = vmul.f32 %v4134_v53, %v829_v51 }
 0x128   :  { %v736_v56 = vpop.f32.mrf.mxu0  ;;  %v485_v41 = vadd.f32 %v4079_v19, %v4051_v0  ;;  %v1032_v37 = vrot.slane %v958_v58, 1 }
 0x129   :  { %v1030_v6 = vrot.slane %v959_v42, 1  ;;  %v960_v31 = vmax.f32 %v924_v57, 0.0  ;;  %v878_v48 = vmul.f32 %v4143_v3, %v830_v17  ;;  %v831_v52 = vadd.f32 %v736_v56, %v4045_v55  ;;  %v4181_v57 = vpop.f32.mrf.mxu1 }
 0x12a   :  { %v925_v46 = vadd.f32 %v4146_v45, %v877_v47  ;;  %v738_v27 = vpop.f32.mrf.mxu0 }
 0x12b   :  { %v1033_v49 = vrot.slane %v960_v31, 1  ;;  %v4174_v54 = vadd.f32 %v4151_v36, %v878_v48  ;;  %v879_v62 = vmul.f32 %v4134_v53, %v831_v52  ;;  %v832_v8 = vadd.f32 %v738_v27, %v4047_v61 }
 0x12c   :  { %v961_v51 = vmax.f32 %v925_v46, 0.0  ;;  %v742_v39 = vpop.f32.mrf.mxu0  ;;  %v1031_v55 = vsel %vm95_vm1, %v1029_v7, %v1030_v6  ;;  %v489_v61 = vadd.f32 %v4085_v22, %v4053_v1 }
 0x12d   :  { %v962_v17 = vmax.f32 %v4174_v54, 0.0  ;;  %v4185_v47 = vadd.f32 %v4146_v45, %v879_v62  ;;  %v880_v56 = vmul.f32 %v4143_v3, %v832_v8  ;;  %v833_v48 = vadd.f32 %v742_v39, %v4049_v63 }
 0x12e   :  { %v1035_v0 = vrot.slane %v961_v51, 1  ;;  %v744_v19 = vpop.f32.mrf.mxu0  ;;  %v1034_v52 = vsel %vm95_vm1, %v1032_v37, %v1033_v49  ;;  %v4192_v46 = vmax.f32 %v957_v34, %v1031_v55  ;;  %v491_v63 = vadd.f32 %v4091_v25, %v4055_v2  ;;  %v4204_v37 = vpop.f32.mrf.mxu1 }
 0x12f   :  { %v1037_v7 = vrot.slane %v962_v17, 1  ;;  %v963_v27 = vmax.f32 %v4185_v47, 0.0  ;;  %v4196_v54 = vadd.f32 %v4151_v36, %v880_v56  ;;  %v881_v62 = vmul.f32 %v4134_v53, %v833_v48 }
 0x130   :  { %v834_v8 = vadd.f32 %v744_v19, %v485_v41  ;;  %v748_v39 = vpop.f32.mrf.mxu0  ;;  %v1036_v1 = vsel %vm95_vm1, %v1030_v6, %v1035_v0  ;;  %v4202_v22 = vmax.f32 %v958_v58, %v1034_v52  ;;  %v495_v48 = vadd.f32 %v4097_v29, %v4057_v4 }
 0x131   :  { %v1039_v34 = vrot.slane %v963_v27, 1  ;;  %v964_v55 = vmax.f32 %v4196_v54, 0.0  ;;  %v4208_v47 = vadd.f32 %v4146_v45, %v881_v62  ;;  %v835_v56 = vadd.f32 %v748_v39, %v489_v61 }
 0x132   :  { %v882_v2 = vmul.f32 %v4143_v3, %v834_v8  ;;  %v750_v25 = vpop.f32.mrf.mxu0  ;;  %v1038_v41 = vsel %vm95_vm1, %v1033_v49, %v1037_v7  ;;  %v4214_v6 = vmax.f32 %v959_v42, %v1036_v1  ;;  %v497_v62 = vadd.f32 %v4103_v32, %v4059_v5  ;;  %v4224_v8 = vpop.f32.mrf.mxu1 }
 0x133   :  { %v1041_v58 = vrot.slane %v964_v55, 1  ;;  %v965_v19 = vmax.f32 %v4208_v47, 0.0  ;;  %v883_v52 = vmul.f32 %v4134_v53, %v835_v56  ;;  %v836_v54 = vadd.f32 %v750_v25, %v491_v63 }
 0x134   :  { %v930_v61 = vadd.f32 %v4151_v36, %v882_v2  ;;  %v754_v39 = vpop.f32.mrf.mxu0  ;;  %v1040_v4 = vsel %vm95_vm1, %v1035_v0, %v1039_v34  ;;  %v4222_v29 = vmax.f32 %v960_v31, %v1038_v41  ;;  %v501_v63 = vadd.f32 %v4109_v35, %v4061_v9 }
 0x135   :  { %v1043_v42 = vrot.slane %v965_v19, 1  ;;  %v4227_v49 = vadd.f32 %v4146_v45, %v883_v52  ;;  %v884_v1 = vmul.f32 %v4143_v3, %v836_v54  ;;  %v837_v47 = vadd.f32 %v754_v39, %v495_v48 }
 0x136   :  { %v966_v5 = vmax.f32 %v930_v61, 0.0  ;;  %v756_v32 = vpop.f32.mrf.mxu0  ;;  %v1042_v56 = vsel %vm95_vm1, %v1037_v7, %v1041_v58  ;;  %v4233_v2 = vmax.f32 %v961_v51, %v1040_v4  ;;  %v503_v48 = vadd.f32 %v4115_v38, %v4063_v10  ;;  %v4245_v7 = vpop.f32.mrf.mxu1 }
 0x137   :  { %v967_v31 = vmax.f32 %v4227_v49, 0.0  ;;  %v4237_v0 = vadd.f32 %v4151_v36, %v884_v1  ;;  %v885_v25 = vmul.f32 %v4134_v53, %v837_v47  ;;  %v838_v41 = vadd.f32 %v756_v32, %v497_v62 }
 0x138   :  { %v1045_v52 = vrot.slane %v966_v5, 1  ;;  %v760_v54 = vpop.f32.mrf.mxu0  ;;  %v1044_v9 = vsel %vm95_vm1, %v1039_v34, %v1043_v42  ;;  %v4243_v35 = vmax.f32 %v962_v17, %v1042_v56  ;;  %v507_v62 = vadd.f32 %v4119_v43, %v4065_v11 }
 0x139   :  { %v1047_v51 = vrot.slane %v967_v31, 1  ;;  %v968_v61 = vmax.f32 %v4237_v0, 0.0  ;;  %v4249_v39 = vadd.f32 %v4146_v45, %v885_v25  ;;  %v886_v4 = vmul.f32 %v4143_v3, %v838_v41 }
 0x13a   :  { %v839_v10 = vadd.f32 %v760_v54, %v501_v63  ;;  %v762_v38 = vpop.f32.mrf.mxu0  ;;  %v1046_v49 = vsel %vm95_vm1, %v1041_v58, %v1045_v52  ;;  %v4255_v34 = vmax.f32 %v963_v27, %v1044_v9  ;;  %v509_v56 = vadd.f32 %v4121_v50, %v4067_v12  ;;  %v4267_v58 = vpop.f32.mrf.mxu1 }
 0x13b   :  { %v1049_v17 = vrot.slane %v968_v61, 1  ;;  %v969_v1 = vmax.f32 %v4249_v39, 0.0  ;;  %v4259_v47 = vadd.f32 %v4151_v36, %v886_v4  ;;  %v840_v32 = vadd.f32 %v762_v38, %v503_v48 }
 0x13c   :  { %v887_v0 = vmul.f32 %v4134_v53, %v839_v10  ;;  %v766_v25 = vpop.f32.mrf.mxu0  ;;  %v1048_v11 = vsel %vm95_vm1, %v1043_v42, %v1047_v51  ;;  %v4265_v43 = vmax.f32 %v964_v55, %v1046_v49  ;;  %v513_v48 = vadd.f32 %v4128_v59, %v4069_v13 }
 0x13d   :  { %v1051_v27 = vrot.slane %v969_v1, 1  ;;  %v970_v63 = vmax.f32 %v4259_v47, 0.0  ;;  %v888_v41 = vmul.f32 %v4143_v3, %v840_v32  ;;  %v841_v54 = vadd.f32 %v766_v25, %v507_v62  ;;  %v4286_v47 = vpop.f32.mrf.mxu1 }
 0x13e   :  { %v768_v9 = vpop.f32.mrf.mxu0  ;;  %v935_v12 = vadd.f32 %v4146_v45, %v887_v0  ;;  %v1050_v50 = vsel %vm95_vm1, %v1045_v52, %v1049_v17  ;;  %v4275_v39 = vmax.f32 %v965_v19, %v1048_v11  ;;  %v515_v62 = vadd.f32 %v4139_v60, %v4071_v14 }
 0x13f   :  { %v1053_v55 = vrot.slane %v970_v63, 1  ;;  %v889_v42 = vmul.f32 %v4134_v53, %v841_v54  ;;  %v842_v4 = vadd.f32 %v768_v9, %v509_v56  ;;  %v4279_v10 = vadd.f32 %v4151_v36, %v888_v41 }
 0x140   :  { %v772_v38 = vpop.f32.mrf.mxu0  ;;  %v971_v49 = vmax.f32 %v935_v12, 0.0  ;;  %v1052_v13 = vsel %vm95_vm1, %v1047_v51, %v1051_v27  ;;  %v4284_v59 = vmax.f32 %v966_v5, %v1050_v50  ;;  %v519_v0 = vadd.f32 %v4153_v33, %v4073_v15 }
 0x141   :  { %v4289_v19 = vadd.f32 %v4146_v45, %v889_v42  ;;  %v890_v52 = vmul.f32 %v4143_v3, %v842_v4  ;;  %v843_v32 = vadd.f32 %v772_v38, %v513_v48  ;;  %v972_v56 = vmax.f32 %v4279_v10, 0.0 }
 0x142   :  { %v774_v14 = vpop.f32.mrf.mxu0  ;;  %v1055_v60 = vrot.slane %v971_v49, 1  ;;  %v1054_v25 = vsel %vm95_vm1, %v1049_v17, %v1053_v55  ;;  %v4296_v51 = vmax.f32 %v967_v31, %v1052_v13  ;;  %v521_v48 = vadd.f32 %v4161_v40, %v4075_v16  ;;  %v4308_v17 = vpop.f32.mrf.mxu1 }
 0x143   :  { %v973_v5 = vmax.f32 %v4289_v19, 0.0  ;;  %v4300_v11 = vadd.f32 %v4151_v36, %v890_v52  ;;  %v891_v41 = vmul.f32 %v4134_v53, %v843_v32  ;;  %v844_v54 = vadd.f32 %v774_v14, %v515_v62 }
 0x144   :  { %v778_v9 = vpop.f32.mrf.mxu0  ;;  %v1057_v12 = vrot.slane %v972_v56, 1  ;;  %v1056_v15 = vsel %vm95_vm1, %v1051_v27, %v1055_v60  ;;  %v4306_v33 = vmax.f32 %v968_v61, %v1054_v25  ;;  %v525_v10 = vadd.f32 %v4168_v44, %v4077_v18 }
 0x145   :  { %v974_v31 = vmax.f32 %v4300_v11, 0.0  ;;  %v4312_v50 = vadd.f32 %v4146_v45, %v891_v41  ;;  %v892_v42 = vmul.f32 %v4143_v3, %v844_v54  ;;  %v845_v4 = vadd.f32 %v778_v9, %v519_v0 }
 0x146   :  { %v780_v16 = vpop.f32.mrf.mxu0  ;;  %v1059_v40 = vrot.slane %v973_v5, 1  ;;  %v1058_v62 = vsel %vm95_vm1, %v1053_v55, %v1057_v12  ;;  %v4318_v27 = vmax.f32 %v969_v1, %v1056_v15  ;;  %v527_v52 = vadd.f32 %v4181_v57, %v4081_v20  ;;  %v4330_v55 = vpop.f32.mrf.mxu1 }
 0x147   :  { %v975_v61 = vmax.f32 %v4312_v50, 0.0  ;;  %v4322_v38 = vadd.f32 %v4151_v36, %v892_v42  ;;  %v893_v13 = vmul.f32 %v4134_v53, %v845_v4  ;;  %v846_v19 = vadd.f32 %v780_v16, %v521_v48 }
 0x148   :  { %v784_v32 = vpop.f32.mrf.mxu0  ;;  %v1060_v18 = vsel %vm95_vm1, %v1055_v60, %v1059_v40  ;;  %v1061_v44 = vrot.slane %v974_v31, 1  ;;  %v4328_v0 = vmax.f32 %v970_v63, %v1058_v62  ;;  %v531_v41 = vadd.f32 %v4204_v37, %v4083_v21 }
 0x149   :  { %v1063_v1 = vrot.slane %v975_v61, 1  ;;  %v976_v14 = vmax.f32 %v4322_v38, 0.0  ;;  %v4334_v25 = vadd.f32 %v4146_v45, %v893_v13  ;;  %v894_v11 = vmul.f32 %v4143_v3, %v846_v19 }
 0x14a   :  { %v847_v20 = vadd.f32 %v784_v32, %v525_v10  ;;  %v4339_v57 = vmax.f32 %v971_v49, %v1060_v18  ;;  %v786_v60 = vpop.f32.mrf.mxu0  ;;  %v1062_v63 = vsel %vm95_vm1, %v1057_v12, %v1061_v44  ;;  %v533_v50 = vadd.f32 %v4224_v8, %v4087_v23  ;;  %v550_v12 = vpop.f32.mrf.mxu1 }
 0x14b   :  { %v1065_v54 = vrot.slane %v976_v14, 1  ;;  %v977_v48 = vmax.f32 %v4334_v25, 0.0  ;;  %v4344_v9 = vadd.f32 %v4151_v36, %v894_v11  ;;  %v848_v15 = vadd.f32 %v786_v60, %v527_v52 }
 0x14c   :  { %v895_v42 = vmul.f32 %v4134_v53, %v847_v20  ;;  %1235 = vrot.lane.b32.xlu0 %v4339_v57, %s3559_s2  ;;  %v4351_v21 = vmax.f32 %v972_v56, %v1062_v63  ;;  %v790_v37 = vpop.f32.mrf.mxu0  ;;  %v1064_v49 = vsel %vm95_vm1, %v1059_v40, %v1063_v1  ;;  %v537_v23 = vadd.f32 %v4245_v7, %v4089_v24  ;;  %v554_v25 = vpop.f32.mrf.mxu1 }
 0x14d   :  { %v1067_v4 = vrot.slane %v977_v48, 1  ;;  %v978_v10 = vmax.f32 %v4344_v9, 0.0  ;;  %v896_v16 = vmul.f32 %v4143_v3, %v848_v15  ;;  %v849_v62 = vadd.f32 %v790_v37, %v531_v41 }
 0x14e   :  { %v4359_v8 = vadd.f32 %v4146_v45, %v895_v42  ;;  %1237 = vrot.lane.b32.xlu1 %v4351_v21, %s3559_s2  ;;  %v4363_v56 = vmax.f32 %v973_v5, %v1064_v49  ;;  %v792_v38 = vpop.f32.mrf.mxu0  ;;  %v1066_v40 = vsel %vm95_vm1, %v1061_v44, %v1065_v54  ;;  %v539_v24 = vadd.f32 %v4267_v58, %v4093_v26  ;;  %v556_v49 = vpop.f32.mrf.mxu1 }
 0x14f   :  { %v1069_v13 = vrot.slane %v978_v10, 1  ;;  %v4367_v19 = vadd.f32 %v4151_v36, %v896_v16  ;;  %v897_v52 = vmul.f32 %v4134_v53, %v849_v62  ;;  %v850_v32 = vadd.f32 %v792_v38, %v533_v50  ;;  %v5928_v38 = vld [vmem:[#allocation2_spill] sm:$0xff] }
 0x150   :  { %v979_v7 = vmax.f32 %v4359_v8, 0.0  ;;  %1239 = vrot.lane.b32.xlu0 %v4363_v56, %s3559_s2  ;;  %v4375_v5 = vmax.f32 %v974_v31, %v1066_v40  ;;  %v796_v18 = vpop.f32.mrf.mxu0  ;;  %v1068_v44 = vsel %vm95_vm1, %v1063_v1, %v1067_v4  ;;  %v543_v26 = vadd.f32 %v4286_v47, %v4095_v28 }
 0x151   :  { %v980_v11 = vmax.f32 %v4367_v19, 0.0  ;;  %v4380_v41 = vadd.f32 %v4146_v45, %v897_v52  ;;  %v898_v20 = vmul.f32 %v4143_v3, %v850_v32  ;;  %v851_v60 = vadd.f32 %v796_v18, %v537_v23  ;;  %v5929_v18 = vld [vmem:[#allocation3_spill] sm:$0xff] }
 0x152   :  { %v1071_v58 = vrot.slane %v979_v7, 1  ;;  %1241 = vrot.lane.b32.xlu1 %v4375_v5, %s3559_s2  ;;  %v4387_v31 = vmax.f32 %v975_v61, %v1068_v44  ;;  %v798_v63 = vpop.f32.mrf.mxu0  ;;  %v1070_v1 = vsel %vm95_vm1, %v1065_v54, %v1069_v13  ;;  %v545_v28 = vadd.f32 %v4308_v17, %v4099_v30 }
 0x153   :  { %v1073_v9 = vrot.slane %v980_v11, 1  ;;  %v981_v15 = vmax.f32 %v4380_v41, 0.0  ;;  %v4392_v50 = vadd.f32 %v4151_v36, %v898_v20  ;;  %v899_v42 = vmul.f32 %v4134_v53, %v851_v60 }
 0x154   :  { %1243 = vrot.lane.b32.xlu0 %v4387_v31, %s3559_s2  ;;  %v852_v47 = vadd.f32 %v798_v63, %v539_v24  ;;  %v4399_v61 = vmax.f32 %v976_v14, %v1070_v1  ;;  %v802_v37 = vpop.f32.mrf.mxu0  ;;  %v1072_v54 = vsel %vm95_vm1, %v1067_v4, %v1071_v58  ;;  %v549_v30 = vadd.f32 %v4330_v55, %v5928_v38 }
 0x155   :  { %v1075_v16 = vrot.slane %v981_v15, 1  ;;  %v982_v62 = vmax.f32 %v4392_v50, 0.0  ;;  %v4404_v23 = vadd.f32 %v4146_v45, %v899_v42  ;;  %v853_v8 = vadd.f32 %v802_v37, %v543_v26  ;;  %v5930_v50 = vld [vmem:[#allocation4_spill] sm:$0xff] }
 0x156   :  { %v900_v17 = vmul.f32 %v4143_v3, %v852_v47  ;;  %1245 = vrot.lane.b32.xlu1 %v4399_v61, %s3559_s2  ;;  %v4411_v14 = vmax.f32 %v977_v48, %v1072_v54  ;;  %v804_v40 = vpop.f32.mrf.mxu0  ;;  %v1074_v4 = vsel %vm95_vm1, %v1069_v13, %v1073_v9  ;;  %v551_v44 = vadd.f32 %v550_v12, %v5929_v18  ;;  %v560_v13 = vpop.f32.mrf.mxu1  ;;  %v5932_v18 = vld [vmem:[#allocation6_spill] sm:$0xff] }
 0x157   :  { %v1077_v19 = vrot.slane %v982_v62, 1  ;;  %v983_v52 = vmax.f32 %v4404_v23, 0.0  ;;  %v901_v32 = vmul.f32 %v4134_v53, %v853_v8  ;;  %v854_v24 = vadd.f32 %v804_v40, %v545_v28  ;;  %v5931_v8 = vld [vmem:[#allocation5_spill] sm:$0xff] }
 0x158   :  { %v4418_v55 = vadd.f32 %v4151_v36, %v900_v17  ;;  %1247 = vrot.lane.b32.xlu0 %v4411_v14, %s3559_s2  ;;  %v4422_v41 = vmax.f32 %v978_v10, %v1074_v4  ;;  %v808_v48 = vpop.f32.mrf.mxu0  ;;  %v1076_v20 = vsel %vm95_vm1, %v1071_v58, %v1075_v16  ;;  %v555_v12 = vadd.f32 %v554_v25, %v5930_v50  ;;  %v562_v40 = vpop.f32.mrf.mxu1 }
 0x159   :  { %v1079_v60 = vrot.slane %v983_v52, 1  ;;  %v949_v26 = vadd.f32 %v4146_v45, %v901_v32  ;;  %v902_v63 = vmul.f32 %v4143_v3, %v854_v24  ;;  %v855_v1 = vadd.f32 %v808_v48, %v549_v30 }
 0x15a   :  { %v984_v42 = vmax.f32 %v4418_v55, 0.0  ;;  %1249 = vrot.lane.b32.xlu1 %v4422_v41, %s3559_s2  ;;  %v4431_v28 = vmax.f32 %v979_v7, %v1076_v20  ;;  %v810_v10 = vpop.f32.mrf.mxu0  ;;  %v1078_v47 = vsel %vm95_vm1, %v1073_v9, %v1077_v19  ;;  %v557_v38 = vadd.f32 %v556_v49, %v5931_v8 }
 0x15b   :  { %v985_v58 = vmax.f32 %v949_v26, 0.0  ;;  %v950_v37 = vadd.f32 %v4151_v36, %v902_v63  ;;  %v903_v54 = vmul.f32 %v4134_v53, %v855_v1  ;;  %v856_v23 = vadd.f32 %v810_v10, %v551_v44  ;;  %v5933_v1 = vld [vmem:[#allocation7_spill] sm:$0xff] }
 0x15c   :  { %v1081_v30 = vrot.slane %v984_v42, 1  ;;  %1251 = vrot.lane.b32.xlu0 %v4431_v28, %s3559_s2  ;;  %v4439_v25 = vmax.f32 %v980_v11, %v1078_v47  ;;  %v814_v17 = vpop.f32.mrf.mxu0  ;;  %v1080_v7 = vsel %vm95_vm1, %v1075_v16, %v1079_v60  ;;  %v561_v44 = vadd.f32 %v560_v13, %v5932_v18 }
 0x15d   :  { %v1083_v4 = vrot.slane %v985_v58, 1  ;;  %v986_v9 = vmax.f32 %v950_v37, 0.0  ;;  %v951_v32 = vadd.f32 %v4146_v45, %v903_v54  ;;  %v904_v24 = vmul.f32 %v4143_v3, %v856_v23 }
 0x15e   :  { %1253 = vrot.lane.b32.xlu1 %v4439_v25, %s3559_s2  ;;  %v857_v49 = vadd.f32 %v814_v17, %v555_v12  ;;  %v4447_v55 = vmax.f32 %v981_v15, %v1080_v7  ;;  %v816_v11 = vpop.f32.mrf.mxu0  ;;  %v1082_v48 = vsel %vm95_vm1, %v1077_v19, %v1081_v30  ;;  %v563_v50 = vadd.f32 %v562_v40, %v5933_v1 }
 0x15f   :  { %v1085_v20 = vrot.slane %v986_v9, 1  ;;  %v987_v16 = vmax.f32 %v951_v32, 0.0  ;;  %v952_v26 = vadd.f32 %v4151_v36, %v904_v24  ;;  %v858_v63 = vadd.f32 %v816_v11, %v557_v38 }
 0x160   :  { %v905_v10 = vmul.f32 %v4134_v53, %v857_v49  ;;  %1255 = vrot.lane.b32.xlu0 %v4447_v55, %s3559_s2  ;;  %v4455_v13 = vmax.f32 %v982_v62, %v1082_v48  ;;  %v820_v12 = vpop.f32.mrf.mxu0  ;;  %v1084_v15 = vsel %vm95_vm1, %v1079_v60, %v1083_v4 }
 0x161   :  { %v1087_v47 = vrot.slane %v987_v16, 1  ;;  %v988_v37 = vmax.f32 %v952_v26, 0.0  ;;  %v906_v19 = vmul.f32 %v4143_v3, %v858_v63  ;;  %v859_v54 = vadd.f32 %v820_v12, %v561_v44  ;;  %v1371_v12 = vld [vmem:[%s5904_s7 + $0x8] sm:$0xff] }
 0x162   :  { %v953_v23 = vadd.f32 %v4146_v45, %v905_v10  ;;  %1257 = vrot.lane.b32.xlu1 %v4455_v13, %s3559_s2  ;;  %v4462_v8 = vmax.f32 %v983_v52, %v1084_v15  ;;  %v822_v38 = vpop.f32.mrf.mxu0  ;;  %v1086_v17 = vsel %vm95_vm1, %v1081_v30, %v1085_v20  ;;  %3403 = vmatprep.mubr.msk.f32.mxu1 %vm1392_vm4, %v1371_v12  ;;  %v1572_v12 = vld [vmem:[%s5905_s4 + $0x48] sm:$0xff] }
 0x163   :  { %v1089_v62 = vrot.slane %v988_v37, 1  ;;  %v954_v7 = vadd.f32 %v4151_v36, %v906_v19  ;;  %v907_v60 = vmul.f32 %v4134_v53, %v859_v54  ;;  %v860_v40 = vadd.f32 %v822_v38, %v563_v50  ;;  %v1593_v19 = vld [vmem:[%s5905_s4 + $0xf0] sm:$0xff]  ;;  %v1592_v54 = vld [vmem:[%s5905_s4 + $0xe8] sm:$0xff]  ;;  %v1590_v38 = vld [vmem:[%s5905_s4 + $0xd8] sm:$0xff] }
 0x164   :  { %v989_v32 = vmax.f32 %v953_v23, 0.0  ;;  %1259 = vrot.lane.b32.xlu0 %v4462_v8, %s3559_s2  ;;  %v4469_v24 = vmax.f32 %v984_v42, %v1086_v17  ;;  %v1088_v18 = vsel %vm95_vm1, %v1083_v4, %v1087_v47  ;;  %v1591_v23 = vld [vmem:[%s5905_s4 + $0xe0] sm:$0xff]  ;;  %v1589_v17 = vld [vmem:[%s5905_s4 + $0xd0] sm:$0xff] }
 0x165   :  { %v990_v44 = vmax.f32 %v954_v7, 0.0  ;;  %v955_v52 = vadd.f32 %v4146_v45, %v907_v60  ;;  %v908_v49 = vmul.f32 %v4143_v3, %v860_v40  ;;  %v4474_v30 = vmax.f32 %v985_v58, %v1088_v18  ;;  %v1587_v7 = vld [vmem:[%s5905_s4 + $0xc0] sm:$0xff]  ;;  %v1586_v60 = vld [vmem:[%s5905_s4 + $0xb8] sm:$0xff]  ;;  %v1585_v40 = vld [vmem:[%s5905_s4 + $0xb0] sm:$0xff] }
 0x166   :  { %v1091_v11 = vrot.slane %v989_v32, 1  ;;  %1261 = vrot.lane.b32.xlu1 %v4469_v24, %s3559_s2  ;;  %v1090_v53 = vsel %vm95_vm1, %v1085_v20, %v1089_v62  ;;  %v1583_v18 = vld [vmem:[%s5905_s4 + $0xa0] sm:$0xff] }
 0x167   :  { %v1093_v48 = vrot.slane %v990_v44, 1  ;;  %v991_v26 = vmax.f32 %v955_v52, 0.0  ;;  %v956_v42 = vadd.f32 %v4151_v36, %v908_v49  ;;  %v4480_v63 = vmax.f32 %v986_v9, %v1090_v53  ;;  %v1581_v49 = vld [vmem:[%s5905_s4 + $0x90] sm:$0xff] }
 0x168   :  { %v1092_v4 = vsel %vm95_vm1, %v1087_v47, %v1091_v11 }
 0x169   :  { %v992_v1 = vmax.f32 %v956_v42, 0.0  ;;  %v4483_v45 = vmax.f32 %v987_v16, %v1092_v4  ;;  %v1094_v3 = vsel %vm95_vm1, %v1089_v62, %v1093_v48  ;;  %v1095_v58 = vrot.slane %v991_v26, 1  ;;  %v1588_v62 = vld [vmem:[%s5905_s4 + $0xc8] sm:$0xff]  ;;  %v1577_v4 = vld [vmem:[%s5905_s4 + $0x70] sm:$0xff] }
 0x16a   :  { %1263 = vrot.lane.b32.xlu1 %v4474_v30, %s3559_s2  ;;  %v4488_v50 = vmax.f32 %v988_v37, %v1094_v3  ;;  %v1594_v37 = vld [vmem:[%s5905_s4 + $0xf8] sm:$0xff] }
 0x16b   :  { %1267 = vrot.lane.b32.xlu0 %v4483_v45, %s3559_s2  ;;  %v1097_v20 = vrot.slane %v992_v1, 1  ;;  %v1096_v36 = vsel %vm95_vm1, %v1091_v11, %v1095_v58  ;;  %v4536_v47 = vmax.f32 %v991_v26, %v1095_v58  ;;  %1872 = vmatprep.subr.mxu0 %v1594_v37  ;;  %v1580_v11 = vld [vmem:[%s5905_s4 + $0x88] sm:$0xff]  ;;  %v1578_v26 = vld [vmem:[%s5905_s4 + $0x78] sm:$0xff]  ;;  %v1575_v58 = vld [vmem:[%s5905_s4 + $0x60] sm:$0xff] }
 0x16c   :  { %v4493_v9 = vmax.f32 %v989_v32, %v1096_v36  ;;  %1873 = vmatpush1.msra.mxu0 %v1593_v19  ;;  %v1584_v32 = vld [vmem:[%s5905_s4 + $0xa8] sm:$0xff]  ;;  %v1571_v19 = vld [vmem:[%s5905_s4 + $0x40] sm:$0xff] }
 0x16d   :  { %v1098_v10 = vsel %vm95_vm1, %v1093_v48, %v1097_v20  ;;  %v4534_v15 = vmax.f32 %v992_v1, %v1097_v20  ;;  %1874 = vmatprep.subr.mxu0 %v1592_v54  ;;  %v1579_v48 = vld [vmem:[%s5905_s4 + $0x80] sm:$0xff]  ;;  %v1576_v1 = vld [vmem:[%s5905_s4 + $0x68] sm:$0xff]  ;;  %v1574_v20 = vld [vmem:[%s5905_s4 + $0x58] sm:$0xff] }
 0x16e   :  { %1265 = vrot.lane.b32.xlu1 %v4480_v63, %s3559_s2  ;;  %v4498_v16 = vmax.f32 %v990_v44, %v1098_v10  ;;  %1875 = vmatpush1.msra.mxu0 %v1591_v23  ;;  %v1582_v44 = vld [vmem:[%s5905_s4 + $0x98] sm:$0xff]  ;;  %v1573_v10 = vld [vmem:[%s5905_s4 + $0x50] sm:$0xff] }
 0x16f   :  { %1269 = vrot.lane.b32.xlu0 %v4488_v50, %s3559_s2  ;;  %1876 = vmatprep.subr.mxu0 %v1590_v38  ;;  %v1570_v54 = vld [vmem:[%s5905_s4 + $0x38] sm:$0xff]  ;;  %v1569_v38 = vld [vmem:[%s5905_s4 + $0x30] sm:$0xff] }
 0x170   :  { %1877 = vmatpush1.msra.mxu0 %v1589_v17  ;;  %v1568_v17 = vld [vmem:[%s5905_s4 + $0x28] sm:$0xff] }
 0x171   :  { %1878 = vmatprep.subr.mxu0 %v1588_v62 }
 0x172   :  { %1233 = vrot.lane.b32.xlu1 %v4328_v0, %s3559_s2  ;;  %1879 = vmatpush1.msra.mxu0 %v1587_v7  ;;  %v1567_v7 = vld [vmem:[%s5905_s4 + $0x20] sm:$0xff] }
 0x173   :  { %1231 = vrot.lane.b32.xlu0 %v4318_v27, %s3559_s2  ;;  %1880 = vmatprep.subr.mxu0 %v1586_v60  ;;  %v1566_v60 = vld [vmem:[%s5905_s4 + $0x18] sm:$0xff] }
 0x174   :  { %1881 = vmatpush1.msra.mxu0 %v1585_v40 }
 0x175   :  { %1882 = vmatprep.subr.mxu0 %v1584_v32  ;;  %v1565_v32 = vld [vmem:[%s5905_s4 + $0x10] sm:$0xff] }
 0x176   :  { %1229 = vrot.lane.b32.xlu1 %v4306_v33, %s3559_s2  ;;  %1883 = vmatpush1.msra.mxu0 %v1583_v18 }
 0x177   :  { %1227 = vrot.lane.b32.xlu0 %v4296_v51, %s3559_s2  ;;  %1884 = vmatprep.subr.mxu0 %v1582_v44 }
 0x178   :  { %1885 = vmatpush1.msra.mxu0 %v1581_v49 }
 0x179   :  { %1886 = vmatprep.subr.mxu0 %v1580_v11 }
 0x17a   :  { %1225 = vrot.lane.b32.xlu1 %v4284_v59, %s3559_s2  ;;  %1887 = vmatpush1.msra.mxu0 %v1579_v48 }
 0x17b   :  { %1223 = vrot.lane.b32.xlu0 %v4275_v39, %s3559_s2  ;;  %1888 = vmatprep.subr.mxu0 %v1578_v26 }
 0x17c   :  { %1889 = vmatpush1.msra.mxu0 %v1577_v4 }
 0x17d   :  { %1890 = vmatprep.subr.mxu0 %v1576_v1 }
 0x17e   :  { %1221 = vrot.lane.b32.xlu1 %v4265_v43, %s3559_s2  ;;  %1891 = vmatpush1.msra.mxu0 %v1575_v58 }
 0x17f   :  { %1219 = vrot.lane.b32.xlu0 %v4255_v34, %s3559_s2  ;;  %1892 = vmatprep.subr.mxu0 %v1574_v20 }
 0x180   :  { %1893 = vmatpush1.msra.mxu0 %v1573_v10 }
 0x181   :  { %1894 = vmatprep.subr.mxu0 %v1572_v12 }
 0x182   :  { %1217 = vrot.lane.b32.xlu1 %v4243_v35, %s3559_s2  ;;  %1895 = vmatpush1.msra.mxu0 %v1571_v19 }
 0x183   :  { %1215 = vrot.lane.b32.xlu0 %v4233_v2, %s3559_s2  ;;  %1896 = vmatprep.subr.mxu0 %v1570_v54 }
 0x184   :  { %1897 = vmatpush1.msra.mxu0 %v1569_v38 }
 0x185   :  { %1898 = vmatprep.subr.mxu0 %v1568_v17 }
 0x186   :  { %1213 = vrot.lane.b32.xlu1 %v4222_v29, %s3559_s2  ;;  %1899 = vmatpush1.msra.mxu0 %v1567_v7 }
 0x187   :  { %1211 = vrot.lane.b32.xlu0 %v4214_v6, %s3559_s2  ;;  %1900 = vmatprep.subr.mxu0 %v1566_v60 }
 0x188   :  { %1901 = vmatpush1.msra.mxu0 %v1565_v32 }
 0x18a   :  { %1209 = vrot.lane.b32.xlu1 %v4202_v22, %s3559_s2 }
 0x18b   :  { %1207 = vrot.lane.b32.xlu0 %v4192_v46, %s3559_s2 }
 0x18e   :  { %1277 = vrot.lane.b32.xlu1 %v4534_v15, %s3559_s2 }
 0x18f   :  { %1275 = vrot.lane.b32.xlu0 %v4536_v47, %s3559_s2 }
 0x192   :  { %1273 = vrot.lane.b32.xlu1 %v4498_v16, %s3559_s2 }
 0x193   :  { %1271 = vrot.lane.b32.xlu0 %v4493_v9, %s3559_s2 }
 0x1be   :  { %v4585_v52 = vpop.permute.xlu0 %1235 }
 0x1c0   :  { %v4593_v53 = vpop.permute.xlu1 %1237 }
 0x1c2   :  { %v4601_v42 = vpop.permute.xlu0 %1239 }
 0x1c4   :  { %v4609_v3 = vpop.permute.xlu1 %1241 }
 0x1c6   :  { %v4617_v36 = vpop.permute.xlu0 %1243 }
 0x1c8   :  { %v4625_v37 = vpop.permute.xlu1 %1245 }
 0x1ca   :  { %v1248_v23 = vpop.permute.xlu0 %1247 }
 0x1cc   :  { %v1250_v62 = vpop.permute.xlu1 %1249 }
 0x1ce   :  { %v1252_v40 = vpop.permute.xlu0 %1251 }
 0x1d0   :  { %v1254_v18 = vpop.permute.xlu1 %1253 }
 0x1d2   :  { %v1256_v44 = vpop.permute.xlu0 %1255 }
 0x1d4   :  { %v1258_v49 = vpop.permute.xlu1 %1257 }
 0x1d5   :  { %v1292_v32 = vsel %vm1279_vm5, %v1256_v44, %v1258_v49  ;;  %v1357_v44 = vmax.f32 %v4439_v25, %v1254_v18  ;;  %v1288_v25 = vsel %vm1279_vm5, %v4601_v42, %v4609_v3 }
 0x1d6   :  { %v1260_v48 = vpop.permute.xlu0 %1259 }
 0x1d8   :  { %v1262_v11 = vpop.permute.xlu1 %1261 }
 0x1d9   :  { %v1293_v54 = vsel %vm1279_vm5, %v1260_v48, %v1262_v11 }
 0x1dc   :  { %v1264_v26 = vpop.permute.xlu1 %1263 }
 0x1dd   :  { %v1268_v4 = vpop.permute.xlu0 %1267 }
 0x1e0   :  { %v1266_v1 = vpop.permute.xlu1 %1265 }
 0x1e1   :  { %v1270_v58 = vpop.permute.xlu0 %1269  ;;  %v1294_v20 = vsel %vm1279_vm5, %v1264_v26, %v1266_v1  ;;  %v1363_v38 = vmax.f32 %v4480_v63, %v1266_v1  ;;  %v1361_v26 = vmax.f32 %v4469_v24, %v1262_v11  ;;  %v1358_v63 = vmax.f32 %v4447_v55, %v1292_v32 }
 0x1e2   :  { %v1295_v10 = vsel %vm1279_vm5, %v1268_v4, %v1270_v58  ;;  %v1365_v12 = vmax.f32 %v4488_v50, %v1270_v58  ;;  %v1362_v7 = vmax.f32 %v4474_v30, %v1294_v20  ;;  %v1360_v4 = vmax.f32 %v4462_v8, %v1293_v54 }
 0x1e3   :  { %v1364_v19 = vmax.f32 %v4483_v45, %v1295_v10  ;;  %v1291_v45 = vsel %vm1279_vm5, %v1252_v40, %v1254_v18  ;;  %v1359_v50 = vmax.f32 %v4455_v13, %v1258_v49  ;;  %v1290_v1 = vsel %vm1279_vm5, %v1248_v23, %v1250_v62 }
 0x1e4   :  { %v1234_v17 = vpop.permute.xlu1 %1233  ;;  %1432 = vmatprep.subr.mxu1 %v1365_v12  ;;  %v1356_v24 = vmax.f32 %v4431_v28, %v1291_v45  ;;  %v1289_v8 = vsel %vm1279_vm5, %v4617_v36, %v4625_v37  ;;  %v1355_v13 = vmax.f32 %v4422_v41, %v1250_v62  ;;  %v1354_v55 = vmax.f32 %v4411_v14, %v1290_v1  ;;  %v3444_v45 = vld [vmem:[%s5905_s4 + $0x200] sm:$0xff] }
 0x1e5   :  { %1433 = vmatpush1.msra.mxu1 %v1364_v19  ;;  %v1232_v60 = vpop.permute.xlu0 %1231  ;;  %v1353_v28 = vmax.f32 %v4399_v61, %v4625_v37  ;;  %v1352_v23 = vmax.f32 %v4387_v31, %v1289_v8  ;;  %v1287_v41 = vsel %vm1279_vm5, %v4585_v52, %v4593_v53  ;;  %v1351_v14 = vmax.f32 %v4375_v5, %v4609_v3  ;;  %v3440_v1 = vld [vmem:[%s5905_s4 + $0x1e0] sm:$0xff] }
 0x1e6   :  { %1434 = vmatprep.subr.mxu1 %v1363_v38  ;;  %v1350_v62 = vmax.f32 %v4363_v56, %v1288_v25  ;;  %v1349_v61 = vmax.f32 %v4351_v21, %v4593_v53  ;;  %v1286_v37 = vsel %vm1279_vm5, %v1232_v60, %v1234_v17  ;;  %v1348_v31 = vmax.f32 %v4339_v57, %v1287_v41  ;;  %v1374_v8 = vld [vmem:[%s5904_s7 + $0x20] sm:$0xff]  ;;  %v3434_v25 = vld [vmem:[%s5905_s4 + $0x1b0] sm:$0xff]  ;;  %v1379_v41 = vld [vmem:[%s5904_s7 + $0x48] sm:$0xff] }
 0x1e7   :  { %1435 = vmatpush1.msra.mxu1 %v1362_v7  ;;  %v1347_v52 = vmax.f32 %v4328_v0, %v1234_v17  ;;  %v1346_v3 = vmax.f32 %v4318_v27, %v1286_v37  ;;  %v1381_v37 = vld [vmem:[%s5904_s7 + $0x58] sm:$0xff] }
 0x1e8   :  { %v1230_v48 = vpop.permute.xlu1 %1229  ;;  %1436 = vmatprep.subr.mxu1 %v1361_v26 }
 0x1e9   :  { %1437 = vmatpush1.msra.mxu1 %v1360_v4  ;;  %v1228_v30 = vpop.permute.xlu0 %1227  ;;  %v1345_v11 = vmax.f32 %v4306_v33, %v1230_v48 }
 0x1ea   :  { %1438 = vmatprep.subr.mxu1 %v1359_v50  ;;  %v1285_v18 = vsel %vm1279_vm5, %v1228_v30, %v1230_v48  ;;  %v3442_v50 = vld [vmem:[%s5905_s4 + $0x1f0] sm:$0xff]  ;;  %v1375_v30 = vld [vmem:[%s5904_s7 + $0x28] sm:$0xff] }
 0x1eb   :  { %1439 = vmatpush1.msra.mxu1 %v1358_v63  ;;  %v1344_v53 = vmax.f32 %v4296_v51, %v1285_v18  ;;  %v1372_v48 = vld [vmem:[%s5904_s7 + $0x10] sm:$0xff]  ;;  %v3441_v63 = vld [vmem:[%s5905_s4 + $0x1e8] sm:$0xff] }
 0x1ec   :  { %v1226_v40 = vpop.permute.xlu1 %1225  ;;  %1440 = vmatprep.subr.mxu1 %v1357_v44  ;;  %v3439_v44 = vld [vmem:[%s5905_s4 + $0x1d8] sm:$0xff]  ;;  %v3426_v18 = vld [vmem:[%s5905_s4 + $0x170] sm:$0xff] }
 0x1ed   :  { %1441 = vmatpush1.msra.mxu1 %v1356_v24  ;;  %v1224_v49 = vpop.permute.xlu0 %1223  ;;  %v1343_v57 = vmax.f32 %v4284_v59, %v1226_v40  ;;  %v3438_v24 = vld [vmem:[%s5905_s4 + $0x1d0] sm:$0xff] }
 0x1ee   :  { %1442 = vmatprep.subr.mxu1 %v1355_v13  ;;  %v1284_v21 = vsel %vm1279_vm5, %v1224_v49, %v1226_v40  ;;  %v3437_v13 = vld [vmem:[%s5905_s4 + $0x1c8] sm:$0xff]  ;;  %v1377_v40 = vld [vmem:[%s5904_s7 + $0x38] sm:$0xff] }
 0x1ef   :  { %1443 = vmatpush1.msra.mxu1 %v1354_v55  ;;  %v1342_v20 = vmax.f32 %v4275_v39, %v1284_v21  ;;  %v3436_v55 = vld [vmem:[%s5905_s4 + $0x1c0] sm:$0xff]  ;;  %v3435_v49 = vld [vmem:[%s5905_s4 + $0x1b8] sm:$0xff] }
 0x1f0   :  { %v1222_v36 = vpop.permute.xlu1 %1221  ;;  %1444 = vmatprep.subr.mxu1 %v1353_v28  ;;  %v1376_v28 = vld [vmem:[%s5904_s7 + $0x30] sm:$0xff]  ;;  %v3423_v21 = vld [vmem:[%s5905_s4 + $0x158] sm:$0xff] }
 0x1f1   :  { %1445 = vmatpush1.msra.mxu1 %v1352_v23  ;;  %v1220_v42 = vpop.permute.xlu0 %1219  ;;  %v1341_v10 = vmax.f32 %v4265_v43, %v1222_v36  ;;  %v3433_v23 = vld [vmem:[%s5905_s4 + $0x1a8] sm:$0xff] }
 0x1f2   :  { %1446 = vmatprep.subr.mxu1 %v1351_v14  ;;  %v1283_v0 = vsel %vm1279_vm5, %v1220_v42, %v1222_v36  ;;  %v3432_v14 = vld [vmem:[%s5905_s4 + $0x1a0] sm:$0xff]  ;;  %v3431_v36 = vld [vmem:[%s5905_s4 + $0x198] sm:$0xff] }
 0x1f3   :  { %1447 = vmatpush1.msra.mxu1 %v1350_v62  ;;  %v1340_v12 = vmax.f32 %v4255_v34, %v1283_v0  ;;  %v3430_v62 = vld [vmem:[%s5905_s4 + $0x190] sm:$0xff]  ;;  %v1378_v42 = vld [vmem:[%s5904_s7 + $0x40] sm:$0xff] }
 0x1f4   :  { %v1218_v5 = vpop.permute.xlu1 %1217  ;;  %1448 = vmatprep.subr.mxu1 %v1349_v61  ;;  %v3429_v61 = vld [vmem:[%s5905_s4 + $0x188] sm:$0xff]  ;;  %v1384_v0 = vld [vmem:[%s5904_s7 + $0x70] sm:$0xff] }
 0x1f5   :  { %1449 = vmatpush1.msra.mxu1 %v1348_v31  ;;  %v1216_v56 = vpop.permute.xlu0 %1215  ;;  %v1339_v51 = vmax.f32 %v4243_v35, %v1218_v5  ;;  %v3428_v31 = vld [vmem:[%s5905_s4 + $0x180] sm:$0xff] }
 0x1f6   :  { %1450 = vmatprep.subr.mxu1 %v1347_v52  ;;  %v1282_v33 = vsel %vm1279_vm5, %v1216_v56, %v1218_v5  ;;  %v3427_v52 = vld [vmem:[%s5905_s4 + $0x178] sm:$0xff]  ;;  %v1380_v5 = vld [vmem:[%s5904_s7 + $0x50] sm:$0xff]  ;;  %v1383_v56 = vld [vmem:[%s5904_s7 + $0x68] sm:$0xff] }
 0x1f7   :  { %1451 = vmatpush1.msra.mxu1 %v1346_v3  ;;  %v1338_v54 = vmax.f32 %v4233_v2, %v1282_v33  ;;  %v3425_v3 = vld [vmem:[%s5905_s4 + $0x168] sm:$0xff] }
 0x1f8   :  { %v1214_v58 = vpop.permute.xlu1 %1213  ;;  %1452 = vmatprep.subr.mxu1 %v1345_v11  ;;  %v3424_v11 = vld [vmem:[%s5905_s4 + $0x160] sm:$0xff]  ;;  %v1391_v33 = vld [vmem:[%s5904_s7 + $0xa8] sm:$0x3] }
 0x1f9   :  { %1453 = vmatpush1.msra.mxu1 %v1344_v53  ;;  %v1212_v27 = vpop.permute.xlu0 %1211  ;;  %v1337_v38 = vmax.f32 %v4222_v29, %v1214_v58  ;;  %v1382_v53 = vld [vmem:[%s5904_s7 + $0x60] sm:$0xff] }
 0x1fa   :  { %1454 = vmatprep.subr.mxu1 %v1343_v57  ;;  %v1281_v59 = vsel %vm1279_vm5, %v1212_v27, %v1214_v58  ;;  %v1385_v57 = vld [vmem:[%s5904_s7 + $0x78] sm:$0xff]  ;;  %v1387_v58 = vld [vmem:[%s5904_s7 + $0x88] sm:$0xff] }
 0x1fb   :  { %1455 = vmatpush1.msra.mxu1 %v1342_v20  ;;  %v1336_v17 = vmax.f32 %v4214_v6, %v1281_v59  ;;  %v1386_v20 = vld [vmem:[%s5904_s7 + $0x80] sm:$0xff]  ;;  %v1389_v27 = vld [vmem:[%s5904_s7 + $0x98] sm:$0xff]  ;;  %v1564_v59 = vld [vmem:[%s5905_s4 + $0x8] sm:$0xff] }
 0x1fc   :  { %v1210_v19 = vpop.permute.xlu1 %1209  ;;  %1456 = vmatprep.subr.mxu1 %v1341_v10  ;;  %v1388_v10 = vld [vmem:[%s5904_s7 + $0x90] sm:$0xff]  ;;  %1902 = vmatprep.subr.mxu0 %v1564_v59 }
 0x1fd   :  { %1457 = vmatpush1.msra.mxu1 %v1340_v12  ;;  %v1208_v39 = vpop.permute.xlu0 %1207  ;;  %v1335_v34 = vmax.f32 %v4202_v22, %v1210_v19  ;;  %v1390_v12 = vld [vmem:[%s5904_s7 + $0xa0] sm:$0x3] }
 0x1fe   :  { %v1280_v43 = vsel %vm1279_vm5, %v1208_v39, %v1210_v19  ;;  %1458 = vmatprep.subr.mxu1 %v1339_v51  ;;  %v3422_v51 = vld [vmem:[%s5905_s4 + $0x150] sm:$0xff]  ;;  %v3421_v19 = vld [vmem:[%s5905_s4 + $0x148] sm:$0xff]  ;;  %v3420_v39 = vld [vmem:[%s5905_s4 + $0x140] sm:$0xff] }
 0x1ff   :  { %1459 = vmatpush1.msra.mxu1 %v1338_v54  ;;  %v1334_v35 = vmax.f32 %v4192_v46, %v1280_v43  ;;  %v1563_v54 = vld [vmem:[%s5905_s4] sm:$0xff]  ;;  %v3419_v43 = vld [vmem:[%s5905_s4 + $0x138] sm:$0xff] }
 0x200   :  { %v1278_v7 = vpop.permute.xlu1 %1277  ;;  %1460 = vmatprep.subr.mxu1 %v1337_v38  ;;  %1903 = vmatpush1.msra.mxu0 %v1563_v54  ;;  %v1596_v38 = vld [vmem:[%s5905_s4 + $0x108] sm:$0xff] }
 0x201   :  { %1461 = vmatpush1.msra.mxu1 %v1336_v17  ;;  %v1276_v60 = vpop.permute.xlu0 %1275  ;;  %v1369_v2 = vmax.f32 %v4534_v15, %v1278_v7  ;;  %v1370_v15 = vld [vmem:[%s5904_s7] sm:$0xff]  ;;  %1934 = vmatprep.subr.mxu0 %v1596_v38 }
 0x202   :  { %v1297_v32 = vsel %vm1279_vm5, %v1276_v60, %v1278_v7  ;;  %1462 = vmatprep.subr.mxu1 %v1335_v34  ;;  %v1595_v17 = vld [vmem:[%s5905_s4 + $0x100] sm:$0xff]  ;;  %v3418_v34 = vld [vmem:[%s5905_s4 + $0x130] sm:$0xff]  ;;  %v3417_v7 = vld [vmem:[%s5905_s4 + $0x128] sm:$0xff] }
 0x203   :  { %v1368_v29 = vmax.f32 %v4536_v47, %v1297_v32  ;;  %1463 = vmatpush1.msra.mxu1 %v1334_v35  ;;  %v3445_v47 = vld [vmem:[%s5905_s4 + $0x208] sm:$0xff]  ;;  %1935 = vmatpush2.msra.mxu0 %v1595_v17  ;;  %v3416_v35 = vld [vmem:[%s5905_s4 + $0x120] sm:$0xff]  ;;  %v3415_v60 = vld [vmem:[%s5905_s4 + $0x118] sm:$0xff] }
 0x204   :  { %v1274_v26 = vpop.permute.xlu1 %1273  ;;  %3401 = vmatprep.subr.msk.mxu1 %vm95_vm1, %v1369_v2  ;;  %v3414_v2 = vld [vmem:[%s5905_s4 + $0x110] sm:$0xff]  ;;  %v3447_v32 = vld [vmem:[%s5905_s4 + $0x218] sm:$0xff] }
 0x205   :  { %v1367_v6 = vmax.f32 %v4498_v16, %v1274_v26  ;;  %3402 = vmatpush2.msk.msra.mxu1 %vm95_vm1, %v1368_v29  ;;  %v1272_v22 = vpop.permute.xlu0 %1271  ;;  %v1373_v16 = vld [vmem:[%s5904_s7 + $0x18] sm:$0xff]  ;;  %v3446_v29 = vld [vmem:[%s5905_s4 + $0x210] sm:$0xff] }
 0x206   :  { %v1296_v46 = vsel %vm1279_vm5, %v1272_v22, %v1274_v26  ;;  %v3499_v26 = vld [vmem:[%s5905_s4 + $0x318] sm:$0xff] }
 0x207   :  { %v1366_v4 = vmax.f32 %v4493_v9, %v1296_v46  ;;  %1494 = vmatprep.subr.mxu1 %v1367_v6  ;;  %v3443_v9 = vld [vmem:[%s5905_s4 + $0x1f8] sm:$0xff] }
 0x208   :  { %v3483_v17 = vld [vmem:[%s5905_s4 + $0x298] sm:$0xff] }
 0x209   :  { %1495 = vmatpush2.msra.mxu1 %v1366_v4 }
 0x20a   :  { %1497 = vmatmul.mubr.f32.vlgmr.msra.gmra.mxu1 %v1370_v15  ;;  %1727 = vmatprep.subr.mxu1 %v3445_v47 }
 0x20b   :  { %3404 = vmatprep.mubr.msk.f32.mxu1 %vm1392_vm4, %v1373_v16  ;;  %1728 = vmatpush1.msra.mxu1 %v3444_v45 }
 0x20c   :  { %1729 = vmatprep.subr.mxu1 %v3443_v9 }
 0x20d   :  { %1730 = vmatpush1.msra.mxu1 %v3442_v50 }
 0x20e   :  { %1503 = vmatmul.mubr.f32.gmra.mxu1 %v1372_v48  ;;  %1731 = vmatprep.subr.mxu1 %v3441_v63  ;;  %v3498_v48 = vld [vmem:[%s5905_s4 + $0x310] sm:$0xff] }
 0x20f   :  { %3405 = vmatprep.mubr.msk.f32.mxu1 %vm1392_vm4, %v1375_v30  ;;  %1732 = vmatpush1.msra.mxu1 %v3440_v1 }
 0x210   :  { %1733 = vmatprep.subr.mxu1 %v3439_v44  ;;  %v3497_v44 = vld [vmem:[%s5905_s4 + $0x308] sm:$0xff] }
 0x211   :  { %1734 = vmatpush1.msra.mxu1 %v3438_v24 }
 0x212   :  { %1509 = vmatmul.mubr.f32.gmra.mxu1 %v1374_v8  ;;  %1735 = vmatprep.subr.mxu1 %v3437_v13  ;;  %v3496_v8 = vld [vmem:[%s5905_s4 + $0x300] sm:$0xff] }
 0x213   :  { %3406 = vmatprep.mubr.msk.f32.mxu1 %vm1392_vm4, %v1377_v40  ;;  %1736 = vmatpush1.msra.mxu1 %v3436_v55  ;;  %v3495_v55 = vld [vmem:[%s5905_s4 + $0x2f8] sm:$0xff] }
 0x214   :  { %1737 = vmatprep.subr.mxu1 %v3435_v49 }
 0x215   :  { %1738 = vmatpush1.msra.mxu1 %v3434_v25 }
 0x216   :  { %1515 = vmatmul.mubr.f32.gmra.mxu1 %v1376_v28  ;;  %1739 = vmatprep.subr.mxu1 %v3433_v23  ;;  %v3494_v23 = vld [vmem:[%s5905_s4 + $0x2f0] sm:$0xff] }
 0x217   :  { %3407 = vmatprep.mubr.msk.f32.mxu1 %vm1392_vm4, %v1379_v41  ;;  %1740 = vmatpush1.msra.mxu1 %v3432_v14  ;;  %v3493_v14 = vld [vmem:[%s5905_s4 + $0x2e8] sm:$0xff] }
 0x218   :  { %1741 = vmatprep.subr.mxu1 %v3431_v36 }
 0x219   :  { %1742 = vmatpush1.msra.mxu1 %v3430_v62 }
 0x21a   :  { %1521 = vmatmul.mubr.f32.gmra.mxu1 %v1378_v42  ;;  %1743 = vmatprep.subr.mxu1 %v3429_v61  ;;  %v3492_v42 = vld [vmem:[%s5905_s4 + $0x2e0] sm:$0xff] }
 0x21b   :  { %3408 = vmatprep.mubr.msk.f32.mxu1 %vm1392_vm4, %v1381_v37  ;;  %1744 = vmatpush1.msra.mxu1 %v3428_v31 }
 0x21c   :  { %1745 = vmatprep.subr.mxu1 %v3427_v52  ;;  %v3491_v52 = vld [vmem:[%s5905_s4 + $0x2d8] sm:$0xff] }
 0x21d   :  { %1746 = vmatpush1.msra.mxu1 %v3426_v18 }
 0x21e   :  { %1527 = vmatmul.mubr.f32.gmra.mxu1 %v1380_v5  ;;  %1747 = vmatprep.subr.mxu1 %v3425_v3  ;;  %v3490_v5 = vld [vmem:[%s5905_s4 + $0x2d0] sm:$0xff] }
 0x21f   :  { %3409 = vmatprep.mubr.msk.f32.mxu1 %vm1392_vm4, %v1383_v56  ;;  %1748 = vmatpush1.msra.mxu1 %v3424_v11  ;;  %v3489_v11 = vld [vmem:[%s5905_s4 + $0x2c8] sm:$0xff] }
 0x220   :  { %1749 = vmatprep.subr.mxu1 %v3423_v21 }
 0x221   :  { %1750 = vmatpush1.msra.mxu1 %v3422_v51 }
 0x222   :  { %1533 = vmatmul.mubr.f32.gmra.mxu1 %v1382_v53  ;;  %1751 = vmatprep.subr.mxu1 %v3421_v19  ;;  %v3485_v19 = vld [vmem:[%s5905_s4 + $0x2a8] sm:$0xff] }
 0x223   :  { %3410 = vmatprep.mubr.msk.f32.mxu1 %vm1392_vm4, %v1385_v57  ;;  %1752 = vmatpush1.msra.mxu1 %v3420_v39  ;;  %v3484_v39 = vld [vmem:[%s5905_s4 + $0x2a0] sm:$0xff] }
 0x224   :  { %1753 = vmatprep.subr.mxu1 %v3419_v43 }
 0x225   :  { %1754 = vmatpush1.msra.mxu1 %v3418_v34 }
 0x226   :  { %1539 = vmatmul.mubr.f32.gmra.mxu1 %v1384_v0  ;;  %1755 = vmatprep.subr.mxu1 %v3417_v7  ;;  %v3488_v0 = vld [vmem:[%s5905_s4 + $0x2c0] sm:$0xff] }
 0x227   :  { %3411 = vmatprep.mubr.msk.f32.mxu1 %vm1392_vm4, %v1387_v58  ;;  %1756 = vmatpush1.msra.mxu1 %v3416_v35 }
 0x228   :  { %1757 = vmatprep.subr.mxu1 %v3415_v60  ;;  %v3482_v60 = vld [vmem:[%s5905_s4 + $0x290] sm:$0xff] }
 0x229   :  { %1758 = vmatpush1.msra.mxu1 %v3414_v2 }
 0x22a   :  { %1545 = vmatmul.mubr.f32.gmra.mxu1 %v1386_v20  ;;  %1789 = vmatprep.subr.mxu1 %v3447_v32  ;;  %v3487_v20 = vld [vmem:[%s5905_s4 + $0x2b8] sm:$0xff]  ;;  %v3481_v32 = vld [vmem:[%s5905_s4 + $0x288] sm:$0xff] }
 0x22b   :  { %3412 = vmatprep.mubr.msk.f32.mxu1 %vm1392_vm4, %v1389_v27  ;;  %1790 = vmatpush2.msra.mxu1 %v3446_v29 }
 0x22c   :  { %2104 = vmatprep.subr.mxu1 %v3499_v26 }
 0x22e   :  { %1551 = vmatmul.mubr.f32.gmra.mxu1 %v1388_v10 }
 0x22f   :  { %3413 = vmatprep.mubr.msk.f32.mxu1 %vm1392_vm4, %v1391_v33  ;;  %v3486_v33 = vld [vmem:[%s5905_s4 + $0x2b0] sm:$0xff] }
 0x232   :  { %1557 = vmatmul.mubr.f32.gmra.mxu1 %v1390_v12 }
 0x2ca   :  { %v4903_v6 = vpop.f32.mrf.mxu1 }
 0x2cb   :  { %v1654_v45 = vrot.slane %v4903_v6, 1 }
 0x2cc   :  { %v4905_v22 = vpop.f32.mrf.mxu1 }
 0x2cd   :  { %3458 = vmatprep.mubr.msk.f32.mxu0 %vm1706_vm6, %v4905_v22  ;;  %v1657_v47 = vrot.slane %v4905_v22, 1 }
 0x2ce   :  { %v4909_v46 = vpop.f32.mrf.mxu1  ;;  %1937 = vmatmul.mubr.f32.vlgmr.msra.gmra.mxu0 %v4903_v6 }
 0x2cf   :  { %v1655_v4 = vrot.slane %v4909_v46, 1 }
 0x2d0   :  { %v4913_v15 = vpop.f32.mrf.mxu1 }
 0x2d1   :  { %v1658_v16 = vrot.slane %v4913_v15, 1  ;;  %3459 = vmatprep.mubr.msk.f32.mxu0 %vm1706_vm6, %v4913_v15  ;;  %v1656_v1 = vsel %vm95_vm1, %v1654_v45, %v1655_v4 }
 0x2d2   :  { %v4920_v9 = vpop.f32.mrf.mxu1  ;;  %1943 = vmatmul.mubr.f32.gmra.mxu0 %v4909_v46 }
 0x2d3   :  { %v1659_v50 = vsel %vm95_vm1, %v1657_v47, %v1658_v16  ;;  %v1660_v63 = vrot.slane %v4920_v9, 1 }
 0x2d4   :  { %v4928_v30 = vpop.f32.mrf.mxu1  ;;  %3448 = vmatprep.mubr.msk.f32.mxu1 %vm1706_vm6, %v1659_v50  ;;  %v3479_v50 = vld [vmem:[%s5905_s4 + $0x278] sm:$0xff] }
 0x2d5   :  { %v1662_v24 = vrot.slane %v4928_v30, 1  ;;  %1792 = vmatmul.mubr.f32.vlgmr.msra.gmra.mxu1 %v1656_v1  ;;  %3460 = vmatprep.mubr.msk.f32.mxu0 %vm1706_vm6, %v4928_v30  ;;  %v1661_v28 = vsel %vm95_vm1, %v1655_v4, %v1660_v63  ;;  %v3480_v4 = vld [vmem:[%s5905_s4 + $0x280] sm:$0xff] }
 0x2d6   :  { %v4941_v13 = vpop.f32.mrf.mxu1  ;;  %1949 = vmatmul.mubr.f32.gmra.mxu0 %v4920_v9  ;;  %2105 = vmatpush1.msra.mxu1 %v3498_v48 }
 0x2d7   :  { %v1663_v40 = vsel %vm95_vm1, %v1658_v16, %v1662_v24  ;;  %2106 = vmatprep.subr.mxu1 %v3497_v44  ;;  %v1664_v49 = vrot.slane %v4941_v13, 1 }
 0x2d8   :  { %v4949_v25 = vpop.f32.mrf.mxu1  ;;  %3449 = vmatprep.mubr.msk.f32.mxu1 %vm1706_vm6, %v1663_v40  ;;  %2107 = vmatpush1.msra.mxu1 %v3496_v8 }
 0x2d9   :  { %v1666_v41 = vrot.slane %v4949_v25, 1  ;;  %1798 = vmatmul.mubr.f32.gmra.mxu1 %v1661_v28  ;;  %3461 = vmatprep.mubr.msk.f32.mxu0 %vm1706_vm6, %v4949_v25  ;;  %v1665_v31 = vsel %vm95_vm1, %v1660_v63, %v1664_v49  ;;  %v3478_v63 = vld [vmem:[%s5905_s4 + $0x270] sm:$0xff] }
 0x2da   :  { %v4962_v36 = vpop.f32.mrf.mxu1  ;;  %1955 = vmatmul.mubr.f32.gmra.mxu0 %v4941_v13  ;;  %2108 = vmatprep.subr.mxu1 %v3495_v55  ;;  %v3476_v55 = vld [vmem:[%s5905_s4 + $0x260] sm:$0xff] }
 0x2db   :  { %v1667_v62 = vsel %vm95_vm1, %v1662_v24, %v1666_v41  ;;  %2109 = vmatpush1.msra.mxu1 %v3494_v23  ;;  %v1668_v61 = vrot.slane %v4962_v36, 1  ;;  %v3477_v24 = vld [vmem:[%s5905_s4 + $0x268] sm:$0xff]  ;;  %v3475_v23 = vld [vmem:[%s5905_s4 + $0x258] sm:$0xff] }
 0x2dc   :  { %v4970_v37 = vpop.f32.mrf.mxu1  ;;  %3450 = vmatprep.mubr.msk.f32.mxu1 %vm1706_vm6, %v1667_v62  ;;  %2110 = vmatprep.subr.mxu1 %v3493_v14  ;;  %v3474_v14 = vld [vmem:[%s5905_s4 + $0x250] sm:$0xff] }
 0x2dd   :  { %v1670_v18 = vrot.slane %v4970_v37, 1  ;;  %1804 = vmatmul.mubr.f32.gmra.mxu1 %v1665_v31  ;;  %3462 = vmatprep.mubr.msk.f32.mxu0 %vm1706_vm6, %v4970_v37  ;;  %v1669_v57 = vsel %vm95_vm1, %v1664_v49, %v1668_v61 }
 0x2de   :  { %v4983_v3 = vpop.f32.mrf.mxu1  ;;  %1961 = vmatmul.mubr.f32.gmra.mxu0 %v4962_v36  ;;  %2111 = vmatpush1.msra.mxu1 %v3492_v42  ;;  %v3473_v42 = vld [vmem:[%s5905_s4 + $0x248] sm:$0xff] }
 0x2df   :  { %v1671_v56 = vsel %vm95_vm1, %v1666_v41, %v1670_v18  ;;  %2112 = vmatprep.subr.mxu1 %v3491_v52  ;;  %v1672_v21 = vrot.slane %v4983_v3, 1  ;;  %v3472_v52 = vld [vmem:[%s5905_s4 + $0x240] sm:$0xff] }
 0x2e0   :  { %v4991_v53 = vpop.f32.mrf.mxu1  ;;  %3451 = vmatprep.mubr.msk.f32.mxu1 %vm1706_vm6, %v1671_v56  ;;  %2113 = vmatpush1.msra.mxu1 %v3490_v5 }
 0x2e1   :  { %v1674_v58 = vrot.slane %v4991_v53, 1  ;;  %1810 = vmatmul.mubr.f32.gmra.mxu1 %v1669_v57  ;;  %3463 = vmatprep.mubr.msk.f32.mxu0 %vm1706_vm6, %v4991_v53  ;;  %v1673_v59 = vsel %vm95_vm1, %v1668_v61, %v1672_v21  ;;  %v5934_v61 = vmov 0.0   ;;  %v3470_v57 = vld [vmem:[%s5905_s4 + $0x230] sm:$0xff] }
 0x2e2   :  { %v5004_v27 = vpop.f32.mrf.mxu1  ;;  %1967 = vmatmul.mubr.f32.gmra.mxu0 %v4983_v3  ;;  %2114 = vmatprep.subr.mxu1 %v3489_v11  ;;  %v3471_v11 = vld [vmem:[%s5905_s4 + $0x238] sm:$0xff] }
 0x2e3   :  { %v1675_v10 = vsel %vm95_vm1, %v1670_v18, %v1674_v58  ;;  %2115 = vmatpush1.msra.mxu1 %v3488_v0  ;;  %v1676_v12 = vrot.slane %v5004_v27, 1 }
 0x2e4   :  { %v5012_v51 = vpop.f32.mrf.mxu1  ;;  %3452 = vmatprep.mubr.msk.f32.mxu1 %vm1706_vm6, %v1675_v10  ;;  %2116 = vmatprep.subr.mxu1 %v3487_v20  ;;  %v2035_v20 = vrot.slane %v4905_v22, 2  ;;  %v2033_v10 = vrot.slane %v4909_v46, 2  ;;  %v2038_v46 = vrot.slane %v4920_v9, 2 }
 0x2e5   :  { %v1678_v54 = vrot.slane %v5012_v51, 1  ;;  %1816 = vmatmul.mubr.f32.gmra.mxu1 %v1673_v59  ;;  %3464 = vmatprep.mubr.msk.f32.mxu0 %vm1706_vm6, %v5012_v51  ;;  %v1677_v35 = vsel %vm95_vm1, %v1672_v21, %v1676_v12  ;;  %v2036_v21 = vrot.slane %v4913_v15, 2  ;;  %v3468_v15 = vld [vmem:[%s5905_s4 + $0x220] sm:$0xff]  ;;  %v2040_v59 = vrot.slane %v4928_v30, 2 }
 0x2e6   :  { %v5025_v38 = vpop.f32.mrf.mxu1  ;;  %1973 = vmatmul.mubr.f32.gmra.mxu0 %v5004_v27  ;;  %2117 = vmatpush1.msra.mxu1 %v3486_v33  ;;  %v2044_v30 = vrot.slane %v4949_v25, 2  ;;  %v2046_v25 = vrot.slane %v4962_v36, 2  ;;  %v2054_v36 = vrot.slane %v5004_v27, 2 }
 0x2e7   :  { %v1679_v43 = vsel %vm95_vm1, %v1674_v58, %v1678_v54  ;;  %2118 = vmatprep.subr.mxu1 %v3485_v19  ;;  %v1680_v34 = vrot.slane %v5025_v38, 1  ;;  %v3469_v58 = vld [vmem:[%s5905_s4 + $0x228] sm:$0xff]  ;;  %v2037_v22 = vsel %vm572_vm3, %v2035_v20, %v2036_v21  ;;  %v3500_v19 = vld [vmem:[%s5905_s4 + $0x320] sm:$0xff] }
 0x2e8   :  { %v5033_v7 = vpop.f32.mrf.mxu1  ;;  %3453 = vmatprep.mubr.msk.f32.mxu1 %vm1706_vm6, %v1679_v43  ;;  %2119 = vmatpush1.msra.mxu1 %v3484_v39  ;;  %v2041_v43 = vsel %vm572_vm3, %v2036_v21, %v2040_v59  ;;  %v2045_v9 = vsel %vm572_vm3, %v2040_v59, %v2044_v30 }
 0x2e9   :  { %v1682_v2 = vrot.slane %v5033_v7, 1  ;;  %1822 = vmatmul.mubr.f32.gmra.mxu1 %v1677_v35  ;;  %3465 = vmatprep.mubr.msk.f32.mxu0 %vm1706_vm6, %v5033_v7  ;;  %v1681_v45 = vsel %vm95_vm1, %v1676_v12, %v1680_v34  ;;  %v3501_v12 = vld [vmem:[%s5905_s4 + $0x328] sm:$0xff] }
 0x2ea   :  { %v5046_v29 = vpop.f32.mrf.mxu1  ;;  %1979 = vmatmul.mubr.f32.gmra.mxu0 %v5025_v38  ;;  %2120 = vmatprep.subr.mxu1 %v3483_v17  ;;  %v2039_v17 = vsel %vm572_vm3, %v2033_v10, %v2038_v46 }
 0x2eb   :  { %v1683_v26 = vsel %vm95_vm1, %v1678_v54, %v1682_v2  ;;  %2121 = vmatpush1.msra.mxu1 %v3482_v60  ;;  %v1684_v47 = vrot.slane %v5046_v29, 1  ;;  %v2032_v54 = vrot.slane %v4903_v6, 2  ;;  %v2042_v6 = vrot.slane %v4941_v13, 2 }
 0x2ec   :  { %v5054_v16 = vpop.f32.mrf.mxu1  ;;  %3454 = vmatprep.mubr.msk.f32.mxu1 %vm1706_vm6, %v1683_v26  ;;  %2122 = vmatprep.subr.mxu1 %v3481_v32  ;;  %v2052_v60 = vrot.slane %v4991_v53, 2  ;;  %v2050_v13 = vrot.slane %v4983_v3, 2  ;;  %v2056_v32 = vrot.slane %v5012_v51, 2  ;;  %v2058_v3 = vrot.slane %v5025_v38, 2 }
 0x2ed   :  { %v1686_v48 = vrot.slane %v5054_v16, 1  ;;  %1828 = vmatmul.mubr.f32.gmra.mxu1 %v1681_v45  ;;  %3466 = vmatprep.mubr.msk.f32.mxu0 %vm1706_vm6, %v5054_v16  ;;  %v1685_v40 = vsel %vm95_vm1, %v1680_v34, %v1684_v47  ;;  %v2034_v39 = vsel %vm572_vm3, %v2032_v54, %v2033_v10  ;;  %v2048_v34 = vrot.slane %v4970_v37, 2 }
 0x2ee   :  { %v5067_v1 = vpop.f32.mrf.mxu1  ;;  %1985 = vmatmul.mubr.f32.gmra.mxu0 %v5046_v29  ;;  %2123 = vmatpush1.msra.mxu1 %v3480_v4  ;;  %v2043_v35 = vsel %vm572_vm3, %v2038_v46, %v2042_v6  ;;  %v2047_v37 = vsel %vm572_vm3, %v2042_v6, %v2046_v25  ;;  %v2051_v53 = vsel %vm572_vm3, %v2046_v25, %v2050_v13  ;;  %v2060_v4 = vrot.slane %v5033_v7, 2 }
 0x2ef   :  { %2124 = vmatprep.subr.mxu1 %v3479_v50  ;;  %v1687_v44 = vsel %vm95_vm1, %v1682_v2, %v1686_v48  ;;  %v1688_v49 = vrot.slane %v5067_v1, 1  ;;  %v2049_v2 = vsel %vm572_vm3, %v2044_v30, %v2048_v34  ;;  %v2053_v26 = vsel %vm572_vm3, %v2048_v34, %v2052_v60 }
 0x2f0   :  { %v5074_v8 = vpop.f32.mrf.mxu1  ;;  %3455 = vmatprep.mubr.msk.f32.mxu1 %vm1706_vm6, %v1687_v44  ;;  %2125 = vmatpush1.msra.mxu1 %v3478_v63  ;;  %v2055_v51 = vsel %vm572_vm3, %v2050_v13, %v2054_v36  ;;  %v2064_v45 = vrot.slane %v5054_v16, 2  ;;  %v2061_v50 = vsel %vm572_vm3, %v2056_v32, %v2060_v4  ;;  %v2062_v27 = vrot.slane %v5046_v29, 2  ;;  %v5936_v13 = vld [vmem:[#allocation9_spill] sm:$0xff] }
 0x2f1   :  { %v1690_v28 = vrot.slane %v5074_v8, 1  ;;  %1834 = vmatmul.mubr.f32.gmra.mxu1 %v1685_v40  ;;  %3467 = vmatprep.mubr.msk.f32.mxu0 %vm1706_vm6, %v5074_v8  ;;  %v1689_v56 = vsel %vm95_vm1, %v1684_v47, %v1688_v49  ;;  %v2057_v47 = vsel %vm572_vm3, %v2052_v60, %v2056_v32  ;;  %v2059_v7 = vsel %vm572_vm3, %v2054_v36, %v2058_v3 }
 0x2f2   :  { %2126 = vmatprep.subr.mxu1 %v3477_v24  ;;  %v5088_v41 = vpop.f32.mrf.mxu1  ;;  %1991 = vmatmul.mubr.f32.gmra.mxu0 %v5067_v1  ;;  %v2065_v63 = vsel %vm572_vm3, %v2060_v4, %v2064_v45  ;;  %v2066_v38 = vrot.slane %v5067_v1, 2  ;;  %v2063_v16 = vsel %vm572_vm3, %v2058_v3, %v2062_v27 }
 0x2f3   :  { %2127 = vmatpush1.msra.mxu1 %v3476_v55  ;;  %v1691_v62 = vsel %vm95_vm1, %v1686_v48, %v1690_v28  ;;  %2618 = vmatprep.mubr.f32.mxu0 %v5934_v61  ;;  %v1692_v18 = vrot.slane %v5088_v41, 1  ;;  %v2068_v48 = vrot.slane %v5074_v8, 2  ;;  %v2070_v29 = vrot.slane %v5088_v41, 2 }
 0x2f4   :  { %2128 = vmatprep.subr.mxu1 %v3475_v23  ;;  %v5099_v31 = vpop.f32.mrf.mxu1  ;;  %3456 = vmatprep.mubr.msk.f32.mxu1 %vm1706_vm6, %v1691_v62  ;;  %v2067_v8 = vsel %vm572_vm3, %v2062_v27, %v2066_v38 }
 0x2f5   :  { %v1694_v5 = vrot.slane %v5099_v31, 1  ;;  %2129 = vmatpush1.msra.mxu1 %v3474_v14  ;;  %v1693_v33 = vsel %vm95_vm1, %v1688_v49, %v1692_v18  ;;  %v2072_v44 = vrot.slane %v5099_v31, 2  ;;  %v2069_v24 = vsel %vm572_vm3, %v2064_v45, %v2068_v48 }
 0x2f6   :  { %1840 = vmatmul.mubr.f32.gmra.mxu1 %v1689_v56  ;;  %2130 = vmatprep.subr.mxu1 %v3473_v42  ;;  %v2071_v1 = vsel %vm572_vm3, %v2066_v38, %v2070_v29 }
 0x2f7   :  { %2131 = vmatpush1.msra.mxu1 %v3472_v52  ;;  %v1695_v0 = vsel %vm95_vm1, %v1690_v28, %v1694_v5  ;;  %v2073_v40 = vsel %vm572_vm3, %v2068_v48, %v2072_v44 }
 0x2f8   :  { %2132 = vmatprep.subr.mxu1 %v3471_v11  ;;  %3457 = vmatprep.mubr.msk.f32.mxu1 %vm1706_vm6, %v1695_v0 }
 0x2f9   :  { %2133 = vmatpush1.msra.mxu1 %v3470_v57 }
 0x2fa   :  { %1846 = vmatmul.mubr.f32.gmra.mxu1 %v1693_v33  ;;  %2134 = vmatprep.subr.mxu1 %v3469_v58 }
 0x2fb   :  { %2135 = vmatpush1.msra.mxu1 %v3468_v15  ;;  %3502 = vmatprep.mubr.msk.f32.mxu1 %vm1706_vm6, %v2037_v22 }
 0x2fc   :  { %2166 = vmatprep.subr.mxu1 %v3501_v12 }
 0x2fd   :  { %2167 = vmatpush2.msra.mxu1 %v3500_v19 }
 0x2fe   :  { %2169 = vmatmul.mubr.f32.vlgmr.msra.gmra.mxu1 %v2034_v39  ;;  %2647 = vmatprep.subr.mxu1 %v5934_v61  ;;  %v2249_v39 = vld [vmem:[%s5906_s5] sm:$0x3]  ;;  %s3560_s5 = smov 112  }
 0x2ff   :  { %3503 = vmatprep.mubr.msk.f32.mxu1 %vm1706_vm6, %v2041_v43 }
 0x302   :  { %2175 = vmatmul.mubr.f32.gmra.mxu1 %v2039_v17  ;;  %v5935_v17 = vld [vmem:[#allocation8_spill] sm:$0xff] }
 0x303   :  { %3504 = vmatprep.mubr.msk.f32.mxu1 %vm1706_vm6, %v2045_v9  ;;  %v5210_v34 = vrot.slane %v2249_v39, %v5935_v17  ;;  %v2281_v9 = vld [vmem:[%s5907_s6] sm:$0x3] }
 0x304   :  { %v5219_v32 = vrot.slane %v2281_v9, %v5935_v17 }
 0x306   :  { %2181 = vmatmul.mubr.f32.gmra.mxu1 %v2043_v35 }
 0x307   :  { %3505 = vmatprep.mubr.msk.f32.mxu1 %vm1706_vm6, %v2049_v2 }
 0x30a   :  { %2187 = vmatmul.mubr.f32.gmra.mxu1 %v2047_v37  ;;  %v5216_v37 = vrot.slane %v2249_v39, %v5936_v13 }
 0x30b   :  { %3506 = vmatprep.mubr.msk.f32.mxu1 %vm1706_vm6, %v2053_v26 }
 0x30e   :  { %2193 = vmatmul.mubr.f32.gmra.mxu1 %v2051_v53 }
 0x30f   :  { %3507 = vmatprep.mubr.msk.f32.mxu1 %vm1706_vm6, %v2057_v47  ;;  %v5223_v47 = vrot.slane %v2281_v9, %v5936_v13 }
 0x312   :  { %2199 = vmatmul.mubr.f32.gmra.mxu1 %v2055_v51 }
 0x313   :  { %3508 = vmatprep.mubr.msk.f32.mxu1 %vm1706_vm6, %v2061_v50 }
 0x316   :  { %2205 = vmatmul.mubr.f32.gmra.mxu1 %v2059_v7 }
 0x317   :  { %3509 = vmatprep.mubr.msk.f32.mxu1 %vm1706_vm6, %v2065_v63 }
 0x31a   :  { %2211 = vmatmul.mubr.f32.gmra.mxu1 %v2063_v16 }
 0x31b   :  { %3510 = vmatprep.mubr.msk.f32.mxu1 %vm1706_vm6, %v2069_v24 }
 0x31e   :  { %2217 = vmatmul.mubr.f32.gmra.mxu1 %v2067_v8 }
 0x31f   :  { %3511 = vmatprep.mubr.msk.f32.mxu1 %vm1706_vm6, %v2073_v40 }
 0x322   :  { %2223 = vmatmul.mubr.f32.gmra.mxu1 %v2071_v1 }
 0x38e   :  { %v1938_v49 = vpop.f32.mrf.mxu0 }
 0x390   :  { %v1940_v14 = vpop.f32.mrf.mxu0 }
 0x392   :  { %v1944_v31 = vpop.f32.mrf.mxu0 }
 0x394   :  { %v1946_v18 = vpop.f32.mrf.mxu0 }
 0x395   :  { %v1793_v55 = vpop.f32.mrf.mxu1 }
 0x396   :  { %v1950_v11 = vpop.f32.mrf.mxu0  ;;  %v1939_v6 = vadd.f32 %v1938_v49, %v1793_v55 }
 0x397   :  { %v1795_v28 = vpop.f32.mrf.mxu1 }
 0x398   :  { %v1952_v0 = vpop.f32.mrf.mxu0  ;;  %v1941_v35 = vadd.f32 %v1940_v14, %v1795_v28 }
 0x399   :  { %v1799_v23 = vpop.f32.mrf.mxu1 }
 0x39a   :  { %v1956_v15 = vpop.f32.mrf.mxu0  ;;  %v1945_v36 = vadd.f32 %v1944_v31, %v1799_v23 }
 0x39b   :  { %v1801_v62 = vpop.f32.mrf.mxu1 }
 0x39c   :  { %v1958_v12 = vpop.f32.mrf.mxu0  ;;  %v1947_v51 = vadd.f32 %v1946_v18, %v1801_v62 }
 0x39d   :  { %v1805_v42 = vpop.f32.mrf.mxu1 }
 0x39e   :  { %v1962_v19 = vpop.f32.mrf.mxu0  ;;  %v1951_v16 = vadd.f32 %v1950_v11, %v1805_v42 }
 0x39f   :  { %v1807_v52 = vpop.f32.mrf.mxu1 }
 0x3a0   :  { %v1964_v30 = vpop.f32.mrf.mxu0  ;;  %v1953_v29 = vadd.f32 %v1952_v0, %v1807_v52 }
 0x3a1   :  { %v1811_v41 = vpop.f32.mrf.mxu1 }
 0x3a2   :  { %v1968_v60 = vpop.f32.mrf.mxu0  ;;  %v1957_v23 = vadd.f32 %v1956_v15, %v1811_v41 }
 0x3a3   :  { %v1813_v5 = vpop.f32.mrf.mxu1 }
 0x3a4   :  { %v1970_v45 = vpop.f32.mrf.mxu0  ;;  %v1959_v18 = vadd.f32 %v1958_v12, %v1813_v5 }
 0x3a5   :  { %v5182_v56 = vpop.f32.mrf.mxu1 }
 0x3a6   :  { %v1974_v8 = vpop.f32.mrf.mxu0 }
 0x3a7   :  { %v5184_v21 = vpop.f32.mrf.mxu1 }
 0x3a9   :  { %v5186_v57 = vpop.f32.mrf.mxu1 }
 0x3ab   :  { %v5188_v58 = vpop.f32.mrf.mxu1 }
 0x3ad   :  { %v5190_v20 = vpop.f32.mrf.mxu1 }
 0x3af   :  { %v5192_v10 = vpop.f32.mrf.mxu1 }
 0x3b1   :  { %v5194_v33 = vpop.f32.mrf.mxu1 }
 0x3b3   :  { %v5196_v59 = vpop.f32.mrf.mxu1 }
 0x3b6   :  { %v5198_v22 = vpop.f32.mrf.mxu1 }
 0x3b8   :  { %v5200_v54 = vpop.f32.mrf.mxu1 }
 0x3ba   :  { %v5202_v46 = vpop.f32.mrf.mxu1 }
 0x3bc   :  { %v5207_v43 = vpop.f32.mrf.mxu1 }
 0x3be   :  { %v2170_v25 = vpop.f32.mrf.mxu1 }
 0x3bf   :  { %v2229_v2 = vadd.f32 %v2170_v25, %v1939_v6  ;;  %v1976_v6 = vpop.f32.mrf.mxu0  ;;  %v1963_v25 = vadd.f32 %v1962_v19, %v5182_v56 }
 0x3c0   :  { %v2172_v26 = vpop.f32.mrf.mxu1 }
 0x3c1   :  { %v2261_v53 = vmul.f32 %v5210_v34, %v2229_v2  ;;  %v2230_v4 = vadd.f32 %v2172_v26, %v1941_v35  ;;  %v1965_v26 = vadd.f32 %v1964_v30, %v5184_v21 }
 0x3c2   :  { %v2176_v3 = vpop.f32.mrf.mxu1 }
 0x3c3   :  { %v2262_v50 = vmul.f32 %v5216_v37, %v2230_v4  ;;  %v2231_v27 = vadd.f32 %v2176_v3, %v1945_v36  ;;  %v2293_v7 = vadd.f32 %v5219_v32, %v2261_v53 }
 0x3c4   :  { %v2178_v48 = vpop.f32.mrf.mxu1 }
 0x3c5   :  { %v2263_v63 = vmul.f32 %v5210_v34, %v2231_v27  ;;  %v2232_v38 = vadd.f32 %v2178_v48, %v1947_v51  ;;  %v2294_v44 = vadd.f32 %v5223_v47, %v2262_v50  ;;  %v2313_v55 = vmax.f32 %v2293_v7, 0.0  ;;  %v1980_v51 = vpop.f32.mrf.mxu0 }
 0x3c6   :  { %v2182_v24 = vpop.f32.mrf.mxu1  ;;  %v1969_v7 = vadd.f32 %v1968_v60, %v5186_v57  ;;  %v1971_v57 = vadd.f32 %v1970_v45, %v5188_v58 }
 0x3c7   :  { %v2295_v40 = vadd.f32 %v5219_v32, %v2263_v63  ;;  %v2264_v1 = vmul.f32 %v5216_v37, %v2232_v38  ;;  %v2233_v49 = vadd.f32 %v2182_v24, %v1951_v16  ;;  %v2314_v39 = vmax.f32 %v2294_v44, 0.0  ;;  %v1982_v60 = vpop.f32.mrf.mxu0 }
 0x3c8   :  { %v2184_v28 = vpop.f32.mrf.mxu1  ;;  %v2353_v35 = vrot.slane %v2313_v55, 1 }
 0x3c9   :  { %v2315_v14 = vmax.f32 %v2295_v40, 0.0  ;;  %v2296_v62 = vadd.f32 %v5223_v47, %v2264_v1  ;;  %v2234_v31 = vadd.f32 %v2184_v28, %v1953_v29  ;;  %v2265_v42 = vmul.f32 %v5210_v34, %v2233_v49 }
 0x3ca   :  { %v2188_v11 = vpop.f32.mrf.mxu1  ;;  %v2356_v36 = vrot.slane %v2314_v39, 1 }
 0x3cb   :  { %v2354_v52 = vrot.slane %v2315_v14, 1  ;;  %v2316_v0 = vmax.f32 %v2296_v62, 0.0  ;;  %v2266_v17 = vmul.f32 %v5216_v37, %v2234_v31  ;;  %v2235_v9 = vadd.f32 %v2188_v11, %v1957_v23 }
 0x3cc   :  { %v2297_v41 = vadd.f32 %v5219_v32, %v2265_v42  ;;  %v2190_v15 = vpop.f32.mrf.mxu1  ;;  %v1975_v11 = vadd.f32 %v1974_v8, %v5190_v20 }
 0x3cd   :  { %v2357_v2 = vrot.slane %v2316_v0, 1  ;;  %v2298_v13 = vadd.f32 %v5223_v47, %v2266_v17  ;;  %v2267_v5 = vmul.f32 %v5210_v34, %v2235_v9  ;;  %v2236_v12 = vadd.f32 %v2190_v15, %v1959_v18 }
 0x3ce   :  { %v2317_v53 = vmax.f32 %v2297_v41, 0.0  ;;  %v2194_v4 = vpop.f32.mrf.mxu1  ;;  %v2355_v3 = vsel %vm95_vm1, %v2353_v35, %v2354_v52  ;;  %v1977_v41 = vadd.f32 %v1976_v6, %v5192_v10 }
 0x3cf   :  { %v2318_v50 = vmax.f32 %v2298_v13, 0.0  ;;  %v5241_v56 = vadd.f32 %v5219_v32, %v2267_v5  ;;  %v2268_v19 = vmul.f32 %v5216_v37, %v2236_v12  ;;  %v2237_v27 = vadd.f32 %v2194_v4, %v1963_v25 }
 0x3d0   :  { %v2359_v48 = vrot.slane %v2317_v53, 1  ;;  %v2196_v63 = vpop.f32.mrf.mxu1  ;;  %v5245_v38 = vmax.f32 %v2313_v55, %v2355_v3  ;;  %v2358_v21 = vsel %vm95_vm1, %v2356_v36, %v2357_v2  ;;  %v1981_v36 = vadd.f32 %v1980_v51, %v5194_v33 }
 0x3d1   :  { %v2361_v30 = vrot.slane %v2318_v50, 1  ;;  %v2319_v16 = vmax.f32 %v5241_v56, 0.0  ;;  %v5250_v44 = vadd.f32 %v5223_v47, %v2268_v19  ;;  %v2269_v24 = vmul.f32 %v5210_v34, %v2237_v27  ;;  %v2640_v56 = vld [vmem:[%s5908_s9 + $0x78] sm:$0xff] }
 0x3d2   :  { %v2238_v29 = vadd.f32 %v2196_v63, %v1965_v26  ;;  %v2200_v40 = vpop.f32.mrf.mxu1  ;;  %v2360_v1 = vsel %vm95_vm1, %v2354_v52, %v2359_v48  ;;  %v5254_v49 = vmax.f32 %v2314_v39, %v2358_v21  ;;  %v1983_v4 = vadd.f32 %v1982_v60, %v5196_v59  ;;  %2648 = vmatpush1.msra.mxu1 %v2640_v56 }
 0x3d3   :  { %v5259_v55 = vrot.slane %v2319_v16, 1  ;;  %v2320_v28 = vmax.f32 %v5250_v44, 0.0  ;;  %v2239_v23 = vadd.f32 %v2200_v40, %v1969_v7  ;;  %v2301_v62 = vadd.f32 %v5219_v32, %v2269_v24  ;;  %2649 = vmatprep.subr.mxu1 %v5934_v61  ;;  %v2638_v44 = vld [vmem:[%s5908_s9 + $0x68] sm:$0xff] }
 0x3d4   :  { %v2270_v31 = vmul.f32 %v5216_v37, %v2238_v29  ;;  %v2202_v18 = vpop.f32.mrf.mxu1  ;;  %v5264_v42 = vmax.f32 %v2315_v14, %v2360_v1  ;;  %v2362_v39 = vsel %vm95_vm1, %v2357_v2, %v2361_v30  ;;  %v1986_v14 = vpop.f32.mrf.mxu0 }
 0x3d5   :  { %v5270_v58 = vrot.slane %v2320_v28, 1  ;;  %v2271_v45 = vmul.f32 %v5210_v34, %v2239_v23  ;;  %v2240_v52 = vadd.f32 %v2202_v18, %v1971_v57  ;;  %v2364_v25 = vsel %vm95_vm1, %v2359_v48, %v5259_v55 }
 0x3d6   :  { %v2302_v17 = vadd.f32 %v5223_v47, %v2270_v31  ;;  %v2206_v9 = vpop.f32.mrf.mxu1  ;;  %v5276_v35 = vmax.f32 %v2316_v0, %v2362_v39  ;;  %v2321_v2 = vmax.f32 %v2301_v62, 0.0  ;;  %v5283_v5 = vmax.f32 %v2317_v53, %v2364_v25  ;;  %v1988_v53 = vpop.f32.mrf.mxu0 }
 0x3d7   :  { %v5280_v20 = vadd.f32 %v5219_v32, %v2271_v45  ;;  %v2272_v8 = vmul.f32 %v5216_v37, %v2240_v52  ;;  %v2241_v15 = vadd.f32 %v2206_v9, %v1975_v11  ;;  %v2366_v12 = vsel %vm95_vm1, %v2361_v30, %v5270_v58 }
 0x3d8   :  { %v2208_v13 = vpop.f32.mrf.mxu1  ;;  %v2322_v3 = vmax.f32 %v2302_v17, 0.0  ;;  %v5294_v27 = vmax.f32 %v2318_v50, %v2366_v12  ;;  %v1987_v30 = vadd.f32 %v1986_v14, %v5198_v22  ;;  %v5300_v24 = vrot.slane %v2321_v2, 1  ;;  %v1992_v22 = vpop.f32.mrf.mxu0 }
 0x3d9   :  { %v2323_v26 = vmax.f32 %v5280_v20, 0.0  ;;  %v5289_v0 = vadd.f32 %v5223_v47, %v2272_v8  ;;  %v2273_v10 = vmul.f32 %v5210_v34, %v2241_v15  ;;  %v2242_v6 = vadd.f32 %v2208_v13, %v1977_v41 }
 0x3da   :  { %v2212_v19 = vpop.f32.mrf.mxu1  ;;  %v1989_v1 = vadd.f32 %v1988_v53, %v5200_v54  ;;  %v5304_v57 = vrot.slane %v2322_v3, 1  ;;  %v1993_v45 = vadd.f32 %v1992_v22, %v5202_v46  ;;  %v1994_v13 = vpop.f32.mrf.mxu0 }
 0x3db   :  { %v2371_v7 = vrot.slane %v2323_v26, 1  ;;  %v2324_v48 = vmax.f32 %v5289_v0, 0.0  ;;  %v2305_v63 = vadd.f32 %v5219_v32, %v2273_v10  ;;  %v2274_v21 = vmul.f32 %v5216_v37, %v2242_v6 }
 0x3dc   :  { %v2243_v29 = vadd.f32 %v2212_v19, %v1981_v36  ;;  %v2214_v33 = vpop.f32.mrf.mxu1  ;;  %v1995_v36 = vadd.f32 %v1994_v13, %v5207_v43  ;;  %v2629_v13 = vld [vmem:[%s5908_s9 + $0x20] sm:$0xff] }
 0x3dd   :  { %v2373_v51 = vrot.slane %v2324_v48, 1  ;;  %v2325_v59 = vmax.f32 %v2305_v63, 0.0  ;;  %v2306_v40 = vadd.f32 %v5223_v47, %v2274_v21  ;;  %v2244_v50 = vadd.f32 %v2214_v33, %v1983_v4 }
 0x3de   :  { %v2275_v60 = vmul.f32 %v5210_v34, %v2243_v29  ;;  %v2218_v23 = vpop.f32.mrf.mxu1  ;;  %v2372_v62 = vsel %vm95_vm1, %v5300_v24, %v2371_v7 }
 0x3df   :  { %v2375_v31 = vrot.slane %v2325_v59, 1  ;;  %v2326_v18 = vmax.f32 %v2306_v40, 0.0  ;;  %v2276_v39 = vmul.f32 %v5216_v37, %v2244_v50  ;;  %v2245_v11 = vadd.f32 %v2218_v23, %v1987_v30 }
 0x3e0   :  { %v2307_v52 = vadd.f32 %v5219_v32, %v2275_v60  ;;  %v5312_v17 = vmax.f32 %v2321_v2, %v2372_v62  ;;  %v2220_v54 = vpop.f32.mrf.mxu1  ;;  %v2374_v9 = vsel %vm95_vm1, %v5304_v57, %v2373_v51 }
 0x3e1   :  { %v2377_v25 = vrot.slane %v2326_v18, 1  ;;  %v2308_v14 = vadd.f32 %v5223_v47, %v2276_v39  ;;  %v2277_v41 = vmul.f32 %v5210_v34, %v2245_v11  ;;  %v2246_v20 = vadd.f32 %v2220_v54, %v1989_v1 }
 0x3e2   :  { %v2327_v8 = vmax.f32 %v2307_v52, 0.0  ;;  %2467 = vrot.lane.b32.xlu0 %v5312_v17, %s3560_s5  ;;  %v5320_v46 = vmax.f32 %v2322_v3, %v2374_v9  ;;  %v2224_v15 = vpop.f32.mrf.mxu1  ;;  %v2376_v2 = vsel %vm95_vm1, %v2371_v7, %v2375_v31  ;;  %v2368_v9 = vsel %vm95_vm1, %v5259_v55, %v5300_v24  ;;  %v2635_v24 = vld [vmem:[%s5908_s9 + $0x50] sm:$0xff] }
 0x3e3   :  { %v2328_v12 = vmax.f32 %v2308_v14, 0.0  ;;  %v2309_v0 = vadd.f32 %v5219_v32, %v2277_v41  ;;  %v2278_v10 = vmul.f32 %v5216_v37, %v2246_v20  ;;  %v2247_v6 = vadd.f32 %v2224_v15, %v1993_v45  ;;  %v2633_v20 = vld [vmem:[%s5908_s9 + $0x40] sm:$0xff]  ;;  %v2631_v15 = vld [vmem:[%s5908_s9 + $0x30] sm:$0xff] }
 0x3e4   :  { %v2379_v4 = vrot.slane %v2327_v8, 1  ;;  %2469 = vrot.lane.b32.xlu1 %v5320_v46, %s3560_s5  ;;  %v5328_v19 = vmax.f32 %v2323_v26, %v2376_v2  ;;  %v2226_v3 = vpop.f32.mrf.mxu1  ;;  %v2378_v53 = vsel %vm95_vm1, %v2373_v51, %v2377_v25  ;;  %v2370_v14 = vsel %vm95_vm1, %v5270_v58, %v5304_v57  ;;  %v2636_v58 = vld [vmem:[%s5908_s9 + $0x58] sm:$0xff]  ;;  %v2634_v57 = vld [vmem:[%s5908_s9 + $0x48] sm:$0xff] }
 0x3e5   :  { %v2381_v63 = vrot.slane %v2328_v12, 1  ;;  %v2329_v7 = vmax.f32 %v2309_v0, 0.0  ;;  %v2310_v21 = vadd.f32 %v5223_v47, %v2278_v10  ;;  %v2279_v30 = vmul.f32 %v5210_v34, %v2247_v6  ;;  %v2630_v2 = vld [vmem:[%s5908_s9 + $0x28] sm:$0xff]  ;;  %v2627_v0 = vld [vmem:[%s5908_s9 + $0x10] sm:$0xff]  ;;  %v2625_v6 = vld [vmem:[%s5908_s9] sm:$0xff] }
 0x3e6   :  { %2471 = vrot.lane.b32.xlu0 %v5328_v19, %s3560_s5  ;;  %v2248_v29 = vadd.f32 %v2226_v3, %v1995_v36  ;;  %v5335_v43 = vmax.f32 %v2324_v48, %v2378_v53  ;;  %v2380_v33 = vsel %vm95_vm1, %v2375_v31, %v2379_v4  ;;  %v5388_v41 = vmax.f32 %v2319_v16, %v2368_v9  ;;  %v2639_v16 = vld [vmem:[%s5908_s9 + $0x70] sm:$0xff]  ;;  %v2626_v10 = vld [vmem:[%s5908_s9 + $0x8] sm:$0xff] }
 0x3e7   :  { %v2383_v40 = vrot.slane %v2329_v7, 1  ;;  %v2330_v26 = vmax.f32 %v2310_v21, 0.0  ;;  %v2311_v50 = vadd.f32 %v5219_v32, %v2279_v30  ;;  %v5339_v1 = vmax.f32 %v2325_v59, %v2380_v33  ;;  %2650 = vmatpush1.msra.mxu1 %v2639_v16 }
 0x3e8   :  { %v2280_v51 = vmul.f32 %v5216_v37, %v2248_v29  ;;  %2473 = vrot.lane.b32.xlu1 %v5335_v43, %s3560_s5  ;;  %v2382_v34 = vsel %vm95_vm1, %v2377_v25, %v2381_v63  ;;  %v5394_v55 = vmax.f32 %v2320_v28, %v2370_v14  ;;  %2651 = vmatprep.subr.mxu1 %v5934_v61  ;;  %v2637_v28 = vld [vmem:[%s5908_s9 + $0x60] sm:$0xff] }
 0x3e9   :  { %v2385_v60 = vrot.slane %v2330_v26, 1  ;;  %v2331_v23 = vmax.f32 %v2311_v50, 0.0  ;;  %v5345_v62 = vmax.f32 %v2326_v18, %v2382_v34  ;;  %v2384_v48 = vsel %vm95_vm1, %v2379_v4, %v2383_v40  ;;  %2652 = vmatpush1.msra.mxu1 %v2638_v44 }
 0x3ea   :  { %v2312_v22 = vadd.f32 %v5223_v47, %v2280_v51  ;;  %2475 = vrot.lane.b32.xlu0 %v5339_v1, %s3560_s5  ;;  %v5351_v32 = vmax.f32 %v2327_v8, %v2384_v48  ;;  %2653 = vmatprep.subr.mxu1 %v5934_v61  ;;  %v2632_v8 = vld [vmem:[%s5908_s9 + $0x38] sm:$0xff] }
 0x3eb   :  { %v2386_v37 = vsel %vm95_vm1, %v2381_v63, %v2385_v60  ;;  %v2387_v59 = vrot.slane %v2331_v23, 1  ;;  %2654 = vmatpush1.msra.mxu1 %v2637_v28 }
 0x3ec   :  { %v2332_v31 = vmax.f32 %v2312_v22, 0.0  ;;  %2477 = vrot.lane.b32.xlu1 %v5345_v62, %s3560_s5  ;;  %v5356_v39 = vmax.f32 %v2328_v12, %v2386_v37  ;;  %2655 = vmatprep.subr.mxu1 %v5934_v61  ;;  %v2628_v12 = vld [vmem:[%s5908_s9 + $0x18] sm:$0xff] }
 0x3ed   :  { %v5360_v18 = vmax.f32 %v2331_v23, %v2387_v59  ;;  %v2388_v45 = vsel %vm95_vm1, %v2383_v40, %v2387_v59  ;;  %2656 = vmatpush1.msra.mxu1 %v2636_v58 }
 0x3ee   :  { %2479 = vrot.lane.b32.xlu0 %v5351_v32, %s3560_s5  ;;  %v2389_v47 = vrot.slane %v2332_v31, 1  ;;  %v5372_v54 = vmax.f32 %v2329_v7, %v2388_v45  ;;  %2657 = vmatprep.subr.mxu1 %v5934_v61 }
 0x3ef   :  { %2658 = vmatpush1.msra.mxu1 %v2635_v24 }
 0x3f0   :  { %2481 = vrot.lane.b32.xlu1 %v5356_v39, %s3560_s5  ;;  %v5364_v11 = vmax.f32 %v2332_v31, %v2389_v47  ;;  %v2390_v52 = vsel %vm95_vm1, %v2385_v60, %v2389_v47  ;;  %2659 = vmatprep.subr.mxu1 %v5934_v61 }
 0x3f1   :  { %v5379_v25 = vmax.f32 %v2330_v26, %v2390_v52  ;;  %2660 = vmatpush1.msra.mxu1 %v2634_v57 }
 0x3f2   :  { %2487 = vrot.lane.b32.xlu0 %v5360_v18, %s3560_s5  ;;  %2661 = vmatprep.subr.mxu1 %v5934_v61 }
 0x3f3   :  { %2662 = vmatpush1.msra.mxu1 %v2633_v20  ;;  %v2641_v20 = vld [vmem:[%s5908_s9 + $0x80] sm:$0xff] }
 0x3f4   :  { %2489 = vrot.lane.b32.xlu1 %v5364_v11, %s3560_s5  ;;  %2663 = vmatprep.subr.mxu1 %v5934_v61 }
 0x3f5   :  { %2664 = vmatpush1.msra.mxu1 %v2632_v8  ;;  %v2983_v8 = vld [vmem:[%s5908_s9 + $0x198] sm:$0xff] }
 0x3f6   :  { %2483 = vrot.lane.b32.xlu0 %v5372_v54, %s3560_s5  ;;  %2665 = vmatprep.subr.mxu1 %v5934_v61 }
 0x3f7   :  { %2666 = vmatpush1.msra.mxu1 %v2631_v15  ;;  %v2982_v15 = vld [vmem:[%s5908_s9 + $0x190] sm:$0xff] }
 0x3f8   :  { %2485 = vrot.lane.b32.xlu1 %v5379_v25, %s3560_s5  ;;  %2667 = vmatprep.subr.mxu1 %v5934_v61 }
 0x3f9   :  { %2668 = vmatpush1.msra.mxu1 %v2630_v2  ;;  %v2981_v2 = vld [vmem:[%s5908_s9 + $0x188] sm:$0xff] }
 0x3fa   :  { %2463 = vrot.lane.b32.xlu0 %v5388_v41, %s3560_s5  ;;  %2669 = vmatprep.subr.mxu1 %v5934_v61 }
 0x3fb   :  { %2670 = vmatpush1.msra.mxu1 %v2629_v13  ;;  %v2980_v13 = vld [vmem:[%s5908_s9 + $0x180] sm:$0xff] }
 0x3fc   :  { %2465 = vrot.lane.b32.xlu1 %v5394_v55, %s3560_s5  ;;  %2671 = vmatprep.subr.mxu1 %v5934_v61 }
 0x3fd   :  { %2672 = vmatpush1.msra.mxu1 %v2628_v12  ;;  %v2979_v12 = vld [vmem:[%s5908_s9 + $0x178] sm:$0xff] }
 0x3fe   :  { %2459 = vrot.lane.b32.xlu0 %v5283_v5, %s3560_s5  ;;  %2673 = vmatprep.subr.mxu1 %v5934_v61 }
 0x3ff   :  { %2674 = vmatpush1.msra.mxu1 %v2627_v0  ;;  %v2978_v0 = vld [vmem:[%s5908_s9 + $0x170] sm:$0xff] }
 0x400   :  { %2461 = vrot.lane.b32.xlu1 %v5294_v27, %s3560_s5  ;;  %2675 = vmatprep.subr.mxu1 %v5934_v61 }
 0x401   :  { %2676 = vmatpush1.msra.mxu1 %v2626_v10  ;;  %v2977_v10 = vld [vmem:[%s5908_s9 + $0x168] sm:$0xff] }
 0x402   :  { %2455 = vrot.lane.b32.xlu0 %v5264_v42, %s3560_s5  ;;  %2677 = vmatprep.subr.mxu1 %v5934_v61 }
 0x403   :  { %2678 = vmatpush1.msra.mxu1 %v2625_v6  ;;  %v2976_v6 = vld [vmem:[%s5908_s9 + $0x160] sm:$0xff] }
 0x404   :  { %2457 = vrot.lane.b32.xlu1 %v5276_v35, %s3560_s5  ;;  %2707 = vmatprep.subr.mxu1 %v5934_v61 }
 0x406   :  { %2451 = vrot.lane.b32.xlu0 %v5245_v38, %s3560_s5 }
 0x408   :  { %2453 = vrot.lane.b32.xlu1 %v5254_v49, %s3560_s5 }
 0x454   :  { %v2468_v36 = vpop.permute.xlu0 %2467 }
 0x456   :  { %v2470_v4 = vpop.permute.xlu1 %2469 }
 0x458   :  { %v2472_v3 = vpop.permute.xlu0 %2471 }
 0x45a   :  { %v2474_v53 = vpop.permute.xlu1 %2473 }
 0x45c   :  { %v2476_v63 = vpop.permute.xlu0 %2475 }
 0x45e   :  { %v2478_v7 = vpop.permute.xlu1 %2477 }
 0x45f   :  { %v2498_v59 = vsel %vm2491_vm7, %v2476_v63, %v2478_v7  ;;  %v5504_v45 = vmax.f32 %v5345_v62, %v2478_v7  ;;  %v2971_v63 = vld [vmem:[%s5908_s9 + $0x138] sm:$0xff]  ;;  %v2970_v7 = vld [vmem:[%s5908_s9 + $0x130] sm:$0xff] }
 0x460   :  { %v2480_v21 = vpop.permute.xlu0 %2479  ;;  %v5508_v52 = vmax.f32 %v5339_v1, %v2498_v59  ;;  %v2811_v59 = vld [vmem:[%s5908_s9 + $0xe8] sm:$0xff] }
 0x462   :  { %v2482_v30 = vpop.permute.xlu1 %2481 }
 0x463   :  { %v2499_v60 = vsel %vm2491_vm7, %v2480_v21, %v2482_v30  ;;  %v5495_v31 = vmax.f32 %v5356_v39, %v2482_v30  ;;  %v2969_v21 = vld [vmem:[%s5908_s9 + $0x128] sm:$0xff]  ;;  %v2968_v30 = vld [vmem:[%s5908_s9 + $0x120] sm:$0xff] }
 0x464   :  { %v2488_v29 = vpop.permute.xlu0 %2487 }
 0x466   :  { %v2490_v33 = vpop.permute.xlu1 %2489 }
 0x467   :  { %v2501_v40 = vsel %vm2491_vm7, %v2488_v29, %v2490_v33  ;;  %v5476_v26 = vmax.f32 %v5364_v11, %v2490_v33  ;;  %v2497_v11 = vsel %vm2491_vm7, %v2472_v3, %v2474_v53  ;;  %v2973_v3 = vld [vmem:[%s5908_s9 + $0x148] sm:$0xff]  ;;  %v2984_v33 = vld [vmem:[%s5908_s9 + $0x1a0] sm:$0xff] }
 0x468   :  { %v5479_v50 = vmax.f32 %v5360_v18, %v2501_v40  ;;  %v2484_v51 = vpop.permute.xlu0 %2483  ;;  %v5499_v18 = vmax.f32 %v5351_v32, %v2499_v60  ;;  %v5513_v32 = vmax.f32 %v5335_v43, %v2474_v53  ;;  %v5517_v9 = vmax.f32 %v5328_v19, %v2497_v11  ;;  %v2972_v53 = vld [vmem:[%s5908_s9 + $0x140] sm:$0xff]  ;;  %v2985_v29 = vld [vmem:[%s5908_s9 + $0x1a8] sm:$0xff]  ;;  %v2809_v11 = vld [vmem:[%s5908_s9 + $0xd8] sm:$0xff] }
 0x469   :  { %3512 = vmatprep.subr.msk.mxu0 %vm95_vm1, %v5476_v26  ;;  %v2814_v60 = vld [vmem:[%s5908_s9 + $0x100] sm:$0xff] }
 0x46a   :  { %3513 = vmatpush1.msk.msra.mxu0 %vm95_vm1, %v5479_v50  ;;  %v2486_v34 = vpop.permute.xlu1 %2485 }
 0x46b   :  { %v2500_v23 = vsel %vm2491_vm7, %v2484_v51, %v2486_v34  ;;  %v5488_v48 = vmax.f32 %v5379_v25, %v2486_v34  ;;  %v5521_v25 = vmax.f32 %v5320_v46, %v2470_v4  ;;  %v2815_v34 = vld [vmem:[%s5908_s9 + $0x108] sm:$0xff] }
 0x46c   :  { %v5491_v22 = vmax.f32 %v5372_v54, %v2500_v23  ;;  %v2464_v37 = vpop.permute.xlu0 %2463  ;;  %v2496_v54 = vsel %vm2491_vm7, %v2468_v36, %v2470_v4  ;;  %v2975_v36 = vld [vmem:[%s5908_s9 + $0x158] sm:$0xff]  ;;  %v2974_v4 = vld [vmem:[%s5908_s9 + $0x150] sm:$0xff] }
 0x46d   :  { %2568 = vmatprep.subr.mxu0 %v5488_v48  ;;  %v5526_v14 = vmax.f32 %v5312_v17, %v2496_v54  ;;  %v2813_v23 = vld [vmem:[%s5908_s9 + $0xf8] sm:$0xff]  ;;  %v2807_v54 = vld [vmem:[%s5908_s9 + $0xc8] sm:$0xff] }
 0x46e   :  { %2569 = vmatpush1.msra.mxu0 %v5491_v22  ;;  %v2466_v47 = vpop.permute.xlu1 %2465 }
 0x46f   :  { %2570 = vmatprep.subr.mxu0 %v5495_v31  ;;  %v2495_v1 = vsel %vm2491_vm7, %v2464_v37, %v2466_v47  ;;  %v5530_v56 = vmax.f32 %v5394_v55, %v2466_v47  ;;  %v2812_v37 = vld [vmem:[%s5908_s9 + $0xf0] sm:$0xff]  ;;  %v2810_v47 = vld [vmem:[%s5908_s9 + $0xe0] sm:$0xff] }
 0x470   :  { %v2460_v39 = vpop.permute.xlu0 %2459  ;;  %2571 = vmatpush1.msra.mxu0 %v5499_v18  ;;  %v5535_v46 = vmax.f32 %v5388_v41, %v2495_v1 }
 0x471   :  { %2572 = vmatprep.subr.mxu0 %v5504_v45 }
 0x472   :  { %2573 = vmatpush1.msra.mxu0 %v5508_v52  ;;  %v2462_v62 = vpop.permute.xlu1 %2461 }
 0x473   :  { %2574 = vmatprep.subr.mxu0 %v5513_v32  ;;  %v2494_v19 = vsel %vm2491_vm7, %v2460_v39, %v2462_v62  ;;  %v5539_v44 = vmax.f32 %v5294_v27, %v2462_v62  ;;  %v2808_v39 = vld [vmem:[%s5908_s9 + $0xd0] sm:$0xff]  ;;  %v2806_v62 = vld [vmem:[%s5908_s9 + $0xc0] sm:$0xff] }
 0x474   :  { %v2456_v43 = vpop.permute.xlu0 %2455  ;;  %2575 = vmatpush1.msra.mxu0 %v5517_v9  ;;  %v5544_v55 = vmax.f32 %v5283_v5, %v2494_v19 }
 0x475   :  { %2576 = vmatprep.subr.mxu0 %v5521_v25 }
 0x476   :  { %2577 = vmatpush1.msra.mxu0 %v5526_v14  ;;  %v2458_v16 = vpop.permute.xlu1 %2457 }
 0x477   :  { %v2493_v17 = vsel %vm2491_vm7, %v2456_v43, %v2458_v16  ;;  %2578 = vmatprep.subr.mxu0 %v5530_v56  ;;  %v5548_v28 = vmax.f32 %v5276_v35, %v2458_v16  ;;  %v2642_v35 = vld [vmem:[%s5908_s9 + $0x88] sm:$0xff]  ;;  %v2805_v43 = vld [vmem:[%s5908_s9 + $0xb8] sm:$0xff]  ;;  %v2804_v16 = vld [vmem:[%s5908_s9 + $0xb0] sm:$0xff] }
 0x478   :  { %2579 = vmatpush1.msra.mxu0 %v5535_v46  ;;  %v5552_v41 = vmax.f32 %v5264_v42, %v2493_v17  ;;  %v2452_v58 = vpop.permute.xlu0 %2451  ;;  %v2543_v42 = vld [vmem:[%s5909_s8] sm:$0xff]  ;;  %2708 = vmatpush2.msra.mxu1 %v2642_v35  ;;  %v2803_v17 = vld [vmem:[%s5908_s9 + $0xa8] sm:$0xff] }
 0x479   :  { %2580 = vmatprep.subr.mxu0 %v5539_v44  ;;  %2709 = vmatprep.subr.mxu1 %v5934_v61 }
 0x47a   :  { %2581 = vmatpush1.msra.mxu0 %v5544_v55  ;;  %v2454_v27 = vpop.permute.xlu1 %2453  ;;  %2710 = vmatpush2.msra.mxu1 %v2641_v20 }
 0x47b   :  { %v2492_v24 = vsel %vm2491_vm7, %v2452_v58, %v2454_v27  ;;  %v5557_v57 = vmax.f32 %v5254_v49, %v2454_v27  ;;  %2582 = vmatprep.subr.mxu0 %v5548_v28  ;;  %v3522_v49 = vld [vmem:[%s5909_s8 + $0x10] sm:$0xff]  ;;  %2821 = vmatprep.subr.mxu1 %v5934_v61  ;;  %v2802_v58 = vld [vmem:[%s5908_s9 + $0xa0] sm:$0xff]  ;;  %v2801_v27 = vld [vmem:[%s5908_s9 + $0x98] sm:$0xff] }
 0x47c   :  { %v5561_v5 = vmax.f32 %v5245_v38, %v2492_v24  ;;  %2583 = vmatpush1.msra.mxu0 %v5552_v41  ;;  %v3517_v38 = vld [vmem:[%s5909_s8 + $0x8] sm:$0xff]  ;;  %v2800_v24 = vld [vmem:[%s5908_s9 + $0x90] sm:$0xff] }
 0x47d   :  { %2584 = vmatprep.subr.mxu0 %v5557_v57 }
 0x47e   :  { %2585 = vmatpush1.msra.mxu0 %v5561_v5 }
 0x47f   :  { %3514 = vmatmul.mubr.msk.f32.vlgmr.msra.gmra.mxu0 %vm2544_vm8, %v2543_v42  ;;  %3518 = vmatprep.subr.msk.mxu0 %vm95_vm1, %v5476_v26  ;;  %v2817_v42 = vld [vmem:[%s5908_s9 + $0x118] sm:$0xff] }
 0x480   :  { %3519 = vmatpush1.msk.msra.mxu0 %vm95_vm1, %v5479_v50  ;;  %2793 = vmatprep.mubr.f32.mxu0 %v5934_v61 }
 0x481   :  { %2743 = vmatprep.subr.mxu0 %v5488_v48 }
 0x482   :  { %2744 = vmatpush1.msra.mxu0 %v5491_v22 }
 0x483   :  { %2745 = vmatprep.subr.mxu0 %v5495_v31 }
 0x484   :  { %2746 = vmatpush1.msra.mxu0 %v5499_v18 }
 0x485   :  { %2747 = vmatprep.subr.mxu0 %v5504_v45 }
 0x486   :  { %2748 = vmatpush1.msra.mxu0 %v5508_v52 }
 0x487   :  { %2749 = vmatprep.subr.mxu0 %v5513_v32 }
 0x488   :  { %2750 = vmatpush1.msra.mxu0 %v5517_v9 }
 0x489   :  { %2751 = vmatprep.subr.mxu0 %v5521_v25 }
 0x48a   :  { %2752 = vmatpush1.msra.mxu0 %v5526_v14 }
 0x48b   :  { %2753 = vmatprep.subr.mxu0 %v5530_v56 }
 0x48c   :  { %2754 = vmatpush1.msra.mxu0 %v5535_v46 }
 0x48d   :  { %2755 = vmatprep.subr.mxu0 %v5539_v44 }
 0x48e   :  { %2756 = vmatpush1.msra.mxu0 %v5544_v55 }
 0x48f   :  { %2757 = vmatprep.subr.mxu0 %v5548_v28 }
 0x490   :  { %2758 = vmatpush1.msra.mxu0 %v5552_v41 }
 0x491   :  { %2759 = vmatprep.subr.mxu0 %v5557_v57 }
 0x492   :  { %2760 = vmatpush1.msra.mxu0 %v5561_v5 }
 0x493   :  { %3523 = vmatprep.subr.msk.mxu0 %vm95_vm1, %v5476_v26  ;;  %3520 = vmatmul.mubr.msk.f32.vlgmr.msra.gmra.mxu0 %vm2544_vm8, %v3517_v38  ;;  %v2816_v38 = vld [vmem:[%s5908_s9 + $0x110] sm:$0xff] }
 0x494   :  { %3524 = vmatpush1.msk.msra.mxu0 %vm95_vm1, %v5479_v50  ;;  %2961 = vmatprep.mubr.f32.mxu0 %v5934_v61 }
 0x495   :  { %2911 = vmatprep.subr.mxu0 %v5488_v48 }
 0x496   :  { %2912 = vmatpush1.msra.mxu0 %v5491_v22 }
 0x497   :  { %2913 = vmatprep.subr.mxu0 %v5495_v31 }
 0x498   :  { %2914 = vmatpush1.msra.mxu0 %v5499_v18 }
 0x499   :  { %2915 = vmatprep.subr.mxu0 %v5504_v45 }
 0x49a   :  { %2916 = vmatpush1.msra.mxu0 %v5508_v52 }
 0x49b   :  { %2917 = vmatprep.subr.mxu0 %v5513_v32 }
 0x49c   :  { %2918 = vmatpush1.msra.mxu0 %v5517_v9 }
 0x49d   :  { %2919 = vmatprep.subr.mxu0 %v5521_v25 }
 0x49e   :  { %2920 = vmatpush1.msra.mxu0 %v5526_v14 }
 0x49f   :  { %2921 = vmatprep.subr.mxu0 %v5530_v56 }
 0x4a0   :  { %2922 = vmatpush1.msra.mxu0 %v5535_v46 }
 0x4a1   :  { %2923 = vmatprep.subr.mxu0 %v5539_v44 }
 0x4a2   :  { %2924 = vmatpush1.msra.mxu0 %v5544_v55 }
 0x4a3   :  { %2925 = vmatprep.subr.mxu0 %v5548_v28 }
 0x4a4   :  { %2926 = vmatpush1.msra.mxu0 %v5552_v41 }
 0x4a5   :  { %2927 = vmatprep.subr.mxu0 %v5557_v57 }
 0x4a6   :  { %2928 = vmatpush1.msra.mxu0 %v5561_v5 }
 0x4a7   :  { %3525 = vmatmul.mubr.msk.f32.vlgmr.msra.gmra.mxu0 %vm2544_vm8, %v3522_v49  ;;  %2989 = vmatprep.subr.mxu0 %v5934_v61 }
 0x4a8   :  { %2990 = vmatpush1.msra.mxu0 %v2983_v8  ;;  %v3516_v8 = vld [vmem:[%s5910_s10] ss:$0 sm:$0xff] }
 0x4a9   :  { %2991 = vmatprep.subr.mxu0 %v5934_v61 }
 0x4aa   :  { %2992 = vmatpush1.msra.mxu0 %v2982_v15 }
 0x4ab   :  { %2993 = vmatprep.subr.mxu0 %v5934_v61 }
 0x4ac   :  { %2994 = vmatpush1.msra.mxu0 %v2981_v2 }
 0x4ad   :  { %2995 = vmatprep.subr.mxu0 %v5934_v61 }
 0x4ae   :  { %2996 = vmatpush1.msra.mxu0 %v2980_v13 }
 0x4af   :  { %2997 = vmatprep.subr.mxu0 %v5934_v61 }
 0x4b0   :  { %2998 = vmatpush1.msra.mxu0 %v2979_v12 }
 0x4b1   :  { %2999 = vmatprep.subr.mxu0 %v5934_v61 }
 0x4b2   :  { %3000 = vmatpush1.msra.mxu0 %v2978_v0 }
 0x4b3   :  { %3001 = vmatprep.subr.mxu0 %v5934_v61 }
 0x4b4   :  { %3002 = vmatpush1.msra.mxu0 %v2977_v10 }
 0x4b5   :  { %3003 = vmatprep.subr.mxu0 %v5934_v61 }
 0x4b6   :  { %3004 = vmatpush1.msra.mxu0 %v2976_v6 }
 0x4b7   :  { %3005 = vmatprep.subr.mxu0 %v5934_v61 }
 0x4b8   :  { %3006 = vmatpush1.msra.mxu0 %v2975_v36 }
 0x4b9   :  { %3007 = vmatprep.subr.mxu0 %v5934_v61 }
 0x4ba   :  { %3008 = vmatpush1.msra.mxu0 %v2974_v4 }
 0x4bb   :  { %3009 = vmatprep.subr.mxu0 %v5934_v61 }
 0x4bc   :  { %3010 = vmatpush1.msra.mxu0 %v2973_v3  ;;  %v3230_v3 = vld [vmem:[%s5911_s11 + $0x8] sm:$0xff] }
 0x4bd   :  { %3011 = vmatprep.subr.mxu0 %v5934_v61 }
 0x4be   :  { %3012 = vmatpush1.msra.mxu0 %v2972_v53  ;;  %v3229_v53 = vld [vmem:[%s5911_s11] sm:$0xff] }
 0x4bf   :  { %3013 = vmatprep.subr.mxu0 %v5934_v61 }
 0x4c0   :  { %3014 = vmatpush1.msra.mxu0 %v2971_v63 }
 0x4c1   :  { %3015 = vmatprep.subr.mxu0 %v5934_v61 }
 0x4c2   :  { %3016 = vmatpush1.msra.mxu0 %v2970_v7 }
 0x4c3   :  { %3017 = vmatprep.subr.mxu0 %v5934_v61 }
 0x4c4   :  { %3018 = vmatpush1.msra.mxu0 %v2969_v21 }
 0x4c5   :  { %3019 = vmatprep.subr.mxu0 %v5934_v61 }
 0x4c6   :  { %3020 = vmatpush1.msra.mxu0 %v2968_v30 }
 0x4c7   :  { %3049 = vmatprep.subr.mxu0 %v5934_v61 }
 0x4c8   :  { %3050 = vmatpush2.msra.mxu0 %v2985_v29  ;;  %v3532_v29 = vld [vmem:[%s5912_s12] ss:$0 sm:$0xff] }
 0x4c9   :  { %3051 = vmatprep.subr.mxu0 %v5934_v61 }
 0x4ca   :  { %3052 = vmatpush2.msra.mxu0 %v2984_v33 }
 0x4cb   :  { %3537 = vmatprep.subr.mxu0 %v5934_v61 }
 0x53f   :  { %v2620_v40 = vpop.f32.mrf.mxu0 }
 0x541   :  { %v2622_v51 = vpop.f32.mrf.mxu0 }
 0x542   :  { %3515 = vmatprep.mubr.msk.f32.mxu1 %vm2643_vm9, %v2622_v51 }
 0x543   :  { %2712 = vmatmul.mubr.f32.vlgmr.msra.gmra.mxu1 %v2620_v40 }
 0x544   :  { %2822 = vmatpush1.msra.mxu1 %v2815_v34 }
 0x545   :  { %2823 = vmatprep.subr.mxu1 %v5934_v61 }
 0x546   :  { %2824 = vmatpush1.msra.mxu1 %v2814_v60 }
 0x547   :  { %2825 = vmatprep.subr.mxu1 %v5934_v61 }
 0x548   :  { %2826 = vmatpush1.msra.mxu1 %v2813_v23 }
 0x549   :  { %2827 = vmatprep.subr.mxu1 %v5934_v61 }
 0x54a   :  { %2828 = vmatpush1.msra.mxu1 %v2812_v37 }
 0x54b   :  { %2829 = vmatprep.subr.mxu1 %v5934_v61 }
 0x54c   :  { %2830 = vmatpush1.msra.mxu1 %v2811_v59 }
 0x54d   :  { %2831 = vmatprep.subr.mxu1 %v5934_v61 }
 0x54e   :  { %2832 = vmatpush1.msra.mxu1 %v2810_v47 }
 0x54f   :  { %2833 = vmatprep.subr.mxu1 %v5934_v61 }
 0x550   :  { %2834 = vmatpush1.msra.mxu1 %v2809_v11 }
 0x551   :  { %2835 = vmatprep.subr.mxu1 %v5934_v61 }
 0x552   :  { %2836 = vmatpush1.msra.mxu1 %v2808_v39 }
 0x553   :  { %2837 = vmatprep.subr.mxu1 %v5934_v61  ;;  %v2795_v1 = vpop.f32.mrf.mxu0 }
 0x554   :  { %2838 = vmatpush1.msra.mxu1 %v2807_v54 }
 0x555   :  { %2839 = vmatprep.subr.mxu1 %v5934_v61  ;;  %v2797_v19 = vpop.f32.mrf.mxu0 }
 0x556   :  { %2840 = vmatpush1.msra.mxu1 %v2806_v62  ;;  %3521 = vmatprep.mubr.msk.f32.mxu1 %vm2643_vm9, %v2797_v19 }
 0x557   :  { %2841 = vmatprep.subr.mxu1 %v5934_v61 }
 0x558   :  { %2842 = vmatpush1.msra.mxu1 %v2805_v43 }
 0x559   :  { %2843 = vmatprep.subr.mxu1 %v5934_v61 }
 0x55a   :  { %2844 = vmatpush1.msra.mxu1 %v2804_v16 }
 0x55b   :  { %2845 = vmatprep.subr.mxu1 %v5934_v61 }
 0x55c   :  { %2846 = vmatpush1.msra.mxu1 %v2803_v17 }
 0x55d   :  { %2847 = vmatprep.subr.mxu1 %v5934_v61 }
 0x55e   :  { %2848 = vmatpush1.msra.mxu1 %v2802_v58 }
 0x55f   :  { %2849 = vmatprep.subr.mxu1 %v5934_v61 }
 0x560   :  { %2850 = vmatpush1.msra.mxu1 %v2801_v27 }
 0x561   :  { %2851 = vmatprep.subr.mxu1 %v5934_v61 }
 0x562   :  { %2852 = vmatpush1.msra.mxu1 %v2800_v24 }
 0x563   :  { %2881 = vmatprep.subr.mxu1 %v5934_v61 }
 0x564   :  { %2882 = vmatpush2.msra.mxu1 %v2817_v42 }
 0x565   :  { %2883 = vmatprep.subr.mxu1 %v5934_v61 }
 0x566   :  { %2884 = vmatpush2.msra.mxu1 %v2816_v38 }
 0x567   :  { %2886 = vmatmul.mubr.f32.vlgmr.msra.gmra.mxu1 %v2795_v1  ;;  %3528 = vmatprep.subr.msk.mxu1 %vm95_vm1, %v5476_v26  ;;  %v2963_v49 = vpop.f32.mrf.mxu0  ;;  %v3527_v26 = vld [vmem:[%s5909_s8 + $0x18] sm:$0xff] }
 0x568   :  { %3529 = vmatpush1.msk.msra.mxu1 %vm95_vm1, %v5479_v50  ;;  %3129 = vmatprep.mubr.f32.mxu1 %v5934_v61  ;;  %v3151_v50 = vld [vmem:[%s5908_s9 + $0x228] sm:$0xff] }
 0x569   :  { %3079 = vmatprep.subr.mxu1 %v5488_v48  ;;  %v2965_v35 = vpop.f32.mrf.mxu0  ;;  %v3150_v48 = vld [vmem:[%s5908_s9 + $0x220] sm:$0xff] }
 0x56a   :  { %3080 = vmatpush1.msra.mxu1 %v5491_v22  ;;  %3526 = vmatprep.mubr.msk.f32.mxu0 %vm2643_vm9, %v2965_v35  ;;  %v3149_v22 = vld [vmem:[%s5908_s9 + $0x218] sm:$0xff] }
 0x56b   :  { %3081 = vmatprep.subr.mxu1 %v5495_v31  ;;  %3054 = vmatmul.mubr.f32.vlgmr.msra.gmra.mxu0 %v2963_v49  ;;  %v3148_v31 = vld [vmem:[%s5908_s9 + $0x210] sm:$0xff] }
 0x56c   :  { %3082 = vmatpush1.msra.mxu1 %v5499_v18  ;;  %v3147_v18 = vld [vmem:[%s5908_s9 + $0x208] sm:$0xff]  ;;  %3538 = vmatpush3.msra.mxu0 %v3230_v3 }
 0x56d   :  { %3083 = vmatprep.subr.mxu1 %v5504_v45  ;;  %v3146_v45 = vld [vmem:[%s5908_s9 + $0x200] sm:$0xff]  ;;  %3539 = vmatprep.subr.mxu0 %v5934_v61 }
 0x56e   :  { %3084 = vmatpush1.msra.mxu1 %v5508_v52  ;;  %v3145_v52 = vld [vmem:[%s5908_s9 + $0x1f8] sm:$0xff]  ;;  %3540 = vmatpush3.msra.mxu0 %v3229_v53 }
 0x56f   :  { %3085 = vmatprep.subr.mxu1 %v5513_v32  ;;  %v3144_v32 = vld [vmem:[%s5908_s9 + $0x1f0] sm:$0xff]  ;;  %3541 = vmatprep.mubr.msk.f32.mxu0 %vm3561_vm10, %v5934_v61 }
 0x570   :  { %3086 = vmatpush1.msra.mxu1 %v5517_v9  ;;  %v3143_v9 = vld [vmem:[%s5908_s9 + $0x1e8] sm:$0xff] }
 0x571   :  { %3087 = vmatprep.subr.mxu1 %v5521_v25  ;;  %v3142_v25 = vld [vmem:[%s5908_s9 + $0x1e0] sm:$0xff] }
 0x572   :  { %3088 = vmatpush1.msra.mxu1 %v5526_v14  ;;  %v3141_v14 = vld [vmem:[%s5908_s9 + $0x1d8] sm:$0xff] }
 0x573   :  { %3089 = vmatprep.subr.mxu1 %v5530_v56  ;;  %v3140_v56 = vld [vmem:[%s5908_s9 + $0x1d0] sm:$0xff] }
 0x574   :  { %3090 = vmatpush1.msra.mxu1 %v5535_v46  ;;  %v3139_v46 = vld [vmem:[%s5908_s9 + $0x1c8] sm:$0xff] }
 0x575   :  { %3091 = vmatprep.subr.mxu1 %v5539_v44  ;;  %v3138_v44 = vld [vmem:[%s5908_s9 + $0x1c0] sm:$0xff] }
 0x576   :  { %3092 = vmatpush1.msra.mxu1 %v5544_v55  ;;  %v3137_v55 = vld [vmem:[%s5908_s9 + $0x1b8] sm:$0xff] }
 0x577   :  { %3093 = vmatprep.subr.mxu1 %v5548_v28  ;;  %v3136_v28 = vld [vmem:[%s5908_s9 + $0x1b0] sm:$0xff] }
 0x578   :  { %3094 = vmatpush1.msra.mxu1 %v5552_v41  ;;  %v3153_v41 = vld [vmem:[%s5908_s9 + $0x238] sm:$0xff] }
 0x579   :  { %3095 = vmatprep.subr.mxu1 %v5557_v57  ;;  %v3152_v57 = vld [vmem:[%s5908_s9 + $0x230] sm:$0xff] }
 0x57a   :  { %3096 = vmatpush1.msra.mxu1 %v5561_v5 }
 0x57b   :  { %3530 = vmatmul.mubr.msk.f32.vlgmr.msra.gmra.mxu1 %vm2544_vm8, %v3527_v26  ;;  %3157 = vmatprep.subr.mxu1 %v5934_v61 }
 0x57c   :  { %3158 = vmatpush1.msra.mxu1 %v3151_v50 }
 0x57d   :  { %3159 = vmatprep.subr.mxu1 %v5934_v61 }
 0x57e   :  { %3160 = vmatpush1.msra.mxu1 %v3150_v48 }
 0x57f   :  { %3161 = vmatprep.subr.mxu1 %v5934_v61 }
 0x580   :  { %3162 = vmatpush1.msra.mxu1 %v3149_v22 }
 0x581   :  { %3163 = vmatprep.subr.mxu1 %v5934_v61 }
 0x582   :  { %3164 = vmatpush1.msra.mxu1 %v3148_v31 }
 0x583   :  { %3165 = vmatprep.subr.mxu1 %v5934_v61 }
 0x584   :  { %3166 = vmatpush1.msra.mxu1 %v3147_v18 }
 0x585   :  { %3167 = vmatprep.subr.mxu1 %v5934_v61 }
 0x586   :  { %3168 = vmatpush1.msra.mxu1 %v3146_v45 }
 0x587   :  { %3169 = vmatprep.subr.mxu1 %v5934_v61 }
 0x588   :  { %3170 = vmatpush1.msra.mxu1 %v3145_v52 }
 0x589   :  { %3171 = vmatprep.subr.mxu1 %v5934_v61 }
 0x58a   :  { %3172 = vmatpush1.msra.mxu1 %v3144_v32 }
 0x58b   :  { %3173 = vmatprep.subr.mxu1 %v5934_v61 }
 0x58c   :  { %3174 = vmatpush1.msra.mxu1 %v3143_v9 }
 0x58d   :  { %3175 = vmatprep.subr.mxu1 %v5934_v61 }
 0x58e   :  { %3176 = vmatpush1.msra.mxu1 %v3142_v25 }
 0x58f   :  { %3177 = vmatprep.subr.mxu1 %v5934_v61 }
 0x590   :  { %3178 = vmatpush1.msra.mxu1 %v3141_v14 }
 0x591   :  { %3179 = vmatprep.subr.mxu1 %v5934_v61 }
 0x592   :  { %3180 = vmatpush1.msra.mxu1 %v3140_v56 }
 0x593   :  { %3181 = vmatprep.subr.mxu1 %v5934_v61 }
 0x594   :  { %3182 = vmatpush1.msra.mxu1 %v3139_v46 }
 0x595   :  { %3183 = vmatprep.subr.mxu1 %v5934_v61 }
 0x596   :  { %3184 = vmatpush1.msra.mxu1 %v3138_v44 }
 0x597   :  { %3185 = vmatprep.subr.mxu1 %v5934_v61 }
 0x598   :  { %3186 = vmatpush1.msra.mxu1 %v3137_v55 }
 0x599   :  { %3187 = vmatprep.subr.mxu1 %v5934_v61 }
 0x59a   :  { %3188 = vmatpush1.msra.mxu1 %v3136_v28 }
 0x59b   :  { %3217 = vmatprep.subr.mxu1 %v5934_v61 }
 0x59c   :  { %3218 = vmatpush2.msra.mxu1 %v3153_v41 }
 0x59d   :  { %3219 = vmatprep.subr.mxu1 %v5934_v61 }
 0x59e   :  { %3220 = vmatpush2.msra.mxu1 %v3152_v57 }
 0x603   :  { %v2713_v5 = vpop.f32.mrf.mxu1 }
 0x604   :  { %v2723_v15 = vadd.f32 %v3516_v8, %v2713_v5 }
 0x605   :  { %v2715_v20 = vpop.f32.mrf.mxu1 }
 0x627   :  { %v2887_v2 = vpop.f32.mrf.mxu1 }
 0x628   :  { %v2891_v13 = vadd.f32 %v2887_v2, %v2723_v15 }
 0x629   :  { %v2889_v12 = vpop.f32.mrf.mxu1 }
 0x62b   :  { %v3055_v0 = vpop.f32.mrf.mxu0 }
 0x62c   :  { %v3059_v10 = vadd.f32 %v3055_v0, %v2891_v13 }
 0x62d   :  { %v3057_v6 = vpop.f32.mrf.mxu0 }
 0x63b   :  { %v3131_v36 = vpop.f32.mrf.mxu1 }
 0x63d   :  { %v3133_v4 = vpop.f32.mrf.mxu1 }
 0x63e   :  { %3531 = vmatprep.mubr.msk.f32.mxu1 %vm2643_vm9, %v3133_v4 }
 0x63f   :  { %3222 = vmatmul.mubr.f32.vlgmr.msra.gmra.mxu1 %v3131_v36 }
 0x6ff   :  { %v3223_v63 = vpop.f32.mrf.mxu1 }
 0x700   :  { %v3227_v7 = vadd.f32 %v3223_v63, %v3059_v10 }
 0x701   :  { %v3225_v21 = vpop.f32.mrf.mxu1 }
 0x702   :  { %v3228_v30 = vmax.f32 %v3227_v7, 0.0 }
 0x704   :  { %3542 = vmatmul.mubr.msk.f32.vlgmr.msra.gmra.mxu0 %vm2643_vm9, %v3228_v30 }
 0x7c4   :  { %v3307_v33 = vpop.f32.mrf.mxu0 }
 0x7c5   :  { %v3308_v40 = vadd.f32 %v3532_v29, %v3307_v33 }
 0x7c6   :  { %v3543_v51 = vpop.f32.mrf.mxu0 }
 0x7c7   :  { %v3312_v34 = vsel %vm3311_vm11, %v3308_v40, -inf }
 0x7c8   :  { %3313 = vmax.xlane.f32.xlu0 %v3312_v34 }
 0x851   :  { %v3314_v60 = vpop.xlane.xlu0 %3313 }
 0x852   :  { %v3315_v23 = vsub.f32 %v3308_v40, %v3314_v60 }
 0x854   :  { %v3316_v61 = vmul.f32 1.442695, %v3315_v23 }
 0x856   :  { %3554 = vpow2.f32 %v3316_v61 }
 0x863   :  { %v3555_v37 = vpop.eup %3554 }
 0x864   :  { %v3318_v59 = vsel %vm3311_vm11, %v3555_v37, 0.0 }
 0x865   :  { %3319 = vadd.xlane.f32.xlu1 %v3318_v59 }
 0x8ee   :  { %v3320_v47 = vpop.xlane.xlu1 %3319 }
 0x8ef   :  { %3556 = vlog2.f32 %v3320_v47 }
 0x8fc   :  { %v3557_v11 = vpop.eup %3556 }
 0x8fd   :  { %v3322_v39 = vmul.f32 0.6931472, %v3557_v11 }
 0x8ff   :  { %v3323_v54 = vsub.f32 %v3315_v23, %v3322_v39 }
 0x901   :  { %3324 = vst.msk [vmem:[%s5913_s13] sm:$0xff] %vm3311_vm11, %v3323_v54 }

</bundles_post_ra>
